<compile_context>
chip_gen: v6e
topology: v6e:2x2x1
jax: 0.10.0
libtpu: 0.0.40
codegen_flags: <defaults>
</compile_context>

<pallas_src>
import functools

import jax
import jax.numpy as jnp
from jax.experimental import pallas as pl
from jax.experimental.pallas import tpu as pltpu


# If pl.Buffered(1) (single-buffered constant weight blocks) is rejected by the
# installed JAX/Mosaic, fall back to default double-buffering once and remember.
_SINGLE_BUFFER_WEIGHTS = True


# ----------------------------- Pallas kernel -----------------------------

def _encoder_layer_kernel(*refs, num_heads, head_dim, eps, scale, has_mask,
                          tq, s_pad, s_valid, approx_softmax):
    if has_mask:
        x_ref, mask_ref = refs[0], refs[1]
        rest = refs[2:]
    else:
        x_ref = refs[0]
        mask_ref = None
        rest = refs[1:]
    (ln1_w_ref, ln1_b_ref,
     qw_ref, qb_ref, kw_ref, kb_ref, vw_ref, vb_ref, ow_ref, ob_ref,
     ln2_w_ref, ln2_b_ref, fc1w_ref, fc1b_ref, fc2w_ref, fc2b_ref,
     out_ref, k_sc, v_sc, h1_sc) = rest

    qi = pl.program_id(1)
    H, hd = num_heads, head_dim

    # Hoist LN weights / biases once (JAX does not CSE broadcasts).
    ln1_w, ln1_b = ln1_w_ref[0], ln1_b_ref[0]
    ln2_w, ln2_b = ln2_w_ref[0], ln2_b_ref[0]
    q_b, o_b = qb_ref[0], ob_ref[0]
    fc1_b, fc2_b = fc1b_ref[0], fc2b_ref[0]

    def layernorm(v, w, b):
        mu = jnp.mean(v, axis=-1, keepdims=True)
        c = v - mu
        var = jnp.mean(c * c, axis=-1, keepdims=True)
        return c * jax.lax.rsqrt(var + eps) * w + b

    # ---- once per batch step: LN1 + K/V over the full (padded) sequence ----
    @pl.when(qi == 0)
    def _():
        xf = x_ref[0].astype(jnp.float32)                              # (S, D)
        hf = layernorm(xf, ln1_w, ln1_b).astype(jnp.bfloat16)
        h1_sc[...] = hf                                                # LN1 cache
        k = jnp.dot(hf, kw_ref[...], preferred_element_type=jnp.float32) + kb_ref[0]
        v = jnp.dot(hf, vw_ref[...], preferred_element_type=jnp.float32) + vb_ref[0]
        # K stored pre-transposed (H, hd, S): one 2-D transpose + a free
        # leading-dim reshape; the score matmul RHS is then lane-dense over S.
        k_sc[...] = k.astype(jnp.bfloat16).T.reshape(H, hd, s_pad)
        v_sc[...] = v.astype(jnp.bfloat16).reshape(s_pad, H, hd).transpose(1, 0, 2)

    # ---- query tile: sliced from the already-resident full-sequence block ----
    row0 = pl.multiple_of(qi * tq, tq)
    xt = x_ref[0, pl.ds(row0, tq), :].astype(jnp.float32)              # (TQ, D)
    h1 = h1_sc[pl.ds(row0, tq), :]                                     # bf16 LN1 rows
    q = jnp.dot(h1, qw_ref[...], preferred_element_type=jnp.float32) + q_b
    q3 = (q * scale).astype(jnp.bfloat16).reshape(tq, H, hd).transpose(1, 0, 2)

    logits = jnp.einsum("hqd,hds->hqs", q3, k_sc[...],
                        preferred_element_type=jnp.float32)            # (H, TQ, S)
    if has_mask:
        logits = logits + mask_ref[0][None, :, :]
    if s_valid < s_pad:
        # Padded key positions must never receive attention weight.
        key_ok = jax.lax.broadcasted_iota(jnp.int32, (1, 1, s_pad), 2) < s_valid
        logits = jnp.where(key_ok, logits, jnp.float32(-1e30))

    logits = logits - jnp.max(logits, axis=-1, keepdims=True)
    e = jnp.exp(logits)
    denom = jnp.sum(e, axis=-1, keepdims=True)
    if approx_softmax:
        probs = e * pl.reciprocal(denom, approx=True)   # EUP, ~1e-3 rel. error
    else:
        probs = e / denom                               # exact (validation runs)
    probs = probs.astype(jnp.bfloat16)

    ctx = jnp.einsum("hqk,hkd->hqd", probs, v_sc[...],
                     preferred_element_type=jnp.float32)               # (H, TQ, hd)
    ctx2d = ctx.astype(jnp.bfloat16).transpose(1, 0, 2).reshape(tq, H * hd)
    attn = jnp.dot(ctx2d, ow_ref[...], preferred_element_type=jnp.float32) + o_b

    x1 = xt + attn                                                     # residual 1

    h2 = layernorm(x1, ln2_w, ln2_b).astype(jnp.bfloat16)
    m = jnp.dot(h2, fc1w_ref[...], preferred_element_type=jnp.float32) + fc1_b
    # TODO(synk): if post-fix profiling shows VPU/EUP as the binding slot on
    # v6e/v7x, do the softmax exp/normalize and this sigmoid in bf16.
    m = m * jax.nn.sigmoid(1.702 * m)                                  # quick_gelu
    m = jnp.dot(m.astype(jnp.bfloat16), fc2w_ref[...],
                preferred_element_type=jnp.float32) + fc2_b

    out_ref[0] = (x1 + m).astype(out_ref.dtype)                        # residual 2


# ----------------------------- Python wrappers -----------------------------

def prepare_layer_params(p):
    """Cast matmul weights to bf16 MXU operands; keep LN params / biases f32."""
    out = dict(p)
    for k in ("q_w", "k_w", "v_w", "o_w", "fc1_w", "fc2_w"):
        out[k] = p[k].astype(jnp.bfloat16)
    return out


def _choose_tiling(seq_len, tq=None):
    """Pick a sublane-aligned query tile and the padded sequence length.

    For the real Kosmos-2 vision shape (S=257) this gives tq=128, s_pad=384:
    lane-dense (H, 128, 384) logits and a 3-step query pipeline.
    TODO(synk): sweep tq=192/256 on v6e/v7x (256-wide MXU) if VMEM allows;
    keep tq=128 on v5e (128-wide MXU).
    """
    if tq is None:
        tq = 128 if seq_len >= 128 else int(pl.next_power_of_2(max(seq_len, 8)))
    tq = ((int(tq) + 7) // 8) * 8
    s_pad = ((seq_len + tq - 1) // tq) * tq
    return tq, s_pad


def _vmem_limit_bytes():
    # Leave ~8 MiB headroom below physical VMEM for compiler internal scratch
    # (matters on v7x where physical VMEM is only 64 MiB).
    cap = 128 * 1024 * 1024
    try:
        cap = int(getattr(pltpu.get_tpu_info(), "vmem_capacity_bytes", cap))
    except Exception:
        pass
    return max(32 * 1024 * 1024, min(cap - 8 * 1024 * 1024, 112 * 1024 * 1024))


def encoder_layer_pallas(x, p, mask=None, *, num_heads, eps, tq, s_valid,
                         approx_softmax=True):
    """One Kosmos2VisionEncoderLayer on (B, s_pad, D) activations.

    `x` is already padded to a multiple of `tq` along S; rows >= s_valid are
    padding (masked out as attention keys; their outputs are discarded by the
    caller).
    """
    B, s_pad, D = x.shape
    assert s_pad % tq == 0, "padded sequence must be a multiple of the query tile"
    head_dim = D // num_heads
    scale = head_dim ** -0.5
    inter = p["fc1_w"].shape[1]
    num_q_tiles = s_pad // tq

    kernel = functools.partial(
        _encoder_layer_kernel, num_heads=num_heads, head_dim=head_dim,
        eps=eps, scale=scale, has_mask=mask is not None,
        tq=tq, s_pad=s_pad, s_valid=s_valid, approx_softmax=approx_softmax)

    def call(single_buffer_weights):
        def _const_spec(shape):
            zeros = (0,) * len(shape)
            if single_buffer_weights:
                # Constant-index blocks are fetched once; single-buffer them so
                # bf16 weights occupy 1x (not 2x) VMEM.
                return pl.BlockSpec(shape, lambda b, q: zeros,
                                    pipeline_mode=pl.Buffered(1))
            return pl.BlockSpec(shape, lambda b, q: zeros)

        in_specs = [pl.BlockSpec((1, s_pad, D), lambda b, q: (b, 0, 0))]
        args = [x]
        if mask is not None:
            in_specs.append(pl.BlockSpec((1, tq, s_pad), lambda b, q: (b, q, 0)))
            args.append(mask)

        in_specs += [
            _const_spec((1, D)), _const_spec((1, D)),            # ln1 w, b
            _const_spec((D, D)), _const_spec((1, D)),            # q
            _const_spec((D, D)), _const_spec((1, D)),            # k
            _const_spec((D, D)), _const_spec((1, D)),            # v
            _const_spec((D, D)), _const_spec((1, D)),            # out proj
            _const_spec((1, D)), _const_spec((1, D)),            # ln2 w, b
            _const_spec((D, inter)), _const_spec((1, inter)),    # fc1
            _const_spec((inter, D)), _const_spec((1, D)),        # fc2
        ]
        args2 = args + [p["ln1_w"], p["ln1_b"],
                        p["q_w"], p["q_b"], p["k_w"], p["k_b"],
                        p["v_w"], p["v_b"], p["o_w"], p["o_b"],
                        p["ln2_w"], p["ln2_b"],
                        p["fc1_w"], p["fc1_b"], p["fc2_w"], p["fc2_b"]]

        return pl.pallas_call(
            kernel,
            out_shape=jax.ShapeDtypeStruct((B, s_pad, D), x.dtype),
            grid=(B, num_q_tiles),
            in_specs=in_specs,
            out_specs=pl.BlockSpec((1, tq, D), lambda b, q: (b, q, 0)),
            scratch_shapes=[
                pltpu.VMEM((num_heads, head_dim, s_pad), jnp.bfloat16),  # K^T
                pltpu.VMEM((num_heads, s_pad, head_dim), jnp.bfloat16),  # V
                pltpu.VMEM((s_pad, D), jnp.bfloat16),                    # LN1 cache
            ],
            compiler_params=pltpu.CompilerParams(
                # TODO(synk): on v7x (2 TensorCores) hoist the LN1/K/V pass into
                # a small preceding pallas_call so the q axis has no scratch
                # carry and can be marked "parallel" (core-sharded at B=1).
                dimension_semantics=("parallel", "arbitrary"),
                vmem_limit_bytes=_vmem_limit_bytes()),
        )(*args2)

    global _SINGLE_BUFFER_WEIGHTS
    if _SINGLE_BUFFER_WEIGHTS:
        try:
            return call(True)
        except Exception:
            _SINGLE_BUFFER_WEIGHTS = False
    return call(False)


def kosmos2_vision_encoder_pallas(inputs_embeds, layer_params,
                                  attention_mask=None, causal_attention_mask=None,
                                  *, num_heads, eps, tq=None, approx_softmax=True):
    """Kosmos2VisionEncoder.forward (return_dict=False, output_attentions=False,
    output_hidden_states=False; dropout is inactive / eval mode)."""
    B, S, D = inputs_embeds.shape
    tq, s_pad = _choose_tiling(S, tq)

    # Optional additive masks (the vision encoder always passes None).  Accept
    # HF-style (B, 1, T, S) or (B, T, S), combine, pad to (B, s_pad, s_pad).
    mask = None
    if attention_mask is not None or causal_attention_mask is not None:
        def canon(m):
            m = jnp.asarray(m, jnp.float32)
            if m.ndim == 4:
                m = m[:, 0]
            return jnp.broadcast_to(m, (B, S, S))
        mask = jnp.zeros((B, S, S), jnp.float32)
        if causal_attention_mask is not None:
            mask = mask + canon(causal_attention_mask)
        if attention_mask is not None:
            mask = mask + canon(attention_mask)
        if s_pad != S:
            mask = jnp.pad(mask, ((0, 0), (0, s_pad - S), (0, s_pad - S)))

    h = inputs_embeds
    if s_pad != S:
        h = jnp.pad(h, ((0, 0), (0, s_pad - S), (0, 0)))

    # TODO(synk): cross-pallas_call weight prefetch (P10) — start layer L+1's
    # weight DMA inside layer L so small-batch v6e inference is not weight-DMA
    # bound (~24 MiB of bf16 weights per layer at D=1024, inter=4096).
    for p in layer_params:
        h = encoder_layer_pallas(h, p, mask, num_heads=num_heads, eps=eps,
                                 tq=tq, s_valid=S, approx_softmax=approx_softmax)
    if s_pad != S:
        h = h[:, :S, :]
    return h


# ----------------- pure-JAX reference (torch semantics) -----------------
# Mirrors the kernel's bf16 matmul operands / f32 accumulation so the
# comparison is tight; math is identical to the PyTorch module (eval mode).

def _layer_ref(x, mask, p, num_heads, eps):
    B, S, D = x.shape
    hd = D // num_heads
    scale = hd ** -0.5
    f32 = jnp.float32

    def ln(v, w, b):
        mu = jnp.mean(v, axis=-1, keepdims=True)
        var = jnp.mean((v - mu) ** 2, axis=-1, keepdims=True)
        return (v - mu) * jax.lax.rsqrt(var + eps) * w + b

    x = x.astype(f32)
    h = ln(x, p["ln1_w"][0], p["ln1_b"][0]).astype(jnp.bfloat16)
    q = jnp.dot(h, p["q_w"], preferred_element_type=f32) + p["q_b"][0]
    q = (q * scale).astype(jnp.bfloat16)
    k = (jnp.dot(h, p["k_w"], preferred_element_type=f32) + p["k_b"][0]).astype(jnp.bfloat16)
    v = (jnp.dot(h, p["v_w"], preferred_element_type=f32) + p["v_b"][0]).astype(jnp.bfloat16)
    q = q.reshape(B, S, num_heads, hd).transpose(0, 2, 1, 3)
    k = k.reshape(B, S, num_heads, hd).transpose(0, 2, 1, 3)
    v = v.reshape(B, S, num_heads, hd).transpose(0, 2, 1, 3)
    logits = jnp.einsum("bhqd,bhkd->bhqk", q, k, preferred_element_type=f32)
    if mask is not None:
        logits = logits + mask[:, None]
    probs = jax.nn.softmax(logits, axis=-1).astype(jnp.bfloat16)
    ctx = jnp.einsum("bhqk,bhkd->bhqd", probs, v, preferred_element_type=f32)
    ctx = ctx.astype(jnp.bfloat16).transpose(0, 2, 1, 3).reshape(B, S, D)
    attn = jnp.dot(ctx, p["o_w"], preferred_element_type=f32) + p["o_b"][0]
    x = x + attn

    h2 = ln(x, p["ln2_w"][0], p["ln2_b"][0]).astype(jnp.bfloat16)
    m = jnp.dot(h2, p["fc1_w"], preferred_element_type=f32) + p["fc1_b"][0]
    m = m * jax.nn.sigmoid(1.702 * m)
    m = jnp.dot(m.astype(jnp.bfloat16), p["fc2_w"], preferred_element_type=f32) + p["fc2_b"][0]
    return x + m


def encoder_ref(x, layer_params, mask, num_heads, eps):
    for p in layer_params:
        x = _layer_ref(x, mask, p, num_heads, eps)
    return x


# ----------------------------- main -----------------------------

if __name__ == "__main__":
    # Small synthetic config (Kosmos2VisionConfig-like): hidden_size=32,
    # num_attention_heads=4, intermediate_size=64, num_hidden_layers=2.
    # S=20 is deliberately NOT a multiple of the query tile so the pad+mask
    # path (needed for the real S=257 -> 384) is exercised: s_pad=24, three
    # query tiles per batch element, 4 padded (masked) key rows.
    B, S, D = 2, 20, 32
    NUM_HEADS, INTER, NUM_LAYERS = 4, 64, 2
    EPS = 1e-5
    TQ = 8

    key = jax.random.PRNGKey(0)

    def make_layer_params(k):
        ks = jax.random.split(k, 16)
        n = lambda kk, shape: (0.02 * jax.random.normal(kk, shape)).astype(jnp.float32)
        return {
            "ln1_w": (1.0 + 0.05 * jax.random.normal(ks[12], (1, D))).astype(jnp.float32),
            "ln1_b": (0.05 * jax.random.normal(ks[13], (1, D))).astype(jnp.float32),
            "q_w": n(ks[0], (D, D)), "q_b": n(ks[1], (1, D)),
            "k_w": n(ks[2], (D, D)), "k_b": n(ks[3], (1, D)),
            "v_w": n(ks[4], (D, D)), "v_b": n(ks[5], (1, D)),
            "o_w": n(ks[6], (D, D)), "o_b": n(ks[7], (1, D)),
            "ln2_w": (1.0 + 0.05 * jax.random.normal(ks[14], (1, D))).astype(jnp.float32),
            "ln2_b": (0.05 * jax.random.normal(ks[15], (1, D))).astype(jnp.float32),
            "fc1_w": n(ks[8], (D, INTER)), "fc1_b": n(ks[9], (1, INTER)),
            "fc2_w": n(ks[10], (INTER, D)), "fc2_b": n(ks[11], (1, D)),
        }

    key, *lkeys = jax.random.split(key, NUM_LAYERS + 1)
    layer_params = [prepare_layer_params(make_layer_params(k)) for k in lkeys]

    key, xk = jax.random.split(key)
    inputs_embeds = jax.random.normal(xk, (B, S, D), dtype=jnp.float32)

    # attention_mask / causal_attention_mask are always None for the vision encoder.
    out = kosmos2_vision_encoder_pallas(
        inputs_embeds, layer_params,
        attention_mask=None, causal_attention_mask=None,
        num_heads=NUM_HEADS, eps=EPS, tq=TQ)
    out = jax.block_until_ready(out)

    ref = encoder_ref(inputs_embeds, layer_params, None, NUM_HEADS, EPS)
    assert out.shape == (B, S, D)
    max_err = jnp.max(jnp.abs(out - ref))
    assert jnp.allclose(out, ref, rtol=5e-3, atol=5e-3), \
        f"mismatch vs reference (max abs err {max_err})"

    print("KERNEL_OK")
</pallas_src>

<mosaic_0001>
module attributes {stable_mosaic.version = 11 : i64} {
  func.func @_encoder_layer_kernel(%arg0: i32, %arg1: i32, %arg2: memref<1x24x32xf32, #tpu.memory_space<vmem>>, %arg3: memref<1x32xf32, #tpu.memory_space<vmem>>, %arg4: memref<1x32xf32, #tpu.memory_space<vmem>>, %arg5: memref<32x32xbf16, #tpu.memory_space<vmem>>, %arg6: memref<1x32xf32, #tpu.memory_space<vmem>>, %arg7: memref<32x32xbf16, #tpu.memory_space<vmem>>, %arg8: memref<1x32xf32, #tpu.memory_space<vmem>>, %arg9: memref<32x32xbf16, #tpu.memory_space<vmem>>, %arg10: memref<1x32xf32, #tpu.memory_space<vmem>>, %arg11: memref<32x32xbf16, #tpu.memory_space<vmem>>, %arg12: memref<1x32xf32, #tpu.memory_space<vmem>>, %arg13: memref<1x32xf32, #tpu.memory_space<vmem>>, %arg14: memref<1x32xf32, #tpu.memory_space<vmem>>, %arg15: memref<32x64xbf16, #tpu.memory_space<vmem>>, %arg16: memref<1x64xf32, #tpu.memory_space<vmem>>, %arg17: memref<64x32xbf16, #tpu.memory_space<vmem>>, %arg18: memref<1x32xf32, #tpu.memory_space<vmem>>, %arg19: memref<1x8x32xf32, #tpu.memory_space<vmem>>, %arg20: memref<4x8x24xbf16, #tpu.memory_space<vmem>>, %arg21: memref<4x24x8xbf16, #tpu.memory_space<vmem>>, %arg22: memref<24x32xbf16, #tpu.memory_space<vmem>>) attributes {dimension_semantics = [#tpu.dimension_semantics<parallel>, #tpu.dimension_semantics<arbitrary>], iteration_bounds = array<i64: 2, 3>, scalar_prefetch = 0 : i64, scratch_operands = 3 : i64, tpu.core_type = #tpu.core_type<tc>, window_params = [{transform_indices = @transform_0, window_bounds = array<i64: 1, 24, 32>}, {pipeline_mode = #tpu.pipeline_mode<synchronous>, transform_indices = @transform_1, window_bounds = array<i64: 1, 32>}, {pipeline_mode = #tpu.pipeline_mode<synchronous>, transform_indices = @transform_2, window_bounds = array<i64: 1, 32>}, {pipeline_mode = #tpu.pipeline_mode<synchronous>, transform_indices = @transform_3, window_bounds = array<i64: 32, 32>}, {pipeline_mode = #tpu.pipeline_mode<synchronous>, transform_indices = @transform_4, window_bounds = array<i64: 1, 32>}, {pipeline_mode = #tpu.pipeline_mode<synchronous>, transform_indices = @transform_5, window_bounds = array<i64: 32, 32>}, {pipeline_mode = #tpu.pipeline_mode<synchronous>, transform_indices = @transform_6, window_bounds = array<i64: 1, 32>}, {pipeline_mode = #tpu.pipeline_mode<synchronous>, transform_indices = @transform_7, window_bounds = array<i64: 32, 32>}, {pipeline_mode = #tpu.pipeline_mode<synchronous>, transform_indices = @transform_8, window_bounds = array<i64: 1, 32>}, {pipeline_mode = #tpu.pipeline_mode<synchronous>, transform_indices = @transform_9, window_bounds = array<i64: 32, 32>}, {pipeline_mode = #tpu.pipeline_mode<synchronous>, transform_indices = @transform_10, window_bounds = array<i64: 1, 32>}, {pipeline_mode = #tpu.pipeline_mode<synchronous>, transform_indices = @transform_11, window_bounds = array<i64: 1, 32>}, {pipeline_mode = #tpu.pipeline_mode<synchronous>, transform_indices = @transform_12, window_bounds = array<i64: 1, 32>}, {pipeline_mode = #tpu.pipeline_mode<synchronous>, transform_indices = @transform_13, window_bounds = array<i64: 32, 64>}, {pipeline_mode = #tpu.pipeline_mode<synchronous>, transform_indices = @transform_14, window_bounds = array<i64: 1, 64>}, {pipeline_mode = #tpu.pipeline_mode<synchronous>, transform_indices = @transform_15, window_bounds = array<i64: 64, 32>}, {pipeline_mode = #tpu.pipeline_mode<synchronous>, transform_indices = @transform_16, window_bounds = array<i64: 1, 32>}, {transform_indices = @transform_17, window_bounds = array<i64: 1, 8, 32>}]} {
    %c0 = arith.constant 0 : index
    %c0_0 = arith.constant 0 : index
    %0 = vector.load %arg3[%c0, %c0_0] : memref<1x32xf32, #tpu.memory_space<vmem>>, vector<1x32xf32>
    %1 = vector.shape_cast %0 : vector<1x32xf32> to vector<32xf32>
    %c0_1 = arith.constant 0 : index
    %c0_2 = arith.constant 0 : index
    %2 = vector.load %arg4[%c0_1, %c0_2] : memref<1x32xf32, #tpu.memory_space<vmem>>, vector<1x32xf32>
    %3 = vector.shape_cast %2 : vector<1x32xf32> to vector<32xf32>
    %c0_3 = arith.constant 0 : index
    %c0_4 = arith.constant 0 : index
    %4 = vector.load %arg13[%c0_3, %c0_4] : memref<1x32xf32, #tpu.memory_space<vmem>>, vector<1x32xf32>
    %5 = vector.shape_cast %4 : vector<1x32xf32> to vector<32xf32>
    %c0_5 = arith.constant 0 : index
    %c0_6 = arith.constant 0 : index
    %6 = vector.load %arg14[%c0_5, %c0_6] : memref<1x32xf32, #tpu.memory_space<vmem>>, vector<1x32xf32>
    %7 = vector.shape_cast %6 : vector<1x32xf32> to vector<32xf32>
    %c0_7 = arith.constant 0 : index
    %c0_8 = arith.constant 0 : index
    %8 = vector.load %arg6[%c0_7, %c0_8] : memref<1x32xf32, #tpu.memory_space<vmem>>, vector<1x32xf32>
    %9 = vector.shape_cast %8 : vector<1x32xf32> to vector<32xf32>
    %c0_9 = arith.constant 0 : index
    %c0_10 = arith.constant 0 : index
    %10 = vector.load %arg12[%c0_9, %c0_10] : memref<1x32xf32, #tpu.memory_space<vmem>>, vector<1x32xf32>
    %11 = vector.shape_cast %10 : vector<1x32xf32> to vector<32xf32>
    %c0_11 = arith.constant 0 : index
    %c0_12 = arith.constant 0 : index
    %12 = vector.load %arg16[%c0_11, %c0_12] : memref<1x64xf32, #tpu.memory_space<vmem>>, vector<1x64xf32>
    %13 = vector.shape_cast %12 : vector<1x64xf32> to vector<64xf32>
    %c0_13 = arith.constant 0 : index
    %c0_14 = arith.constant 0 : index
    %14 = vector.load %arg18[%c0_13, %c0_14] : memref<1x32xf32, #tpu.memory_space<vmem>>, vector<1x32xf32>
    %15 = vector.shape_cast %14 : vector<1x32xf32> to vector<32xf32>
    %c0_i32 = arith.constant 0 : i32
    %16 = arith.cmpi eq, %arg1, %c0_i32 : i32
    %17 = arith.extui %16 : i1 to i32
    %c0_i32_15 = arith.constant 0 : i32
    %18 = arith.cmpi ne, %17, %c0_i32_15 : i32
    scf.if %18 {
      %c0_52 = arith.constant 0 : index
      %c0_53 = arith.constant 0 : index
      %c0_54 = arith.constant 0 : index
      %113 = vector.load %arg2[%c0_52, %c0_53, %c0_54] : memref<1x24x32xf32, #tpu.memory_space<vmem>>, vector<1x24x32xf32>
      %114 = vector.shape_cast %113 : vector<1x24x32xf32> to vector<24x32xf32>
      %cst_55 = arith.constant dense<0.000000e+00> : vector<24xf32>
      %115 = vector.multi_reduction <add>, %114, %cst_55 [1] : vector<24x32xf32> to vector<24xf32>
      %116 = vector.shape_cast %115 : vector<24xf32> to vector<24x1xf32>
      %cst_56 = arith.constant 3.200000e+01 : f32
      %117 = vector.broadcast %cst_56 : f32 to vector<24x1xf32>
      %118 = arith.divf %116, %117 : vector<24x1xf32>
      %119 = vector.broadcast %118 : vector<24x1xf32> to vector<24x32xf32>
      %120 = arith.subf %114, %119 : vector<24x32xf32>
      %121 = arith.mulf %120, %120 : vector<24x32xf32>
      %cst_57 = arith.constant dense<0.000000e+00> : vector<24xf32>
      %122 = vector.multi_reduction <add>, %121, %cst_57 [1] : vector<24x32xf32> to vector<24xf32>
      %123 = vector.shape_cast %122 : vector<24xf32> to vector<24x1xf32>
      %cst_58 = arith.constant 3.200000e+01 : f32
      %124 = vector.broadcast %cst_58 : f32 to vector<24x1xf32>
      %125 = arith.divf %123, %124 : vector<24x1xf32>
      %cst_59 = arith.constant 9.99999974E-6 : f32
      %126 = vector.broadcast %cst_59 : f32 to vector<24x1xf32>
      %127 = arith.addf %125, %126 : vector<24x1xf32>
      %128 = math.rsqrt %127 : vector<24x1xf32>
      %129 = vector.broadcast %128 : vector<24x1xf32> to vector<24x32xf32>
      %130 = arith.mulf %120, %129 : vector<24x32xf32>
      %131 = vector.shape_cast %1 : vector<32xf32> to vector<1x32xf32>
      %132 = vector.broadcast %131 : vector<1x32xf32> to vector<24x32xf32>
      %133 = arith.mulf %130, %132 : vector<24x32xf32>
      %134 = vector.shape_cast %3 : vector<32xf32> to vector<1x32xf32>
      %135 = vector.broadcast %134 : vector<1x32xf32> to vector<24x32xf32>
      %136 = arith.addf %133, %135 : vector<24x32xf32>
      %137 = arith.truncf %136 : vector<24x32xf32> to vector<24x32xbf16>
      %c0_60 = arith.constant 0 : index
      %c0_61 = arith.constant 0 : index
      %138 = vector.load %arg22[%c0_60, %c0_61] : memref<24x32xbf16, #tpu.memory_space<vmem>>, vector<24x32xbf16>
      tpu.vector_store %arg22[%c0_60, %c0_61], %137 {strides = array<i32>} : memref<24x32xbf16, #tpu.memory_space<vmem>>, vector<24x32xbf16>,
      %c0_62 = arith.constant 0 : index
      %c0_63 = arith.constant 0 : index
      %139 = vector.load %arg7[%c0_62, %c0_63] : memref<32x32xbf16, #tpu.memory_space<vmem>>, vector<32x32xbf16>
      %cst_64 = arith.constant dense<0.000000e+00> : vector<24x32xf32>
      %140 = tpu.matmul %137, %139, %cst_64 {dimension_numbers = #tpu.dot_dimension_numbers<[1], [0], [0], [1], [0, 0, 1, 1], [], []>} : vector<24x32xbf16>, vector<32x32xbf16>, vector<24x32xf32> -> vector<24x32xf32>
      %c0_65 = arith.constant 0 : index
      %c0_66 = arith.constant 0 : index
      %141 = vector.load %arg8[%c0_65, %c0_66] : memref<1x32xf32, #tpu.memory_space<vmem>>, vector<1x32xf32>
      %142 = vector.shape_cast %141 : vector<1x32xf32> to vector<32xf32>
      %143 = vector.shape_cast %142 : vector<32xf32> to vector<1x32xf32>
      %144 = vector.broadcast %143 : vector<1x32xf32> to vector<24x32xf32>
      %145 = arith.addf %140, %144 : vector<24x32xf32>
      %c0_67 = arith.constant 0 : index
      %c0_68 = arith.constant 0 : index
      %146 = vector.load %arg9[%c0_67, %c0_68] : memref<32x32xbf16, #tpu.memory_space<vmem>>, vector<32x32xbf16>
      %cst_69 = arith.constant dense<0.000000e+00> : vector<24x32xf32>
      %147 = tpu.matmul %137, %146, %cst_69 {dimension_numbers = #tpu.dot_dimension_numbers<[1], [0], [0], [1], [0, 0, 1, 1], [], []>} : vector<24x32xbf16>, vector<32x32xbf16>, vector<24x32xf32> -> vector<24x32xf32>
      %c0_70 = arith.constant 0 : index
      %c0_71 = arith.constant 0 : index
      %148 = vector.load %arg10[%c0_70, %c0_71] : memref<1x32xf32, #tpu.memory_space<vmem>>, vector<1x32xf32>
      %149 = vector.shape_cast %148 : vector<1x32xf32> to vector<32xf32>
      %150 = vector.shape_cast %149 : vector<32xf32> to vector<1x32xf32>
      %151 = vector.broadcast %150 : vector<1x32xf32> to vector<24x32xf32>
      %152 = arith.addf %147, %151 : vector<24x32xf32>
      %153 = arith.truncf %145 : vector<24x32xf32> to vector<24x32xbf16>
      %154 = tpu.transpose %153, [1, 0] : vector<24x32xbf16> -> vector<32x24xbf16>
      %155 = vector.shape_cast %154 : vector<32x24xbf16> to vector<4x8x24xbf16>
      %c0_72 = arith.constant 0 : index
      %c0_73 = arith.constant 0 : index
      %c0_74 = arith.constant 0 : index
      %156 = vector.load %arg20[%c0_72, %c0_73, %c0_74] : memref<4x8x24xbf16, #tpu.memory_space<vmem>>, vector<4x8x24xbf16>
      tpu.vector_store %arg20[%c0_72, %c0_73, %c0_74], %155 {strides = array<i32>} : memref<4x8x24xbf16, #tpu.memory_space<vmem>>, vector<4x8x24xbf16>,
      %157 = arith.truncf %152 : vector<24x32xf32> to vector<24x32xbf16>
      %158 = vector.shape_cast %157 : vector<24x32xbf16> to vector<24x4x8xbf16>
      %159 = tpu.transpose %158, [1, 0, 2] : vector<24x4x8xbf16> -> vector<4x24x8xbf16>
      %c0_75 = arith.constant 0 : index
      %c0_76 = arith.constant 0 : index
      %c0_77 = arith.constant 0 : index
      %160 = vector.load %arg21[%c0_75, %c0_76, %c0_77] : memref<4x24x8xbf16, #tpu.memory_space<vmem>>, vector<4x24x8xbf16>
      tpu.vector_store %arg21[%c0_75, %c0_76, %c0_77], %159 {strides = array<i32>} : memref<4x24x8xbf16, #tpu.memory_space<vmem>>, vector<4x24x8xbf16>,
    } else {
    }
    %c8_i32 = arith.constant 8 : i32
    %19 = arith.muli %arg1, %c8_i32 : i32
    %20 = tpu.assume_multiple %19, 8 : i32
    %c0_16 = arith.constant 0 : index
    %21 = arith.index_cast %20 : i32 to index
    %c0_17 = arith.constant 0 : index
    %22 = vector.load %arg2[%c0_16, %21, %c0_17] : memref<1x24x32xf32, #tpu.memory_space<vmem>>, vector<1x8x32xf32>
    %23 = vector.shape_cast %22 : vector<1x8x32xf32> to vector<8x32xf32>
    %24 = arith.index_cast %20 : i32 to index
    %c0_18 = arith.constant 0 : index
    %25 = vector.load %arg22[%24, %c0_18] : memref<24x32xbf16, #tpu.memory_space<vmem>>, vector<8x32xbf16>
    %c0_19 = arith.constant 0 : index
    %c0_20 = arith.constant 0 : index
    %26 = vector.load %arg5[%c0_19, %c0_20] : memref<32x32xbf16, #tpu.memory_space<vmem>>, vector<32x32xbf16>
    %cst = arith.constant dense<0.000000e+00> : vector<8x32xf32>
    %27 = tpu.matmul %25, %26, %cst {dimension_numbers = #tpu.dot_dimension_numbers<[1], [0], [0], [1], [0, 0, 1, 1], [], []>} : vector<8x32xbf16>, vector<32x32xbf16>, vector<8x32xf32> -> vector<8x32xf32>
    %28 = vector.shape_cast %9 : vector<32xf32> to vector<1x32xf32>
    %29 = vector.broadcast %28 : vector<1x32xf32> to vector<8x32xf32>
    %30 = arith.addf %27, %29 : vector<8x32xf32>
    %cst_21 = arith.constant 0.353553385 : f32
    %31 = vector.broadcast %cst_21 : f32 to vector<8x32xf32>
    %32 = arith.mulf %30, %31 : vector<8x32xf32>
    %33 = arith.truncf %32 : vector<8x32xf32> to vector<8x32xbf16>
    %34 = vector.shape_cast %33 : vector<8x32xbf16> to vector<8x4x8xbf16>
    %35 = tpu.transpose %34, [1, 0, 2] : vector<8x4x8xbf16> -> vector<4x8x8xbf16>
    %c0_22 = arith.constant 0 : index
    %c0_23 = arith.constant 0 : index
    %c0_24 = arith.constant 0 : index
    %36 = vector.load %arg20[%c0_22, %c0_23, %c0_24] : memref<4x8x24xbf16, #tpu.memory_space<vmem>>, vector<4x8x24xbf16>
    "tpu.trace_start"() <{level = 10 : i32, message = "hqd,hds->hqs"}> : () -> ()
    %cst_25 = arith.constant dense<0.000000e+00> : vector<4x8x24xf32>
    %37 = tpu.matmul %35, %36, %cst_25 {dimension_numbers = #tpu.dot_dimension_numbers<[2], [1], [1], [2], [0, 0, 0, 1, 1, 2], [0], [0]>} : vector<4x8x8xbf16>, vector<4x8x24xbf16>, vector<4x8x24xf32> -> vector<4x8x24xf32>
    "tpu.trace_stop"() : () -> ()
    %38 = tpu.iota {dimensions = array<i32: 2>} : vector<1x1x24xi32>
    %c20_i32 = arith.constant 20 : i32
    %39 = vector.broadcast %c20_i32 : i32 to vector<1x1x24xi32>
    %40 = arith.cmpi slt, %38, %39 : vector<1x1x24xi32>
    %cst_26 = arith.constant -1.000000e+30 : f32
    %41 = vector.shape_cast %40 : vector<1x1x24xi1> to vector<1x1x24xi1>
    %42 = vector.broadcast %41 : vector<1x1x24xi1> to vector<4x8x24xi1>
    %43 = vector.broadcast %cst_26 : f32 to vector<4x8x24xf32>
    %44 = arith.select %42, %37, %43 : vector<4x8x24xi1>, vector<4x8x24xf32>
    %cst_27 = arith.constant dense<0xFF800000> : vector<4x8xf32>
    %45 = vector.multi_reduction <maximumf>, %44, %cst_27 [2] : vector<4x8x24xf32> to vector<4x8xf32>
    %46 = vector.shape_cast %45 : vector<4x8xf32> to vector<4x8x1xf32>
    %47 = vector.broadcast %46 : vector<4x8x1xf32> to vector<4x8x24xf32>
    %48 = arith.subf %44, %47 : vector<4x8x24xf32>
    %49 = math.exp %48 : vector<4x8x24xf32>
    %cst_28 = arith.constant dense<0.000000e+00> : vector<4x8xf32>
    %50 = vector.multi_reduction <add>, %49, %cst_28 [2] : vector<4x8x24xf32> to vector<4x8xf32>
    %51 = vector.shape_cast %50 : vector<4x8xf32> to vector<4x8x1xf32>
    %52 = tpu.reciprocal %51 {approx = true} : vector<4x8x1xf32> -> vector<4x8x1xf32>
    %53 = vector.broadcast %52 : vector<4x8x1xf32> to vector<4x8x24xf32>
    %54 = arith.mulf %49, %53 : vector<4x8x24xf32>
    %55 = arith.truncf %54 : vector<4x8x24xf32> to vector<4x8x24xbf16>
    %c0_29 = arith.constant 0 : index
    %c0_30 = arith.constant 0 : index
    %c0_31 = arith.constant 0 : index
    %56 = vector.load %arg21[%c0_29, %c0_30, %c0_31] : memref<4x24x8xbf16, #tpu.memory_space<vmem>>, vector<4x24x8xbf16>
    "tpu.trace_start"() <{level = 10 : i32, message = "hqk,hkd->hqd"}> : () -> ()
    %cst_32 = arith.constant dense<0.000000e+00> : vector<4x8x8xf32>
    %57 = tpu.matmul %55, %56, %cst_32 {dimension_numbers = #tpu.dot_dimension_numbers<[2], [1], [1], [2], [0, 0, 0, 1, 1, 2], [0], [0]>} : vector<4x8x24xbf16>, vector<4x24x8xbf16>, vector<4x8x8xf32> -> vector<4x8x8xf32>
    "tpu.trace_stop"() : () -> ()
    %58 = arith.truncf %57 : vector<4x8x8xf32> to vector<4x8x8xbf16>
    %59 = tpu.transpose %58, [1, 0, 2] : vector<4x8x8xbf16> -> vector<8x4x8xbf16>
    %60 = vector.shape_cast %59 : vector<8x4x8xbf16> to vector<8x32xbf16>
    %c0_33 = arith.constant 0 : index
    %c0_34 = arith.constant 0 : index
    %61 = vector.load %arg11[%c0_33, %c0_34] : memref<32x32xbf16, #tpu.memory_space<vmem>>, vector<32x32xbf16>
    %cst_35 = arith.constant dense<0.000000e+00> : vector<8x32xf32>
    %62 = tpu.matmul %60, %61, %cst_35 {dimension_numbers = #tpu.dot_dimension_numbers<[1], [0], [0], [1], [0, 0, 1, 1], [], []>} : vector<8x32xbf16>, vector<32x32xbf16>, vector<8x32xf32> -> vector<8x32xf32>
    %63 = vector.shape_cast %11 : vector<32xf32> to vector<1x32xf32>
    %64 = vector.broadcast %63 : vector<1x32xf32> to vector<8x32xf32>
    %65 = arith.addf %62, %64 : vector<8x32xf32>
    %66 = arith.addf %23, %65 : vector<8x32xf32>
    %cst_36 = arith.constant dense<0.000000e+00> : vector<8xf32>
    %67 = vector.multi_reduction <add>, %66, %cst_36 [1] : vector<8x32xf32> to vector<8xf32>
    %68 = vector.shape_cast %67 : vector<8xf32> to vector<8x1xf32>
    %cst_37 = arith.constant 3.200000e+01 : f32
    %69 = vector.broadcast %cst_37 : f32 to vector<8x1xf32>
    %70 = arith.divf %68, %69 : vector<8x1xf32>
    %71 = vector.broadcast %70 : vector<8x1xf32> to vector<8x32xf32>
    %72 = arith.subf %66, %71 : vector<8x32xf32>
    %73 = arith.mulf %72, %72 : vector<8x32xf32>
    %cst_38 = arith.constant dense<0.000000e+00> : vector<8xf32>
    %74 = vector.multi_reduction <add>, %73, %cst_38 [1] : vector<8x32xf32> to vector<8xf32>
    %75 = vector.shape_cast %74 : vector<8xf32> to vector<8x1xf32>
    %cst_39 = arith.constant 3.200000e+01 : f32
    %76 = vector.broadcast %cst_39 : f32 to vector<8x1xf32>
    %77 = arith.divf %75, %76 : vector<8x1xf32>
    %cst_40 = arith.constant 9.99999974E-6 : f32
    %78 = vector.broadcast %cst_40 : f32 to vector<8x1xf32>
    %79 = arith.addf %77, %78 : vector<8x1xf32>
    %80 = math.rsqrt %79 : vector<8x1xf32>
    %81 = vector.broadcast %80 : vector<8x1xf32> to vector<8x32xf32>
    %82 = arith.mulf %72, %81 : vector<8x32xf32>
    %83 = vector.shape_cast %5 : vector<32xf32> to vector<1x32xf32>
    %84 = vector.broadcast %83 : vector<1x32xf32> to vector<8x32xf32>
    %85 = arith.mulf %82, %84 : vector<8x32xf32>
    %86 = vector.shape_cast %7 : vector<32xf32> to vector<1x32xf32>
    %87 = vector.broadcast %86 : vector<1x32xf32> to vector<8x32xf32>
    %88 = arith.addf %85, %87 : vector<8x32xf32>
    %89 = arith.truncf %88 : vector<8x32xf32> to vector<8x32xbf16>
    %c0_41 = arith.constant 0 : index
    %c0_42 = arith.constant 0 : index
    %90 = vector.load %arg15[%c0_41, %c0_42] : memref<32x64xbf16, #tpu.memory_space<vmem>>, vector<32x64xbf16>
    %cst_43 = arith.constant dense<0.000000e+00> : vector<8x64xf32>
    %91 = tpu.matmul %89, %90, %cst_43 {dimension_numbers = #tpu.dot_dimension_numbers<[1], [0], [0], [1], [0, 0, 1, 1], [], []>} : vector<8x32xbf16>, vector<32x64xbf16>, vector<8x64xf32> -> vector<8x64xf32>
    %92 = vector.shape_cast %13 : vector<64xf32> to vector<1x64xf32>
    %93 = vector.broadcast %92 : vector<1x64xf32> to vector<8x64xf32>
    %94 = arith.addf %91, %93 : vector<8x64xf32>
    %cst_44 = arith.constant 1.702000e+00 : f32
    %95 = vector.broadcast %cst_44 : f32 to vector<8x64xf32>
    %96 = arith.mulf %95, %94 : vector<8x64xf32>
    %97 = arith.negf %96 : vector<8x64xf32>
    %98 = math.exp %97 : vector<8x64xf32>
    %cst_45 = arith.constant 1.000000e+00 : f32
    %99 = vector.broadcast %cst_45 : f32 to vector<8x64xf32>
    %100 = arith.addf %99, %98 : vector<8x64xf32>
    %101 = arith.divf %99, %100 : vector<8x64xf32>
    %102 = arith.mulf %94, %101 : vector<8x64xf32>
    %103 = arith.truncf %102 : vector<8x64xf32> to vector<8x64xbf16>
    %c0_46 = arith.constant 0 : index
    %c0_47 = arith.constant 0 : index
    %104 = vector.load %arg17[%c0_46, %c0_47] : memref<64x32xbf16, #tpu.memory_space<vmem>>, vector<64x32xbf16>
    %cst_48 = arith.constant dense<0.000000e+00> : vector<8x32xf32>
    %105 = tpu.matmul %103, %104, %cst_48 {dimension_numbers = #tpu.dot_dimension_numbers<[1], [0], [0], [1], [0, 0, 1, 1], [], []>} : vector<8x64xbf16>, vector<64x32xbf16>, vector<8x32xf32> -> vector<8x32xf32>
    %106 = vector.shape_cast %15 : vector<32xf32> to vector<1x32xf32>
    %107 = vector.broadcast %106 : vector<1x32xf32> to vector<8x32xf32>
    %108 = arith.addf %105, %107 : vector<8x32xf32>
    %109 = arith.addf %66, %108 : vector<8x32xf32>
    %c0_49 = arith.constant 0 : index
    %c0_50 = arith.constant 0 : index
    %c0_51 = arith.constant 0 : index
    %110 = vector.load %arg19[%c0_49, %c0_50, %c0_51] : memref<1x8x32xf32, #tpu.memory_space<vmem>>, vector<1x8x32xf32>
    %111 = vector.shape_cast %110 : vector<1x8x32xf32> to vector<8x32xf32>
    %112 = vector.shape_cast %109 : vector<8x32xf32> to vector<1x8x32xf32>
    tpu.vector_store %arg19[%c0_49, %c0_50, %c0_51], %112 {strides = array<i32>} : memref<1x8x32xf32, #tpu.memory_space<vmem>>, vector<1x8x32xf32>,
    return
  }
  func.func @transform_0(%arg0: i32, %arg1: i32) -> (i32, i32, i32) {
    %c0_i32 = arith.constant 0 : i32
    %c0_i32_0 = arith.constant 0 : i32
    %c0_i32_1 = arith.constant 0 : i32
    return %arg0, %c0_i32, %c0_i32_0 : i32, i32, i32
  }
  func.func @transform_1(%arg0: i32, %arg1: i32) -> (i32, i32) {
    %c0_i32 = arith.constant 0 : i32
    %c0_i32_0 = arith.constant 0 : i32
    %c0_i32_1 = arith.constant 0 : i32
    return %c0_i32, %c0_i32_0 : i32, i32
  }
  func.func @transform_2(%arg0: i32, %arg1: i32) -> (i32, i32) {
    %c0_i32 = arith.constant 0 : i32
    %c0_i32_0 = arith.constant 0 : i32
    %c0_i32_1 = arith.constant 0 : i32
    return %c0_i32, %c0_i32_0 : i32, i32
  }
  func.func @transform_3(%arg0: i32, %arg1: i32) -> (i32, i32) {
    %c0_i32 = arith.constant 0 : i32
    %c0_i32_0 = arith.constant 0 : i32
    %c0_i32_1 = arith.constant 0 : i32
    return %c0_i32, %c0_i32_0 : i32, i32
  }
  func.func @transform_4(%arg0: i32, %arg1: i32) -> (i32, i32) {
    %c0_i32 = arith.constant 0 : i32
    %c0_i32_0 = arith.constant 0 : i32
    %c0_i32_1 = arith.constant 0 : i32
    return %c0_i32, %c0_i32_0 : i32, i32
  }
  func.func @transform_5(%arg0: i32, %arg1: i32) -> (i32, i32) {
    %c0_i32 = arith.constant 0 : i32
    %c0_i32_0 = arith.constant 0 : i32
    %c0_i32_1 = arith.constant 0 : i32
    return %c0_i32, %c0_i32_0 : i32, i32
  }
  func.func @transform_6(%arg0: i32, %arg1: i32) -> (i32, i32) {
    %c0_i32 = arith.constant 0 : i32
    %c0_i32_0 = arith.constant 0 : i32
    %c0_i32_1 = arith.constant 0 : i32
    return %c0_i32, %c0_i32_0 : i32, i32
  }
  func.func @transform_7(%arg0: i32, %arg1: i32) -> (i32, i32) {
    %c0_i32 = arith.constant 0 : i32
    %c0_i32_0 = arith.constant 0 : i32
    %c0_i32_1 = arith.constant 0 : i32
    return %c0_i32, %c0_i32_0 : i32, i32
  }
  func.func @transform_8(%arg0: i32, %arg1: i32) -> (i32, i32) {
    %c0_i32 = arith.constant 0 : i32
    %c0_i32_0 = arith.constant 0 : i32
    %c0_i32_1 = arith.constant 0 : i32
    return %c0_i32, %c0_i32_0 : i32, i32
  }
  func.func @transform_9(%arg0: i32, %arg1: i32) -> (i32, i32) {
    %c0_i32 = arith.constant 0 : i32
    %c0_i32_0 = arith.constant 0 : i32
    %c0_i32_1 = arith.constant 0 : i32
    return %c0_i32, %c0_i32_0 : i32, i32
  }
  func.func @transform_10(%arg0: i32, %arg1: i32) -> (i32, i32) {
    %c0_i32 = arith.constant 0 : i32
    %c0_i32_0 = arith.constant 0 : i32
    %c0_i32_1 = arith.constant 0 : i32
    return %c0_i32, %c0_i32_0 : i32, i32
  }
  func.func @transform_11(%arg0: i32, %arg1: i32) -> (i32, i32) {
    %c0_i32 = arith.constant 0 : i32
    %c0_i32_0 = arith.constant 0 : i32
    %c0_i32_1 = arith.constant 0 : i32
    return %c0_i32, %c0_i32_0 : i32, i32
  }
  func.func @transform_12(%arg0: i32, %arg1: i32) -> (i32, i32) {
    %c0_i32 = arith.constant 0 : i32
    %c0_i32_0 = arith.constant 0 : i32
    %c0_i32_1 = arith.constant 0 : i32
    return %c0_i32, %c0_i32_0 : i32, i32
  }
  func.func @transform_13(%arg0: i32, %arg1: i32) -> (i32, i32) {
    %c0_i32 = arith.constant 0 : i32
    %c0_i32_0 = arith.constant 0 : i32
    %c0_i32_1 = arith.constant 0 : i32
    return %c0_i32, %c0_i32_0 : i32, i32
  }
  func.func @transform_14(%arg0: i32, %arg1: i32) -> (i32, i32) {
    %c0_i32 = arith.constant 0 : i32
    %c0_i32_0 = arith.constant 0 : i32
    %c0_i32_1 = arith.constant 0 : i32
    return %c0_i32, %c0_i32_0 : i32, i32
  }
  func.func @transform_15(%arg0: i32, %arg1: i32) -> (i32, i32) {
    %c0_i32 = arith.constant 0 : i32
    %c0_i32_0 = arith.constant 0 : i32
    %c0_i32_1 = arith.constant 0 : i32
    return %c0_i32, %c0_i32_0 : i32, i32
  }
  func.func @transform_16(%arg0: i32, %arg1: i32) -> (i32, i32) {
    %c0_i32 = arith.constant 0 : i32
    %c0_i32_0 = arith.constant 0 : i32
    %c0_i32_1 = arith.constant 0 : i32
    return %c0_i32, %c0_i32_0 : i32, i32
  }
  func.func @transform_17(%arg0: i32, %arg1: i32) -> (i32, i32, i32) {
    %c0_i32 = arith.constant 0 : i32
    %c0_i32_0 = arith.constant 0 : i32
    return %arg0, %arg1, %c0_i32 : i32, i32, i32
  }
}

module attributes {stable_mosaic.version = 11 : i64} {
  func.func @_encoder_layer_kernel(%arg0: i32, %arg1: i32, %arg2: memref<1x24x32xf32, #tpu.memory_space<vmem>>, %arg3: memref<1x32xf32, #tpu.memory_space<vmem>>, %arg4: memref<1x32xf32, #tpu.memory_space<vmem>>, %arg5: memref<32x32xbf16, #tpu.memory_space<vmem>>, %arg6: memref<1x32xf32, #tpu.memory_space<vmem>>, %arg7: memref<32x32xbf16, #tpu.memory_space<vmem>>, %arg8: memref<1x32xf32, #tpu.memory_space<vmem>>, %arg9: memref<32x32xbf16, #tpu.memory_space<vmem>>, %arg10: memref<1x32xf32, #tpu.memory_space<vmem>>, %arg11: memref<32x32xbf16, #tpu.memory_space<vmem>>, %arg12: memref<1x32xf32, #tpu.memory_space<vmem>>, %arg13: memref<1x32xf32, #tpu.memory_space<vmem>>, %arg14: memref<1x32xf32, #tpu.memory_space<vmem>>, %arg15: memref<32x64xbf16, #tpu.memory_space<vmem>>, %arg16: memref<1x64xf32, #tpu.memory_space<vmem>>, %arg17: memref<64x32xbf16, #tpu.memory_space<vmem>>, %arg18: memref<1x32xf32, #tpu.memory_space<vmem>>, %arg19: memref<1x8x32xf32, #tpu.memory_space<vmem>>, %arg20: memref<4x8x24xbf16, #tpu.memory_space<vmem>>, %arg21: memref<4x24x8xbf16, #tpu.memory_space<vmem>>, %arg22: memref<24x32xbf16, #tpu.memory_space<vmem>>) attributes {dimension_semantics = [#tpu.dimension_semantics<parallel>, #tpu.dimension_semantics<arbitrary>], iteration_bounds = array<i64: 2, 3>, scalar_prefetch = 0 : i64, scratch_operands = 3 : i64, tpu.core_type = #tpu.core_type<tc>, window_params = [{transform_indices = @transform_0, window_bounds = array<i64: 1, 24, 32>}, {pipeline_mode = #tpu.pipeline_mode<synchronous>, transform_indices = @transform_1, window_bounds = array<i64: 1, 32>}, {pipeline_mode = #tpu.pipeline_mode<synchronous>, transform_indices = @transform_2, window_bounds = array<i64: 1, 32>}, {pipeline_mode = #tpu.pipeline_mode<synchronous>, transform_indices = @transform_3, window_bounds = array<i64: 32, 32>}, {pipeline_mode = #tpu.pipeline_mode<synchronous>, transform_indices = @transform_4, window_bounds = array<i64: 1, 32>}, {pipeline_mode = #tpu.pipeline_mode<synchronous>, transform_indices = @transform_5, window_bounds = array<i64: 32, 32>}, {pipeline_mode = #tpu.pipeline_mode<synchronous>, transform_indices = @transform_6, window_bounds = array<i64: 1, 32>}, {pipeline_mode = #tpu.pipeline_mode<synchronous>, transform_indices = @transform_7, window_bounds = array<i64: 32, 32>}, {pipeline_mode = #tpu.pipeline_mode<synchronous>, transform_indices = @transform_8, window_bounds = array<i64: 1, 32>}, {pipeline_mode = #tpu.pipeline_mode<synchronous>, transform_indices = @transform_9, window_bounds = array<i64: 32, 32>}, {pipeline_mode = #tpu.pipeline_mode<synchronous>, transform_indices = @transform_10, window_bounds = array<i64: 1, 32>}, {pipeline_mode = #tpu.pipeline_mode<synchronous>, transform_indices = @transform_11, window_bounds = array<i64: 1, 32>}, {pipeline_mode = #tpu.pipeline_mode<synchronous>, transform_indices = @transform_12, window_bounds = array<i64: 1, 32>}, {pipeline_mode = #tpu.pipeline_mode<synchronous>, transform_indices = @transform_13, window_bounds = array<i64: 32, 64>}, {pipeline_mode = #tpu.pipeline_mode<synchronous>, transform_indices = @transform_14, window_bounds = array<i64: 1, 64>}, {pipeline_mode = #tpu.pipeline_mode<synchronous>, transform_indices = @transform_15, window_bounds = array<i64: 64, 32>}, {pipeline_mode = #tpu.pipeline_mode<synchronous>, transform_indices = @transform_16, window_bounds = array<i64: 1, 32>}, {transform_indices = @transform_17, window_bounds = array<i64: 1, 8, 32>}]} {
    %c0 = arith.constant 0 : index
    %c0_0 = arith.constant 0 : index
    %0 = vector.load %arg3[%c0, %c0_0] : memref<1x32xf32, #tpu.memory_space<vmem>>, vector<1x32xf32>
    %1 = vector.shape_cast %0 : vector<1x32xf32> to vector<32xf32>
    %c0_1 = arith.constant 0 : index
    %c0_2 = arith.constant 0 : index
    %2 = vector.load %arg4[%c0_1, %c0_2] : memref<1x32xf32, #tpu.memory_space<vmem>>, vector<1x32xf32>
    %3 = vector.shape_cast %2 : vector<1x32xf32> to vector<32xf32>
    %c0_3 = arith.constant 0 : index
    %c0_4 = arith.constant 0 : index
    %4 = vector.load %arg13[%c0_3, %c0_4] : memref<1x32xf32, #tpu.memory_space<vmem>>, vector<1x32xf32>
    %5 = vector.shape_cast %4 : vector<1x32xf32> to vector<32xf32>
    %c0_5 = arith.constant 0 : index
    %c0_6 = arith.constant 0 : index
    %6 = vector.load %arg14[%c0_5, %c0_6] : memref<1x32xf32, #tpu.memory_space<vmem>>, vector<1x32xf32>
    %7 = vector.shape_cast %6 : vector<1x32xf32> to vector<32xf32>
    %c0_7 = arith.constant 0 : index
    %c0_8 = arith.constant 0 : index
    %8 = vector.load %arg6[%c0_7, %c0_8] : memref<1x32xf32, #tpu.memory_space<vmem>>, vector<1x32xf32>
    %9 = vector.shape_cast %8 : vector<1x32xf32> to vector<32xf32>
    %c0_9 = arith.constant 0 : index
    %c0_10 = arith.constant 0 : index
    %10 = vector.load %arg12[%c0_9, %c0_10] : memref<1x32xf32, #tpu.memory_space<vmem>>, vector<1x32xf32>
    %11 = vector.shape_cast %10 : vector<1x32xf32> to vector<32xf32>
    %c0_11 = arith.constant 0 : index
    %c0_12 = arith.constant 0 : index
    %12 = vector.load %arg16[%c0_11, %c0_12] : memref<1x64xf32, #tpu.memory_space<vmem>>, vector<1x64xf32>
    %13 = vector.shape_cast %12 : vector<1x64xf32> to vector<64xf32>
    %c0_13 = arith.constant 0 : index
    %c0_14 = arith.constant 0 : index
    %14 = vector.load %arg18[%c0_13, %c0_14] : memref<1x32xf32, #tpu.memory_space<vmem>>, vector<1x32xf32>
    %15 = vector.shape_cast %14 : vector<1x32xf32> to vector<32xf32>
    %c0_i32 = arith.constant 0 : i32
    %16 = arith.cmpi eq, %arg1, %c0_i32 : i32
    %17 = arith.extui %16 : i1 to i32
    %c0_i32_15 = arith.constant 0 : i32
    %18 = arith.cmpi ne, %17, %c0_i32_15 : i32
    scf.if %18 {
      %c0_52 = arith.constant 0 : index
      %c0_53 = arith.constant 0 : index
      %c0_54 = arith.constant 0 : index
      %113 = vector.load %arg2[%c0_52, %c0_53, %c0_54] : memref<1x24x32xf32, #tpu.memory_space<vmem>>, vector<1x24x32xf32>
      %114 = vector.shape_cast %113 : vector<1x24x32xf32> to vector<24x32xf32>
      %cst_55 = arith.constant dense<0.000000e+00> : vector<24xf32>
      %115 = vector.multi_reduction <add>, %114, %cst_55 [1] : vector<24x32xf32> to vector<24xf32>
      %116 = vector.shape_cast %115 : vector<24xf32> to vector<24x1xf32>
      %cst_56 = arith.constant 3.200000e+01 : f32
      %117 = vector.broadcast %cst_56 : f32 to vector<24x1xf32>
      %118 = arith.divf %116, %117 : vector<24x1xf32>
      %119 = vector.broadcast %118 : vector<24x1xf32> to vector<24x32xf32>
      %120 = arith.subf %114, %119 : vector<24x32xf32>
      %121 = arith.mulf %120, %120 : vector<24x32xf32>
      %cst_57 = arith.constant dense<0.000000e+00> : vector<24xf32>
      %122 = vector.multi_reduction <add>, %121, %cst_57 [1] : vector<24x32xf32> to vector<24xf32>
      %123 = vector.shape_cast %122 : vector<24xf32> to vector<24x1xf32>
      %cst_58 = arith.constant 3.200000e+01 : f32
      %124 = vector.broadcast %cst_58 : f32 to vector<24x1xf32>
      %125 = arith.divf %123, %124 : vector<24x1xf32>
      %cst_59 = arith.constant 9.99999974E-6 : f32
      %126 = vector.broadcast %cst_59 : f32 to vector<24x1xf32>
      %127 = arith.addf %125, %126 : vector<24x1xf32>
      %128 = math.rsqrt %127 : vector<24x1xf32>
      %129 = vector.broadcast %128 : vector<24x1xf32> to vector<24x32xf32>
      %130 = arith.mulf %120, %129 : vector<24x32xf32>
      %131 = vector.shape_cast %1 : vector<32xf32> to vector<1x32xf32>
      %132 = vector.broadcast %131 : vector<1x32xf32> to vector<24x32xf32>
      %133 = arith.mulf %130, %132 : vector<24x32xf32>
      %134 = vector.shape_cast %3 : vector<32xf32> to vector<1x32xf32>
      %135 = vector.broadcast %134 : vector<1x32xf32> to vector<24x32xf32>
      %136 = arith.addf %133, %135 : vector<24x32xf32>
      %137 = arith.truncf %136 : vector<24x32xf32> to vector<24x32xbf16>
      %c0_60 = arith.constant 0 : index
      %c0_61 = arith.constant 0 : index
      %138 = vector.load %arg22[%c0_60, %c0_61] : memref<24x32xbf16, #tpu.memory_space<vmem>>, vector<24x32xbf16>
      tpu.vector_store %arg22[%c0_60, %c0_61], %137 {strides = array<i32>} : memref<24x32xbf16, #tpu.memory_space<vmem>>, vector<24x32xbf16>,
      %c0_62 = arith.constant 0 : index
      %c0_63 = arith.constant 0 : index
      %139 = vector.load %arg7[%c0_62, %c0_63] : memref<32x32xbf16, #tpu.memory_space<vmem>>, vector<32x32xbf16>
      %cst_64 = arith.constant dense<0.000000e+00> : vector<24x32xf32>
      %140 = tpu.matmul %137, %139, %cst_64 {dimension_numbers = #tpu.dot_dimension_numbers<[1], [0], [0], [1], [0, 0, 1, 1], [], []>} : vector<24x32xbf16>, vector<32x32xbf16>, vector<24x32xf32> -> vector<24x32xf32>
      %c0_65 = arith.constant 0 : index
      %c0_66 = arith.constant 0 : index
      %141 = vector.load %arg8[%c0_65, %c0_66] : memref<1x32xf32, #tpu.memory_space<vmem>>, vector<1x32xf32>
      %142 = vector.shape_cast %141 : vector<1x32xf32> to vector<32xf32>
      %143 = vector.shape_cast %142 : vector<32xf32> to vector<1x32xf32>
      %144 = vector.broadcast %143 : vector<1x32xf32> to vector<24x32xf32>
      %145 = arith.addf %140, %144 : vector<24x32xf32>
      %c0_67 = arith.constant 0 : index
      %c0_68 = arith.constant 0 : index
      %146 = vector.load %arg9[%c0_67, %c0_68] : memref<32x32xbf16, #tpu.memory_space<vmem>>, vector<32x32xbf16>
      %cst_69 = arith.constant dense<0.000000e+00> : vector<24x32xf32>
      %147 = tpu.matmul %137, %146, %cst_69 {dimension_numbers = #tpu.dot_dimension_numbers<[1], [0], [0], [1], [0, 0, 1, 1], [], []>} : vector<24x32xbf16>, vector<32x32xbf16>, vector<24x32xf32> -> vector<24x32xf32>
      %c0_70 = arith.constant 0 : index
      %c0_71 = arith.constant 0 : index
      %148 = vector.load %arg10[%c0_70, %c0_71] : memref<1x32xf32, #tpu.memory_space<vmem>>, vector<1x32xf32>
      %149 = vector.shape_cast %148 : vector<1x32xf32> to vector<32xf32>
      %150 = vector.shape_cast %149 : vector<32xf32> to vector<1x32xf32>
      %151 = vector.broadcast %150 : vector<1x32xf32> to vector<24x32xf32>
      %152 = arith.addf %147, %151 : vector<24x32xf32>
      %153 = arith.truncf %145 : vector<24x32xf32> to vector<24x32xbf16>
      %154 = tpu.transpose %153, [1, 0] : vector<24x32xbf16> -> vector<32x24xbf16>
      %155 = vector.shape_cast %154 : vector<32x24xbf16> to vector<4x8x24xbf16>
      %c0_72 = arith.constant 0 : index
      %c0_73 = arith.constant 0 : index
      %c0_74 = arith.constant 0 : index
      %156 = vector.load %arg20[%c0_72, %c0_73, %c0_74] : memref<4x8x24xbf16, #tpu.memory_space<vmem>>, vector<4x8x24xbf16>
      tpu.vector_store %arg20[%c0_72, %c0_73, %c0_74], %155 {strides = array<i32>} : memref<4x8x24xbf16, #tpu.memory_space<vmem>>, vector<4x8x24xbf16>,
      %157 = arith.truncf %152 : vector<24x32xf32> to vector<24x32xbf16>
      %158 = vector.shape_cast %157 : vector<24x32xbf16> to vector<24x4x8xbf16>
      %159 = tpu.transpose %158, [1, 0, 2] : vector<24x4x8xbf16> -> vector<4x24x8xbf16>
      %c0_75 = arith.constant 0 : index
      %c0_76 = arith.constant 0 : index
      %c0_77 = arith.constant 0 : index
      %160 = vector.load %arg21[%c0_75, %c0_76, %c0_77] : memref<4x24x8xbf16, #tpu.memory_space<vmem>>, vector<4x24x8xbf16>
      tpu.vector_store %arg21[%c0_75, %c0_76, %c0_77], %159 {strides = array<i32>} : memref<4x24x8xbf16, #tpu.memory_space<vmem>>, vector<4x24x8xbf16>,
    } else {
    }
    %c8_i32 = arith.constant 8 : i32
    %19 = arith.muli %arg1, %c8_i32 : i32
    %20 = tpu.assume_multiple %19, 8 : i32
    %c0_16 = arith.constant 0 : index
    %21 = arith.index_cast %20 : i32 to index
    %c0_17 = arith.constant 0 : index
    %22 = vector.load %arg2[%c0_16, %21, %c0_17] : memref<1x24x32xf32, #tpu.memory_space<vmem>>, vector<1x8x32xf32>
    %23 = vector.shape_cast %22 : vector<1x8x32xf32> to vector<8x32xf32>
    %24 = arith.index_cast %20 : i32 to index
    %c0_18 = arith.constant 0 : index
    %25 = vector.load %arg22[%24, %c0_18] : memref<24x32xbf16, #tpu.memory_space<vmem>>, vector<8x32xbf16>
    %c0_19 = arith.constant 0 : index
    %c0_20 = arith.constant 0 : index
    %26 = vector.load %arg5[%c0_19, %c0_20] : memref<32x32xbf16, #tpu.memory_space<vmem>>, vector<32x32xbf16>
    %cst = arith.constant dense<0.000000e+00> : vector<8x32xf32>
    %27 = tpu.matmul %25, %26, %cst {dimension_numbers = #tpu.dot_dimension_numbers<[1], [0], [0], [1], [0, 0, 1, 1], [], []>} : vector<8x32xbf16>, vector<32x32xbf16>, vector<8x32xf32> -> vector<8x32xf32>
    %28 = vector.shape_cast %9 : vector<32xf32> to vector<1x32xf32>
    %29 = vector.broadcast %28 : vector<1x32xf32> to vector<8x32xf32>
    %30 = arith.addf %27, %29 : vector<8x32xf32>
    %cst_21 = arith.constant 0.353553385 : f32
    %31 = vector.broadcast %cst_21 : f32 to vector<8x32xf32>
    %32 = arith.mulf %30, %31 : vector<8x32xf32>
    %33 = arith.truncf %32 : vector<8x32xf32> to vector<8x32xbf16>
    %34 = vector.shape_cast %33 : vector<8x32xbf16> to vector<8x4x8xbf16>
    %35 = tpu.transpose %34, [1, 0, 2] : vector<8x4x8xbf16> -> vector<4x8x8xbf16>
    %c0_22 = arith.constant 0 : index
    %c0_23 = arith.constant 0 : index
    %c0_24 = arith.constant 0 : index
    %36 = vector.load %arg20[%c0_22, %c0_23, %c0_24] : memref<4x8x24xbf16, #tpu.memory_space<vmem>>, vector<4x8x24xbf16>
    "tpu.trace_start"() <{level = 10 : i32, message = "hqd,hds->hqs"}> : () -> ()
    %cst_25 = arith.constant dense<0.000000e+00> : vector<4x8x24xf32>
    %37 = tpu.matmul %35, %36, %cst_25 {dimension_numbers = #tpu.dot_dimension_numbers<[2], [1], [1], [2], [0, 0, 0, 1, 1, 2], [0], [0]>} : vector<4x8x8xbf16>, vector<4x8x24xbf16>, vector<4x8x24xf32> -> vector<4x8x24xf32>
    "tpu.trace_stop"() : () -> ()
    %38 = tpu.iota {dimensions = array<i32: 2>} : vector<1x1x24xi32>
    %c20_i32 = arith.constant 20 : i32
    %39 = vector.broadcast %c20_i32 : i32 to vector<1x1x24xi32>
    %40 = arith.cmpi slt, %38, %39 : vector<1x1x24xi32>
    %cst_26 = arith.constant -1.000000e+30 : f32
    %41 = vector.shape_cast %40 : vector<1x1x24xi1> to vector<1x1x24xi1>
    %42 = vector.broadcast %41 : vector<1x1x24xi1> to vector<4x8x24xi1>
    %43 = vector.broadcast %cst_26 : f32 to vector<4x8x24xf32>
    %44 = arith.select %42, %37, %43 : vector<4x8x24xi1>, vector<4x8x24xf32>
    %cst_27 = arith.constant dense<0xFF800000> : vector<4x8xf32>
    %45 = vector.multi_reduction <maximumf>, %44, %cst_27 [2] : vector<4x8x24xf32> to vector<4x8xf32>
    %46 = vector.shape_cast %45 : vector<4x8xf32> to vector<4x8x1xf32>
    %47 = vector.broadcast %46 : vector<4x8x1xf32> to vector<4x8x24xf32>
    %48 = arith.subf %44, %47 : vector<4x8x24xf32>
    %49 = math.exp %48 : vector<4x8x24xf32>
    %cst_28 = arith.constant dense<0.000000e+00> : vector<4x8xf32>
    %50 = vector.multi_reduction <add>, %49, %cst_28 [2] : vector<4x8x24xf32> to vector<4x8xf32>
    %51 = vector.shape_cast %50 : vector<4x8xf32> to vector<4x8x1xf32>
    %52 = tpu.reciprocal %51 {approx = true} : vector<4x8x1xf32> -> vector<4x8x1xf32>
    %53 = vector.broadcast %52 : vector<4x8x1xf32> to vector<4x8x24xf32>
    %54 = arith.mulf %49, %53 : vector<4x8x24xf32>
    %55 = arith.truncf %54 : vector<4x8x24xf32> to vector<4x8x24xbf16>
    %c0_29 = arith.constant 0 : index
    %c0_30 = arith.constant 0 : index
    %c0_31 = arith.constant 0 : index
    %56 = vector.load %arg21[%c0_29, %c0_30, %c0_31] : memref<4x24x8xbf16, #tpu.memory_space<vmem>>, vector<4x24x8xbf16>
    "tpu.trace_start"() <{level = 10 : i32, message = "hqk,hkd->hqd"}> : () -> ()
    %cst_32 = arith.constant dense<0.000000e+00> : vector<4x8x8xf32>
    %57 = tpu.matmul %55, %56, %cst_32 {dimension_numbers = #tpu.dot_dimension_numbers<[2], [1], [1], [2], [0, 0, 0, 1, 1, 2], [0], [0]>} : vector<4x8x24xbf16>, vector<4x24x8xbf16>, vector<4x8x8xf32> -> vector<4x8x8xf32>
    "tpu.trace_stop"() : () -> ()
    %58 = arith.truncf %57 : vector<4x8x8xf32> to vector<4x8x8xbf16>
    %59 = tpu.transpose %58, [1, 0, 2] : vector<4x8x8xbf16> -> vector<8x4x8xbf16>
    %60 = vector.shape_cast %59 : vector<8x4x8xbf16> to vector<8x32xbf16>
    %c0_33 = arith.constant 0 : index
    %c0_34 = arith.constant 0 : index
    %61 = vector.load %arg11[%c0_33, %c0_34] : memref<32x32xbf16, #tpu.memory_space<vmem>>, vector<32x32xbf16>
    %cst_35 = arith.constant dense<0.000000e+00> : vector<8x32xf32>
    %62 = tpu.matmul %60, %61, %cst_35 {dimension_numbers = #tpu.dot_dimension_numbers<[1], [0], [0], [1], [0, 0, 1, 1], [], []>} : vector<8x32xbf16>, vector<32x32xbf16>, vector<8x32xf32> -> vector<8x32xf32>
    %63 = vector.shape_cast %11 : vector<32xf32> to vector<1x32xf32>
    %64 = vector.broadcast %63 : vector<1x32xf32> to vector<8x32xf32>
    %65 = arith.addf %62, %64 : vector<8x32xf32>
    %66 = arith.addf %23, %65 : vector<8x32xf32>
    %cst_36 = arith.constant dense<0.000000e+00> : vector<8xf32>
    %67 = vector.multi_reduction <add>, %66, %cst_36 [1] : vector<8x32xf32> to vector<8xf32>
    %68 = vector.shape_cast %67 : vector<8xf32> to vector<8x1xf32>
    %cst_37 = arith.constant 3.200000e+01 : f32
    %69 = vector.broadcast %cst_37 : f32 to vector<8x1xf32>
    %70 = arith.divf %68, %69 : vector<8x1xf32>
    %71 = vector.broadcast %70 : vector<8x1xf32> to vector<8x32xf32>
    %72 = arith.subf %66, %71 : vector<8x32xf32>
    %73 = arith.mulf %72, %72 : vector<8x32xf32>
    %cst_38 = arith.constant dense<0.000000e+00> : vector<8xf32>
    %74 = vector.multi_reduction <add>, %73, %cst_38 [1] : vector<8x32xf32> to vector<8xf32>
    %75 = vector.shape_cast %74 : vector<8xf32> to vector<8x1xf32>
    %cst_39 = arith.constant 3.200000e+01 : f32
    %76 = vector.broadcast %cst_39 : f32 to vector<8x1xf32>
    %77 = arith.divf %75, %76 : vector<8x1xf32>
    %cst_40 = arith.constant 9.99999974E-6 : f32
    %78 = vector.broadcast %cst_40 : f32 to vector<8x1xf32>
    %79 = arith.addf %77, %78 : vector<8x1xf32>
    %80 = math.rsqrt %79 : vector<8x1xf32>
    %81 = vector.broadcast %80 : vector<8x1xf32> to vector<8x32xf32>
    %82 = arith.mulf %72, %81 : vector<8x32xf32>
    %83 = vector.shape_cast %5 : vector<32xf32> to vector<1x32xf32>
    %84 = vector.broadcast %83 : vector<1x32xf32> to vector<8x32xf32>
    %85 = arith.mulf %82, %84 : vector<8x32xf32>
    %86 = vector.shape_cast %7 : vector<32xf32> to vector<1x32xf32>
    %87 = vector.broadcast %86 : vector<1x32xf32> to vector<8x32xf32>
    %88 = arith.addf %85, %87 : vector<8x32xf32>
    %89 = arith.truncf %88 : vector<8x32xf32> to vector<8x32xbf16>
    %c0_41 = arith.constant 0 : index
    %c0_42 = arith.constant 0 : index
    %90 = vector.load %arg15[%c0_41, %c0_42] : memref<32x64xbf16, #tpu.memory_space<vmem>>, vector<32x64xbf16>
    %cst_43 = arith.constant dense<0.000000e+00> : vector<8x64xf32>
    %91 = tpu.matmul %89, %90, %cst_43 {dimension_numbers = #tpu.dot_dimension_numbers<[1], [0], [0], [1], [0, 0, 1, 1], [], []>} : vector<8x32xbf16>, vector<32x64xbf16>, vector<8x64xf32> -> vector<8x64xf32>
    %92 = vector.shape_cast %13 : vector<64xf32> to vector<1x64xf32>
    %93 = vector.broadcast %92 : vector<1x64xf32> to vector<8x64xf32>
    %94 = arith.addf %91, %93 : vector<8x64xf32>
    %cst_44 = arith.constant 1.702000e+00 : f32
    %95 = vector.broadcast %cst_44 : f32 to vector<8x64xf32>
    %96 = arith.mulf %95, %94 : vector<8x64xf32>
    %97 = arith.negf %96 : vector<8x64xf32>
    %98 = math.exp %97 : vector<8x64xf32>
    %cst_45 = arith.constant 1.000000e+00 : f32
    %99 = vector.broadcast %cst_45 : f32 to vector<8x64xf32>
    %100 = arith.addf %99, %98 : vector<8x64xf32>
    %101 = arith.divf %99, %100 : vector<8x64xf32>
    %102 = arith.mulf %94, %101 : vector<8x64xf32>
    %103 = arith.truncf %102 : vector<8x64xf32> to vector<8x64xbf16>
    %c0_46 = arith.constant 0 : index
    %c0_47 = arith.constant 0 : index
    %104 = vector.load %arg17[%c0_46, %c0_47] : memref<64x32xbf16, #tpu.memory_space<vmem>>, vector<64x32xbf16>
    %cst_48 = arith.constant dense<0.000000e+00> : vector<8x32xf32>
    %105 = tpu.matmul %103, %104, %cst_48 {dimension_numbers = #tpu.dot_dimension_numbers<[1], [0], [0], [1], [0, 0, 1, 1], [], []>} : vector<8x64xbf16>, vector<64x32xbf16>, vector<8x32xf32> -> vector<8x32xf32>
    %106 = vector.shape_cast %15 : vector<32xf32> to vector<1x32xf32>
    %107 = vector.broadcast %106 : vector<1x32xf32> to vector<8x32xf32>
    %108 = arith.addf %105, %107 : vector<8x32xf32>
    %109 = arith.addf %66, %108 : vector<8x32xf32>
    %c0_49 = arith.constant 0 : index
    %c0_50 = arith.constant 0 : index
    %c0_51 = arith.constant 0 : index
    %110 = vector.load %arg19[%c0_49, %c0_50, %c0_51] : memref<1x8x32xf32, #tpu.memory_space<vmem>>, vector<1x8x32xf32>
    %111 = vector.shape_cast %110 : vector<1x8x32xf32> to vector<8x32xf32>
    %112 = vector.shape_cast %109 : vector<8x32xf32> to vector<1x8x32xf32>
    tpu.vector_store %arg19[%c0_49, %c0_50, %c0_51], %112 {strides = array<i32>} : memref<1x8x32xf32, #tpu.memory_space<vmem>>, vector<1x8x32xf32>,
    return
  }
  func.func @transform_0(%arg0: i32, %arg1: i32) -> (i32, i32, i32) {
    %c0_i32 = arith.constant 0 : i32
    %c0_i32_0 = arith.constant 0 : i32
    %c0_i32_1 = arith.constant 0 : i32
    return %arg0, %c0_i32, %c0_i32_0 : i32, i32, i32
  }
  func.func @transform_1(%arg0: i32, %arg1: i32) -> (i32, i32) {
    %c0_i32 = arith.constant 0 : i32
    %c0_i32_0 = arith.constant 0 : i32
    %c0_i32_1 = arith.constant 0 : i32
    return %c0_i32, %c0_i32_0 : i32, i32
  }
  func.func @transform_2(%arg0: i32, %arg1: i32) -> (i32, i32) {
    %c0_i32 = arith.constant 0 : i32
    %c0_i32_0 = arith.constant 0 : i32
    %c0_i32_1 = arith.constant 0 : i32
    return %c0_i32, %c0_i32_0 : i32, i32
  }
  func.func @transform_3(%arg0: i32, %arg1: i32) -> (i32, i32) {
    %c0_i32 = arith.constant 0 : i32
    %c0_i32_0 = arith.constant 0 : i32
    %c0_i32_1 = arith.constant 0 : i32
    return %c0_i32, %c0_i32_0 : i32, i32
  }
  func.func @transform_4(%arg0: i32, %arg1: i32) -> (i32, i32) {
    %c0_i32 = arith.constant 0 : i32
    %c0_i32_0 = arith.constant 0 : i32
    %c0_i32_1 = arith.constant 0 : i32
    return %c0_i32, %c0_i32_0 : i32, i32
  }
  func.func @transform_5(%arg0: i32, %arg1: i32) -> (i32, i32) {
    %c0_i32 = arith.constant 0 : i32
    %c0_i32_0 = arith.constant 0 : i32
    %c0_i32_1 = arith.constant 0 : i32
    return %c0_i32, %c0_i32_0 : i32, i32
  }
  func.func @transform_6(%arg0: i32, %arg1: i32) -> (i32, i32) {
    %c0_i32 = arith.constant 0 : i32
    %c0_i32_0 = arith.constant 0 : i32
    %c0_i32_1 = arith.constant 0 : i32
    return %c0_i32, %c0_i32_0 : i32, i32
  }
  func.func @transform_7(%arg0: i32, %arg1: i32) -> (i32, i32) {
    %c0_i32 = arith.constant 0 : i32
    %c0_i32_0 = arith.constant 0 : i32
    %c0_i32_1 = arith.constant 0 : i32
    return %c0_i32, %c0_i32_0 : i32, i32
  }
  func.func @transform_8(%arg0: i32, %arg1: i32) -> (i32, i32) {
    %c0_i32 = arith.constant 0 : i32
    %c0_i32_0 = arith.constant 0 : i32
    %c0_i32_1 = arith.constant 0 : i32
    return %c0_i32, %c0_i32_0 : i32, i32
  }
  func.func @transform_9(%arg0: i32, %arg1: i32) -> (i32, i32) {
    %c0_i32 = arith.constant 0 : i32
    %c0_i32_0 = arith.constant 0 : i32
    %c0_i32_1 = arith.constant 0 : i32
    return %c0_i32, %c0_i32_0 : i32, i32
  }
  func.func @transform_10(%arg0: i32, %arg1: i32) -> (i32, i32) {
    %c0_i32 = arith.constant 0 : i32
    %c0_i32_0 = arith.constant 0 : i32
    %c0_i32_1 = arith.constant 0 : i32
    return %c0_i32, %c0_i32_0 : i32, i32
  }
  func.func @transform_11(%arg0: i32, %arg1: i32) -> (i32, i32) {
    %c0_i32 = arith.constant 0 : i32
    %c0_i32_0 = arith.constant 0 : i32
    %c0_i32_1 = arith.constant 0 : i32
    return %c0_i32, %c0_i32_0 : i32, i32
  }
  func.func @transform_12(%arg0: i32, %arg1: i32) -> (i32, i32) {
    %c0_i32 = arith.constant 0 : i32
    %c0_i32_0 = arith.constant 0 : i32
    %c0_i32_1 = arith.constant 0 : i32
    return %c0_i32, %c0_i32_0 : i32, i32
  }
  func.func @transform_13(%arg0: i32, %arg1: i32) -> (i32, i32) {
    %c0_i32 = arith.constant 0 : i32
    %c0_i32_0 = arith.constant 0 : i32
    %c0_i32_1 = arith.constant 0 : i32
    return %c0_i32, %c0_i32_0 : i32, i32
  }
  func.func @transform_14(%arg0: i32, %arg1: i32) -> (i32, i32) {
    %c0_i32 = arith.constant 0 : i32
    %c0_i32_0 = arith.constant 0 : i32
    %c0_i32_1 = arith.constant 0 : i32
    return %c0_i32, %c0_i32_0 : i32, i32
  }
  func.func @transform_15(%arg0: i32, %arg1: i32) -> (i32, i32) {
    %c0_i32 = arith.constant 0 : i32
    %c0_i32_0 = arith.constant 0 : i32
    %c0_i32_1 = arith.constant 0 : i32
    return %c0_i32, %c0_i32_0 : i32, i32
  }
  func.func @transform_16(%arg0: i32, %arg1: i32) -> (i32, i32) {
    %c0_i32 = arith.constant 0 : i32
    %c0_i32_0 = arith.constant 0 : i32
    %c0_i32_1 = arith.constant 0 : i32
    return %c0_i32, %c0_i32_0 : i32, i32
  }
  func.func @transform_17(%arg0: i32, %arg1: i32) -> (i32, i32, i32) {
    %c0_i32 = arith.constant 0 : i32
    %c0_i32_0 = arith.constant 0 : i32
    return %arg0, %arg1, %c0_i32 : i32, i32, i32
  }
}

</mosaic_0001>

<bundles_post_ra>
// kernel: tpu_custom_call.1
= control target key start
LH: loop header
LB: loop body
LE: loop exit
PB: predicated region body
PF: predicated region fallthrough
CT: control target
= control target key end

     0   :  { %s4361_s0 = inlined_call_operand.vmem [shape: f32[2,24,32], index: 0, kind: input, shape index: {}]   ;;  %s4362_s1 = inlined_call_operand.hbm [shape: f32[1,32], index: 1, kind: input, shape index: {}]   ;;  %s4363_s2 = inlined_call_operand.hbm [shape: f32[1,32], index: 2, kind: input, shape index: {}]   ;;  %s4364_s3 = inlined_call_operand.hbm [shape: bf16[32,32], index: 3, kind: input, shape index: {}]   ;;  %s4365_s4 = inlined_call_operand.hbm [shape: f32[1,32], index: 4, kind: input, shape index: {}]   ;;  %s4366_s5 = inlined_call_operand.hbm [shape: bf16[32,32], index: 5, kind: input, shape index: {}]   ;;  %s4367_s6 = inlined_call_operand.hbm [shape: f32[1,32], index: 6, kind: input, shape index: {}]   ;;  %s4368_s7 = inlined_call_operand.hbm [shape: bf16[32,32], index: 7, kind: input, shape index: {}]   ;;  %s4369_s8 = inlined_call_operand.hbm [shape: f32[1,32], index: 8, kind: input, shape index: {}]   ;;  %s4370_s9 = inlined_call_operand.vmem [shape: bf16[32,32], index: 9, kind: input, shape index: {}]   ;;  %s4371_s10 = inlined_call_operand.vmem [shape: f32[1,32], index: 10, kind: input, shape index: {}]   ;;  %s4372_s11 = inlined_call_operand.vmem [shape: f32[1,32], index: 11, kind: input, shape index: {}]   ;;  %s4373_s12 = inlined_call_operand.vmem [shape: f32[1,32], index: 12, kind: input, shape index: {}]   ;;  %s4374_s13 = inlined_call_operand.hbm [shape: bf16[32,64], index: 13, kind: input, shape index: {}]   ;;  %s4375_s14 = inlined_call_operand.vmem [shape: f32[1,64], index: 14, kind: input, shape index: {}]   ;;  %s4376_s15 = inlined_call_operand.vmem [shape: bf16[64,32], index: 15, kind: input, shape index: {}]   ;;  %s4377_s16 = inlined_call_operand.vmem [shape: f32[1,32], index: 16, kind: input, shape index: {}]   ;;  %s4378_s17 = inlined_call_operand.hbm [shape: f32[2,24,32], index: 17, kind: output, shape index: {}]  }
   0x1   :  { %4393 = sst [smem:[#allocation35_spill]] %s4361_s0 }
   0x2   :  { %4394 = sst [smem:[#allocation36_spill]] %s4362_s1 }
   0x3   :  { %4395 = sst [smem:[#allocation37_spill]] %s4363_s2 }
   0x4   :  { %4396 = sst [smem:[#allocation38_spill]] %s4370_s9 }
   0x5   :  { %4397 = sst [smem:[#allocation39_spill]] %s4376_s15 }
   0x6   :  { %4398 = sst [smem:[#allocation40_spill]] %s4378_s17 }
   0x7   :  { %22 = vsyncpa [#allocation6], 0 }
   0x8   :  { %23 = vsyncpa [#allocation9], 0 }
   0x9   :  { %24 = vsyncpa [#allocation12], 0 }
   0xa   :  { %25 = vsyncpa [#allocation15], 0 }
   0xb   :  { %26 = vsyncpa [#allocation18], 0 }
   0xc   :  { %27 = vsyncpa [#allocation7], 0 }
   0xd   :  { %29 = vsyncpa [#allocation7 + $0x1], 0  ;;  %s3781_s24 = smov 0   ;;  %s3783_s25 = smov 0  }
   0xe   :  { %s3785_s26 = smov 0   ;;  %s3787_s27 = smov 0  }
   0xf   :  { %s3789_s28 = smov 0   ;;  %s3791_s29 = smov 0  }
  0x10   :  { %s3793_s0 = smov 0   ;;  %s3795_s30 = smov 0  }
  0x11 LB: > { %4399 = sst [smem:[#allocation27_spill]] %s3632_s24  ;;  %s2828_s18 = sadd.s32 4294967295, %s3660_s30   ;;  %s3660_s30 = sphi %s3795_s30, %s35_s30   ;;  %s3656_s0 = sphi %s3793_s0, %s4432_s0   ;;  %s3652_s29 = sphi %s3791_s29, %s4431_s29   ;;  %s3648_s28 = sphi %s3789_s28, %s4430_s28   ;;  %s3644_s27 = sphi %s3787_s27, %s4429_s27   ;;  %s3640_s26 = sphi %s3785_s26, %s4428_s26   ;;  %s3636_s25 = sphi %s3783_s25, %s4434_s25   ;;  %s3632_s24 = sphi %s3781_s24, %s4433_s24  }
  0x12   : > { %4400 = sst [smem:[#allocation28_spill]] %s3640_s26  ;;  %s2829_s19 = sadd.s32 4294967294, %s3660_s30  }
  0x13   : > { %4401 = sst [smem:[#allocation29_spill]] %s3652_s29  ;;  %s44_s1 = sadd.s32 1, %s3652_s29 }
  0x14   : > { %4402 = sst [smem:[#allocation30_spill]] %s3656_s0  ;;  %s47_s20 = sadd.s32 1, %s3656_s0 }
  0x15   : > { %p45_p0 = scmp.ge.s32.totalorder %s44_s1, 3  ;;  %s418_s21 = sadd.s32 1, %s3640_s26 }
  0x16   : > { %p428_p1 = scmp.ne.s32.totalorder %s3640_s26, %s3636_s25  ;;  %p429_p2 = scmp.eq.s32.totalorder %s2828_s18, 5 }
  0x17   : > { %s4436_s1 = smov (%p45_p0, %s44_s1), 0  ;;  %s4438_s20 = smov (!%p45_p0, %s47_s20), %s3656_s0 }
  0x18   : > { %4403 = sst [smem:[#allocation31_spill]] %s4436_s1  ;;  %s414_s22 = ssub.s32 %s3652_s29, %s4436_s1 }
  0x19   : > { %p3833_p3 = por %p429_p2, %p428_p1  ;;  %p49_p4 = scmp.ge.s32.totalorder %s4438_s20, 2 }
  0x1a   : > { %p434_p5 = scmp.ne.s32.totalorder %s3636_s25, %s3632_s24  ;;  %p435_p6 = scmp.eq.s32.totalorder %s2829_s19, 5 }
  0x1b   : > { %s4404_s23 = scalar_select %p3833_p3, 1, 0 }
  0x1c   : > { %p2830_p7 = scmp.ge.s32.totalorder %s3660_s30, 1  ;;  %s4440_s20 = smov (%p49_p4, %s4438_s20), 0 }
  0x1d   : > { %4405 = sst [smem:[#allocation32_spill]] %s4440_s20  ;;  %p3842_p8 = por %p435_p6, %p434_p5 }
  0x1e   : > { %p442_p9 = scmp.lt.s32.totalorder %s3660_s30, 7  ;;  %s413_s15 = ssub.s32 %s3656_s0, %s4440_s20 }
  0x1f   : > { %s4406_s17 = scalar_select %p3842_p8, 1, 0 }
  0x20   : > { %s415_s9 = sor.u32 %s414_s22, %s413_s15  ;;  %p3849_p10 = pnand %p2830_p7, %p442_p9 }
  0x21   : > { %4407 = sst [smem:[#allocation33_spill]] %s4406_s17  ;;  %p416_p11 = scmp.eq.s32.totalorder %s415_s9, 0 }
  0x22   : > { %s4408_s1 = scalar_select %p3849_p10, 1, 0 }
  0x23   : > { %p3853_p12 = scmp.eq.s32.totalorder %s2828_s18, 0  ;;  %p3121_p13 = pneg %p3849_p10 }
  0x24   : > { %s3860_s19 = scalar_select %p416_p11, %s3640_s26, %s418_s21  }
  0x25   : > { %s4409_s29 = scalar_select %p3853_p12, 1, 0 }
  0x26   : > { %4410 = sst [smem:[#allocation34_spill]] %s3860_s19  ;;  %p3864_p0 = pnand %p3853_p12, %p3121_p13 }
  0x27   : > { %s3662_s15 = smov [#allocation8]   ;;  %s3663_s20 = smov [#allocation11]  }
  0x28   : > { %s466_s22 = sshll.u32 %s3662_s15, 4  ;;  %s490_s9 = sshll.u32 %s3663_s20, 4  ;;  %s467_s22 = int_to_ptr.vmem [resolvable:$true] %s466_s22  ;;  %s491_s9 = int_to_ptr.vmem [resolvable:$true] %s490_s9 }
  0x29   : > { %p3870_p1 = pneg %p3864_p0  ;;  %s3325_s0 = scalar_lea.vmem %s467_s22, 16 }
  0x2a   : > { %p3326_p2 = scmp.ne.s32.totalorder %s467_s22, %s3325_s0  ;;  %s3332_s21 = scalar_lea.vmem %s467_s22, 32 }
  0x2b   : > { %p3333_p6 = scmp.lt.s32.totalorder %s467_s22, %s467_s22  ;;  %p3334_p7 = scmp.lt.s32.totalorder %s3332_s21, %s3325_s0 }
  0x2c   : > { %p3328_p4 = pnand %p3326_p2, %p3870_p1 }
  0x2d   : > { %p3335_p9 = por %p3334_p7, %p3333_p6 }
  0x2e   : > { %p3329_p5 = pneg %p3328_p4 }
  0x30   : > { %p3336_p11 = pnand %p3335_p9, %p3329_p5 }
  0x32   : > { %3339 = shalt.err (!%p3336_p11)
}
  0x33   : > { %s4413_s2 = sld [smem:[#allocation37_spill]]  ;;  %s3351_s19 = scalar_lea.vmem %s491_s9, 16 }
  0x34   : > { %p3352_p13 = scmp.ne.s32.totalorder %s491_s9, %s3351_s19  ;;  %s3358_s26 = scalar_lea.vmem %s491_s9, 32 }
  0x35   : > { %p3359_p4 = scmp.lt.s32.totalorder %s491_s9, %s491_s9  ;;  %p3360_p3 = scmp.lt.s32.totalorder %s3358_s26, %s3351_s19 }
  0x36   : > { %p3354_p8 = pnand %p3352_p13, %p3870_p1 }
  0x37   : > { %p3361_p12 = por %p3360_p3, %p3359_p4 }
  0x38   : > { %p3355_p2 = pneg %p3354_p8 }
  0x39   : > { %3127 = dma.hbm_to_vmem [thread:$0]  (!%p3864_p0), %s4413_s2, 16, %s467_s22, [#allocation9]  }
  0x3a   : > { %p3362_p6 = pnand %p3361_p12, %p3355_p2 }
  0x3c   : > { %3365 = shalt.err (!%p3362_p6)
}
  0x3d   : > { %3133 = dma.hbm_to_vmem [thread:$0]  (!%p3864_p0), %s4365_s4, 16, %s491_s9, [#allocation12]  }
  0x3e   : > { %s3664_s22 = smov [#allocation14]   ;;  %s3665_s15 = smov [#allocation17]  }
  0x3f   : > { %s514_s20 = sshll.u32 %s3664_s22, 4  ;;  %s538_s2 = sshll.u32 %s3665_s15, 4  ;;  %s515_s20 = int_to_ptr.vmem [resolvable:$true] %s514_s20  ;;  %s539_s2 = int_to_ptr.vmem [resolvable:$true] %s538_s2 }
  0x40   : > { %s3377_s24 = scalar_lea.vmem %s515_s20, 16  ;;  %s3384_s26 = scalar_lea.vmem %s515_s20, 32 }
  0x41   : > { %p3378_p8 = scmp.ne.s32.totalorder %s515_s20, %s3377_s24  ;;  %p3385_p3 = scmp.lt.s32.totalorder %s515_s20, %s515_s20 }
  0x42   : > { %p3386_p12 = scmp.lt.s32.totalorder %s3384_s26, %s3377_s24 }
  0x43   : > { %p3380_p5 = pnand %p3378_p8, %p3870_p1 }
  0x44   : > { %p3387_p9 = por %p3386_p12, %p3385_p3 }
  0x45   : > { %p3381_p7 = pneg %p3380_p5 }
  0x47   : > { %p3388_p11 = pnand %p3387_p9, %p3381_p7 }
  0x49   : > { %3391 = shalt.err (!%p3388_p11)
}
  0x4a   : > { %3139 = dma.hbm_to_vmem [thread:$0]  (!%p3864_p0), %s4367_s6, 16, %s515_s20, [#allocation15]  }
  0x4b   : > { %s3403_s0 = scalar_lea.vmem %s539_s2, 16  ;;  %s3410_s21 = scalar_lea.vmem %s539_s2, 32 }
  0x4c   : > { %p3404_p13 = scmp.ne.s32.totalorder %s539_s2, %s3403_s0  ;;  %p3411_p6 = scmp.lt.s32.totalorder %s539_s2, %s539_s2 }
  0x4d   : > { %p3412_p8 = scmp.lt.s32.totalorder %s3410_s21, %s3403_s0 }
  0x4e   : > { %p3406_p2 = pnand %p3404_p13, %p3870_p1 }
  0x4f   : > { %p3413_p5 = por %p3412_p8, %p3411_p6 }
  0x50   : > { %p3407_p4 = pneg %p3406_p2 }
  0x52   : > { %p3414_p3 = pnand %p3413_p5, %p3407_p4 }
  0x54   : > { %3417 = shalt.err (!%p3414_p3)
}
  0x55   : > { %3145 = dma.hbm_to_vmem [thread:$0]  (!%p3864_p0), %s4369_s8, 16, %s539_s2, [#allocation18]  }
  0x56   : > { %s3666_s20 = smov [#allocation5]   ;;  %s3667_s26 = smov [#allocation10]  }
  0x57   : > { %s455_s15 = sshll.u32 %s3666_s20, 4  ;;  %s476_s19 = sshll.u32 %s3667_s26, 4  ;;  %s456_s15 = int_to_ptr.vmem [resolvable:$true] %s455_s15  ;;  %s477_s19 = int_to_ptr.vmem [resolvable:$true] %s476_s19 }
  0x58   : > { %s3429_s9 = scalar_lea.vmem %s456_s15, 16  ;;  %s3436_s0 = scalar_lea.vmem %s456_s15, 32 }
  0x59   : > { %p3430_p7 = scmp.ne.s32.totalorder %s456_s15, %s3429_s9  ;;  %p3437_p11 = scmp.lt.s32.totalorder %s456_s15, %s456_s15 }
  0x5a   : > { %p3438_p13 = scmp.lt.s32.totalorder %s3436_s0, %s3429_s9 }
  0x5b   : > { %p3432_p12 = pnand %p3430_p7, %p3870_p1 }
  0x5c   : > { %p3439_p2 = por %p3438_p13, %p3437_p11 }
  0x5d   : > { %p3433_p9 = pneg %p3432_p12 }
  0x5f   : > { %p3440_p4 = pnand %p3439_p2, %p3433_p9 }
  0x61   : > { %3443 = shalt.err (!%p3440_p4)
}
  0x62   : > { %s4414_s24 = sld [smem:[#allocation36_spill]]  ;;  %s3455_s22 = scalar_lea.vmem %s477_s19, 256 }
  0x63   : > { %p3456_p6 = scmp.ne.s32.totalorder %s477_s19, %s3455_s22  ;;  %p3463_p3 = scmp.lt.s32.totalorder %s477_s19, %s477_s19 }
  0x64   : > { %p3464_p7 = scmp.lt.s32.totalorder %s3455_s22, %s3455_s22 }
  0x65   : > { %p3458_p8 = pnand %p3456_p6, %p3870_p1 }
  0x66   : > { %p3465_p12 = por %p3464_p7, %p3463_p3 }
  0x67   : > { %p3459_p5 = pneg %p3458_p8 }
  0x68   : > { %3124 = dma.hbm_to_vmem [thread:$0]  (!%p3864_p0), %s4414_s24, 16, %s456_s15, [#allocation6]  }
  0x69   : > { %p3466_p10 = pnand %p3465_p12, %p3459_p5 }
  0x6b   : > { %3469 = shalt.err (!%p3466_p10)
}
  0x6c   : > { %s3668_s20 = smov 64   ;;  %s3669_s26 = smov 4  }
  0x6d   : > { %3130 = dma.hbm_to_vmem [thread:$0]  (!%p3864_p0), %s4364_s3, 256, %s477_s19, [#allocation9], %s3668_s20, %s3668_s20, %s3669_s26  }
  0x6e   : > { %s3670_s0 = smov [#allocation13]   ;;  %s3671_s2 = smov [#allocation16]  }
  0x6f   : > { %s500_s21 = sshll.u32 %s3670_s0, 4  ;;  %s524_s24 = sshll.u32 %s3671_s2, 4  ;;  %s501_s21 = int_to_ptr.vmem [resolvable:$true] %s500_s21  ;;  %s525_s24 = int_to_ptr.vmem [resolvable:$true] %s524_s24 }
  0x70   : > { %s3481_s22 = scalar_lea.vmem %s501_s21, 256  ;;  %p3489_p13 = scmp.lt.s32.totalorder %s501_s21, %s501_s21 }
  0x71   : > { %p3482_p9 = scmp.ne.s32.totalorder %s501_s21, %s3481_s22  ;;  %p3490_p2 = scmp.lt.s32.totalorder %s3481_s22, %s3481_s22 }
  0x73   : > { %p3484_p10 = pnand %p3482_p9, %p3870_p1  ;;  %p3491_p4 = por %p3490_p2, %p3489_p13 }
  0x75   : > { %p3485_p11 = pneg %p3484_p10 }
  0x77   : > { %p3492_p6 = pnand %p3491_p4, %p3485_p11 }
  0x79   : > { %3495 = shalt.err (!%p3492_p6)
}
  0x7a   : > { %3136 = dma.hbm_to_vmem [thread:$0]  (!%p3864_p0), %s4366_s5, 256, %s501_s21, [#allocation12], %s3668_s20, %s3668_s20, %s3669_s26  }
  0x7b   : > { %s3507_s9 = scalar_lea.vmem %s525_s24, 256  ;;  %p3515_p7 = scmp.lt.s32.totalorder %s525_s24, %s525_s24 }
  0x7c   : > { %p3508_p8 = scmp.ne.s32.totalorder %s525_s24, %s3507_s9  ;;  %p3516_p12 = scmp.lt.s32.totalorder %s3507_s9, %s3507_s9 }
  0x7e   : > { %p3510_p5 = pnand %p3508_p8, %p3870_p1  ;;  %p3517_p9 = por %p3516_p12, %p3515_p7 }
  0x80   : > { %p3511_p3 = pneg %p3510_p5 }
  0x82   : > { %p3518_p10 = pnand %p3517_p9, %p3511_p3 }
  0x84   : > { %3521 = shalt.err (!%p3518_p10)
}
  0x85   : > { %3142 = dma.hbm_to_vmem [thread:$0]  (!%p3864_p0), %s4368_s7, 256, %s525_s24, [#allocation15], %s3668_s20, %s3668_s20, %s3669_s26  }
  0x86   : > { %s3672_s21 = smov [#allocation19]  }
  0x87   : > { %s560_s22 = sshll.u32 %s3672_s21, 4  ;;  %s561_s22 = int_to_ptr.vmem [resolvable:$true] %s560_s22 }
  0x88   : > { %s3533_s19 = scalar_lea.vmem %s561_s22, 256  ;;  %p3541_p4 = scmp.lt.s32.totalorder %s561_s22, %s561_s22 }
  0x89   : > { %p3534_p11 = scmp.ne.s32.totalorder %s561_s22, %s3533_s19  ;;  %p3542_p6 = scmp.lt.s32.totalorder %s3533_s19, %s3533_s19 }
  0x8b   : > { %p3536_p13 = pnand %p3534_p11, %p3870_p1  ;;  %p3543_p8 = por %p3542_p6, %p3541_p4 }
  0x8d   : > { %p3537_p2 = pneg %p3536_p13 }
  0x8f   : > { %p3544_p5 = pnand %p3543_p8, %p3537_p2 }
  0x91   : > { %3547 = shalt.err (!%p3544_p5)
}
  0x92   : > { %3148 = dma.hbm_to_vmem [thread:$0]  (!%p3864_p0), %s4374_s13, 256, %s561_s22, [#allocation18], %s3668_s20, %s3668_s20, %s3669_s26  }
  0x93   : > { %p4415_p3 = scmp.ne.s32.totalorder %s4408_s1, 0 }
  0x94   : > { %p4416_p1 = scmp.ne.s32.totalorder (!%p4415_p3), %s4409_s29, 0 }
  0x95   : > { %593 = sbr.rel (%p4415_p3) target bundleno = 3039 (0xbdf), region = 88 }
  0x9a   : > { %3607 = dma.done.wait (%p4416_p1), [#allocation6], 16  }
  0x9b   : > { %3609 = vsyncadd (%p4416_p1), [#allocation6], 4294967280 }
  0x9c   : > { %3611 = dma.done.wait (%p4416_p1), [#allocation9], 272  }
  0x9d   : > { %3613 = vsyncadd (%p4416_p1), [#allocation9], 4294967024 }
  0x9e   : > { %3615 = dma.done.wait (%p4416_p1), [#allocation12], 272  }
  0x9f   : > { %3617 = vsyncadd (%p4416_p1), [#allocation12], 4294967024 }
  0xa0   : > { %3619 = dma.done.wait (%p4416_p1), [#allocation15], 272  }
  0xa1   : > { %3621 = vsyncadd (%p4416_p1), [#allocation15], 4294967024 }
  0xa2   : > { %3623 = dma.done.wait (%p4416_p1), [#allocation18], 272  }
  0xa3   : > { %3625 = vsyncadd (%p4416_p1), [#allocation18], 4294967024  ;;  %s674_s17 = sand.u32 1, %s3636_s25   ;;  %p677_p0 = scmp.lt.s32.totalorder %s3648_s28, 1  ;;  %v3978_v0 = vld [vmem:[#allocation5] ss:$0 sm:$0xff] }
  0xa4   : > { %s3975_s1 = sshll.u32 %s674_s17, 3  ;;  %v3980_v1 = vld [vmem:[#allocation8] ss:$0 sm:$0xff]  ;;  %v3985_v2 = vld [vmem:[%s4372_s11] ss:$0 sm:$0xff]  ;;  %s4417_s2 = sld [smem:[#allocation35_spill]] }
  0xa5   : > { %s678_s18 = scalar_select %p677_p0, %s3648_s28, 1  ;;  %v3995_v3 = vld [vmem:[%s4373_s12] ss:$0 sm:$0xff] }
  0xa6   : > { %v3997_v4 = vld [vmem:[#allocation11] ss:$0 sm:$0xff]  ;;  %s676_s29 = scalar_lea.vmem [#allocation20], %s3975_s1  ;;  %p2853_p7 = scmp.ne.s32.totalorder %s3644_s27, 0 }
  0xa7   : > { %s3081_s20 = smul.u32 24, %s678_s18  ;;  %v4002_v5 = vld [vmem:[%s4371_s10] ss:$0 sm:$0xff]  ;;  %s3673_s0 = smov (!%p2853_p7), 120  }
  0xa8   : > { %v4007_v6 = vld [vmem:[%s4375_s14] ss:$0 sm:$0xff]  ;;  %694 = sbr.rel (%p2853_p7) target bundleno = 866 (0x362), region = 128  ;;  %s3675_s22 = smov (!%p2853_p7), 104  }
  0xa9   : > { %v4012_v7 = vld [vmem:[%s4377_s16] ss:$0 sm:$0xff] }
  0xaa   : > { %s3990_s21 = scalar_lea.vmem %s4417_s2, %s3081_s20  ;;  %s3674_s2 = smov (!%p2853_p7), 112  }
  0xad   : > { %v695_v8 = vld [vmem:[%s3990_s21] sm:$0xff]  ;;  %vm698_vm0 = vcmask 261120   ;;  %v697_v9 = vld [vmem:[%s3990_s21 + $0x10] sm:$0xff]  ;;  %v696_v10 = vld [vmem:[%s3990_s21 + $0x8] sm:$0xff]  ;;  %vm770_vm1 = vcmask 257024   ;;  %vm1483_vm2 = vcmask 60416  }
  0xae   : > { %v699_v11 = vsel %vm698_vm0, %v695_v8, 0.0  ;;  %v705_v12 = vsel %vm698_vm0, %v697_v9, 0.0  ;;  %v702_v13 = vsel %vm698_vm0, %v696_v10, 0.0  ;;  %v3264_v29 = vld [vmem:[#allocation13 + $0x8] sm:$0xff]   ;;  %v3265_v30 = vld [vmem:[#allocation16 + $0x8] sm:$0xff]   ;;  %v3267_v32 = vld [vmem:[#allocation16] sm:$0xff]  }
  0xaf   : > { %700 = vadd.xlane.f32.xlu0 %v699_v11  ;;  %706 = vadd.xlane.f32.xlu1 %v705_v12  ;;  %v3266_v31 = vld [vmem:[#allocation13] sm:$0xff]   ;;  %vm954_vm3 = vcmask 191488  }
  0xb0   : > { %2973 = vmatprep.subr.bf16.mxu0 %v3264_v29  ;;  %2981 = vmatprep.subr.bf16.mxu1 %v3265_v30  ;;  %v2864_v58 = vld [vmem:[#allocation17] ss:$0 sm:$0xff] }
  0xb1   : > { %2974 = vmatpush3.bf16.msra.mxu0 %v3264_v29  ;;  %2982 = vmatpush3.bf16.msra.mxu1 %v3265_v30  ;;  %v3678_v30 = vmov 0  }
  0xb2   : > { %2975 = vmatprep.subr.bf16.mxu0 %v3266_v31  ;;  %2983 = vmatprep.subr.bf16.mxu1 %v3267_v32 }
  0xb3   : > { %703 = vadd.xlane.f32.xlu0 %v702_v13 }
  0xb5   : > { %2976 = vmatpush3.bf16.msra.mxu0 %v3266_v31  ;;  %2984 = vmatpush3.bf16.msra.mxu1 %v3267_v32 }
 0x138   : > { %v701_v14 = vpop.xlane.xlu0 %700  ;;  %v707_v15 = vpop.xlane.xlu1 %706 }
 0x139   : > { %v709_v16 = vmul.f32 0.03125, %v701_v14  ;;  %v711_v17 = vmul.f32 0.03125, %v707_v15  ;;  %v2859_v14 = vld [vmem:[#allocation14] ss:$0 sm:$0xff] }
 0x13b   : > { %v712_v18 = vsub.f32 %v695_v8, %v709_v16  ;;  %v714_v19 = vsub.f32 %v697_v9, %v711_v17 }
 0x13c   : > { %v704_v20 = vpop.xlane.xlu0 %703 }
 0x13d   : > { %v710_v21 = vmul.f32 0.03125, %v704_v20  ;;  %v715_v22 = vmul.f32 %v712_v18, %v712_v18  ;;  %v717_v23 = vmul.f32 %v714_v19, %v714_v19  ;;  %v3676_v20 = vmov 1983009808  }
 0x13f   : > { %v713_v24 = vsub.f32 %v696_v10, %v710_v21  ;;  %v718_v25 = vsel %vm698_vm0, %v715_v22, 0.0  ;;  %v724_v26 = vsel %vm698_vm0, %v717_v23, 0.0  ;;  %v980_v21 = vunpack.c.l.s4 %v3676_v20 }
 0x140   : > { %719 = vadd.xlane.f32.xlu1 %v718_v25  ;;  %v982_v22 = vlaneseq  ;;  %v3677_v23 = vmov 1934713408  }
 0x141   : > { %v716_v27 = vmul.f32 %v713_v24, %v713_v24  ;;  %v981_v25 = vunpack.c.0.s8 %v980_v21 }
 0x143   : > { %v721_v28 = vsel %vm698_vm0, %v716_v27, 0.0 }
 0x144   : > { %725 = vadd.xlane.f32.xlu1 %v724_v26  ;;  %722 = vadd.xlane.f32.xlu0 %v721_v28  ;;  %v983_v26 = vshrl.u32 %v982_v22, 7 }
 0x146   : > { %v4037_v29 = vsub.s32 %v981_v25, %v983_v26 }
 0x1c9   : > { %v720_v33 = vpop.xlane.xlu1 %719 }
 0x1ca   : > { %v727_v34 = vmul.f32 0.03125, %v720_v33 }
 0x1cc   : > { %v730_v35 = vadd.f32 1e-05, %v727_v34 }
 0x1cd   : > { %v726_v36 = vpop.xlane.xlu1 %725  ;;  %v723_v37 = vpop.xlane.xlu0 %722 }
 0x1ce   : > { %3268 = vrsqrt.f32 %v730_v35  ;;  %v729_v38 = vmul.f32 0.03125, %v726_v36  ;;  %v728_v39 = vmul.f32 0.03125, %v723_v37 }
 0x1d0   : > { %v732_v40 = vadd.f32 1e-05, %v729_v38  ;;  %v731_v41 = vadd.f32 1e-05, %v728_v39 }
 0x1d2   : > { %3270 = vrsqrt.f32 %v732_v40 }
 0x1d3   : > { %3272 = vrsqrt.f32 %v731_v41 }
 0x1db   : > { %v3269_v42 = vpop.eup %3268 }
 0x1dc   : > { %v736_v43 = vmul.f32 %v3269_v42, %v712_v18 }
 0x1de   : > { %v745_v44 = vmul.f32 %v3978_v0, %v736_v43 }
 0x1df   : > { %v3271_v45 = vpop.eup %3270 }
 0x1e0   : > { %v3273_v46 = vpop.eup %3272  ;;  %v754_v47 = vadd.f32 %v3980_v1, %v745_v44  ;;  %v738_v48 = vmul.f32 %v3271_v45, %v714_v19 }
 0x1e1   : > { %v737_v49 = vmul.f32 %v3273_v46, %v713_v24  ;;  %v1011_v24 = vunpack.c.l.s4 %v3677_v23 }
 0x1e2   : > { %v2928_v50 = vpack.c.bf16 %v754_v47, %v754_v47  ;;  %v747_v51 = vmul.f32 %v3978_v0, %v738_v48 }
 0x1e3   : > { %v746_v52 = vmul.f32 %v3978_v0, %v737_v49  ;;  %v1012_v28 = vunpack.c.0.s8 %v1011_v24 }
 0x1e4   : > { %771 = vst.msk [vmem:[#allocation4] sm:$0xf] %vm770_vm1, %v2928_v50  ;;  %v756_v53 = vadd.f32 %v3980_v1, %v747_v51 }
 0x1e5   : > { %v755_v54 = vadd.f32 %v3980_v1, %v746_v52  ;;  %v4040_v34 = vsub.s32 %v1012_v28, %v983_v26 }
 0x1e6   : > { %v758_v55 = vpack.c.bf16 %v756_v53, %v756_v53 }
 0x1e7   : > { %v757_v56 = vpack.c.bf16 %v755_v54, %v754_v47  ;;  %v2929_v57 = vpack.c.bf16 %v755_v54, %v755_v54 }
 0x1e8   : > { %773 = vst.msk [vmem:[#allocation4 + $0x8] sm:$0xf] %vm770_vm1, %v758_v55 }
 0x1e9   : > { %772 = vst.msk [vmem:[#allocation4 + $0x4] sm:$0xf] %vm770_vm1, %v2929_v57  ;;  %2977 = vmatprep.mubr.msk.bf16.mxu0 %vm698_vm0, %v757_v56  ;;  %2985 = vmatprep.mubr.msk.bf16.mxu1 %vm698_vm0, %v757_v56 }
 0x1ea   : > { %2978 = vmatmul.mubr.msk.bf16.vlgmr.msra.gmra.mxu0 %vm698_vm0, %v758_v55  ;;  %2986 = vmatmul.mubr.msk.bf16.vlgmr.msra.gmra.mxu1 %vm698_vm0, %v758_v55 }
 0x2aa   : > { %v2979_v59 = vpop.f32.mrf.mxu0  ;;  %v2987_v60 = vpop.f32.mrf.mxu1 }
 0x2ab   : > { %v917_v61 = vadd.f32 %v2987_v60, %v2864_v58  ;;  %v846_v17 = vadd.f32 %v2979_v59, %v2859_v14 }
 0x2ac   : > { %v837_v62 = vpop.f32.mrf.mxu0  ;;  %v908_v63 = vpop.f32.mrf.mxu1 }
 0x2ad   : > { %v960_v0 = vpack.c.bf16 %v917_v61, %v917_v61  ;;  %v909_v10 = vadd.f32 %v2864_v58, %v908_v63  ;;  %v838_v16 = vadd.f32 %v2859_v14, %v837_v62  ;;  %v923_v19 = vpack.c.bf16 %v846_v17, %v846_v17 }
 0x2ae   : > { %v2980_v1 = vpop.f32.mrf.mxu0  ;;  %v2988_v8 = vpop.f32.mrf.mxu1 }
 0x2af   : > { %965 = vrot.lane.b32.xlu1 %v960_v0, %s3673_s0  ;;  %v4050_v45 = vrot.slane %v960_v0, %v4037_v29 }
 0x2b0   : > { %v911_v9 = vpop.f32.mrf.mxu1  ;;  %v840_v13 = vpop.f32.mrf.mxu0 }
 0x2b1   : > { %v912_v11 = vadd.f32 %v2864_v58, %v911_v9  ;;  %v841_v15 = vadd.f32 %v2859_v14, %v840_v13 }
 0x2b3   : > { %v959_v12 = vpack.c.bf16 %v912_v11, %v909_v10  ;;  %v922_v18 = vpack.c.bf16 %v841_v15, %v838_v16 }
 0x2b5   : > { %968 = vrot.lane.b32.xlu1 %v959_v12, %s3674_s2  ;;  %963 = vrot.lane.b32.xlu0 %v959_v12, %s3673_s0  ;;  %v978_v31 = vcombine.high %v959_v12, %v3678_v30  ;;  %v985_v35 = vrot.slane %v959_v12, %v4037_v29 }
 0x2b7   : > { %v992_v39 = vrot.slane %v978_v31, %v4037_v29 }
 0x2b9   : > { %973 = vrot.lane.b32.xlu1 %v959_v12, %s3675_s22  ;;  %970 = vrot.lane.b32.xlu0 %v960_v0, %s3674_s2 }
 0x2bd   : > { %975 = vrot.lane.b32.xlu1 %v960_v0, %s3675_s22 }
 0x2d7   : > { %924 = vxpose.xlu0.c.b16.start [1/2] (short) (narrow) %v922_v18, 32 }
 0x2db   : > { %925 = vxpose.xlu0.c.b16.end [2/2] (short) (narrow) %v923_v19, 32 }
 0x321   : > { %v4035_v27 = vpop.permute.xlu1 %965 }
 0x327   : > { %v969_v32 = vpop.permute.xlu1 %968  ;;  %v964_v33 = vpop.permute.xlu0 %963 }
 0x328   : > { %v993_v36 = vcombine.high %v969_v32, %v3678_v30  ;;  %v1000_v37 = vrot.slane %v969_v32, %v4037_v29  ;;  %v1044_v38 = vcombine.high %v964_v33, %v3678_v30  ;;  %v1051_v43 = vrot.slane %v964_v33, %v4037_v29 }
 0x32a   : > { %v1007_v40 = vrot.slane %v993_v36, %v4037_v29  ;;  %v1008_v41 = vcombine.low %v985_v35, %v1000_v37  ;;  %v1009_v42 = vcombine.high %v985_v35, %v1000_v37  ;;  %v1058_v51 = vrot.slane %v1044_v38, %v4037_v29 }
 0x32b   : > { %v974_v44 = vpop.permute.xlu1 %973  ;;  %v971_v46 = vpop.permute.xlu0 %970 }
 0x32c   : > { %v1016_v47 = vrot.slane %v1008_v41, %v4040_v34  ;;  %v1023_v48 = vrot.slane %v1009_v42, %v4040_v34  ;;  %v1024_v49 = vcombine.low %v992_v39, %v1007_v40  ;;  %v1025_v50 = vcombine.high %v992_v39, %v1007_v40 }
 0x32d   : > { %v1059_v52 = vcombine.high %v974_v44, %v3678_v30  ;;  %v1066_v53 = vrot.slane %v974_v44, %v4037_v29  ;;  %v4058_v54 = vrot.slane %v971_v46, %v4037_v29 }
 0x32e   : > { %v1032_v55 = vrot.slane %v1024_v49, %v4040_v34  ;;  %v1039_v56 = vrot.slane %v1025_v50, %v4040_v34  ;;  %v1040_v57 = vcombine.high %v1016_v47, %v3678_v30  ;;  %v1041_v58 = vcombine.high %v1023_v48, %v3678_v30 }
 0x32f   : > { %v1181_v59 = vshrl.u32 %v1016_v47, 16  ;;  %v1197_v60 = vshrl.u32 %v1023_v48, 16  ;;  %v1073_v61 = vrot.slane %v1059_v52, %v4037_v29  ;;  %v1074_v62 = vcombine.low %v1051_v43, %v1066_v53 }
 0x330   : > { %v1042_v63 = vcombine.high %v1032_v55, %v3678_v30  ;;  %v1043_v0 = vcombine.high %v1039_v56, %v3678_v30  ;;  %v1189_v1 = vshrl.u32 %v1040_v57, 16  ;;  %v1205_v8 = vshrl.u32 %v1041_v58, 16 }
 0x331   : > { %v1213_v9 = vshrl.u32 %v1032_v55, 16  ;;  %v1229_v10 = vshrl.u32 %v1039_v56, 16  ;;  %v1075_v11 = vcombine.high %v1051_v43, %v1066_v53  ;;  %v1082_v12 = vrot.slane %v1074_v62, %v4040_v34 }
 0x332   : > { %v1221_v13 = vshrl.u32 %v1042_v63, 16  ;;  %v1237_v14 = vshrl.u32 %v1043_v0, 16  ;;  %v1090_v15 = vcombine.low %v1058_v51, %v1073_v61  ;;  %v1091_v16 = vcombine.high %v1058_v51, %v1073_v61 }
 0x333   : > { %v1089_v17 = vrot.slane %v1075_v11, %v4040_v34  ;;  %v1106_v18 = vcombine.high %v1082_v12, %v3678_v30  ;;  %v1179_v19 = vpack.i.b16 %v1082_v12, %v1016_v47  ;;  %v1182_v20 = vshrl.u32 %v1082_v12, 16 }
 0x334   : > { %v1098_v21 = vrot.slane %v1090_v15, %v4040_v34  ;;  %v1105_v22 = vrot.slane %v1091_v16, %v4040_v34  ;;  %v1125_v23 = vcombine.low %v4050_v45, %v4058_v54  ;;  %v1126_v24 = vcombine.high %v4050_v45, %v4058_v54 }
 0x335   : > { %v1107_v25 = vcombine.high %v1089_v17, %v3678_v30  ;;  %v1183_v26 = vpack.i.b16 %v1182_v20, %v1181_v59  ;;  %v1187_v28 = vpack.i.b16 %v1106_v18, %v1040_v57  ;;  %v1190_v31 = vshrl.u32 %v1106_v18, 16 }
 0x336   : > { %v1108_v32 = vcombine.high %v1098_v21, %v3678_v30  ;;  %v1109_v33 = vcombine.high %v1105_v22, %v3678_v30  ;;  %v1195_v35 = vpack.i.b16 %v1089_v17, %v1023_v48  ;;  %v1198_v36 = vshrl.u32 %v1089_v17, 16 }
 0x337   : > { %v1191_v37 = vpack.i.b16 %v1190_v31, %v1189_v1  ;;  %v1203_v38 = vpack.i.b16 %v1107_v25, %v1041_v58  ;;  %v1206_v39 = vshrl.u32 %v1107_v25, 16  ;;  %v1211_v40 = vpack.i.b16 %v1098_v21, %v1032_v55 }
 0x338   : > { %v1199_v41 = vpack.i.b16 %v1198_v36, %v1197_v60  ;;  %v1214_v42 = vshrl.u32 %v1098_v21, 16  ;;  %v1219_v43 = vpack.i.b16 %v1108_v32, %v1042_v63  ;;  %v1222_v44 = vshrl.u32 %v1108_v32, 16 }
 0x339   : > { %v1207_v45 = vpack.i.b16 %v1206_v39, %v1205_v8  ;;  %v1227_v46 = vpack.i.b16 %v1105_v22, %v1039_v56  ;;  %v1230_v47 = vshrl.u32 %v1105_v22, 16  ;;  %v1235_v49 = vpack.i.b16 %v1109_v33, %v1043_v0  ;;  %v932_v62 = vpop.trf.xlu0 }
 0x33a   : > { %v1215_v50 = vpack.i.b16 %v1214_v42, %v1213_v9  ;;  %v1223_v51 = vpack.i.b16 %v1222_v44, %v1221_v13  ;;  %v1238_v52 = vshrl.u32 %v1109_v33, 16  ;;  %v1273_v53 = vcombine.low %v1179_v19, %v1195_v35 }
 0x33b   : > { %v1231_v54 = vpack.i.b16 %v1230_v47, %v1229_v10  ;;  %v1281_v57 = vcombine.low %v1187_v28, %v1203_v38  ;;  %v1289_v48 = vcombine.low %v1211_v40, %v1227_v46  ;;  %v1297_v59 = vcombine.low %v1219_v43, %v1235_v49 }
 0x33c   : > { %v1239_v61 = vpack.i.b16 %v1238_v52, %v1237_v14  ;;  %v1280_v58 = vrot.slane %v1273_v53, %v4037_v29  ;;  %v1323_v55 = vcombine.low %v1183_v26, %v1199_v41  ;;  %v1331_v60 = vcombine.low %v1191_v37, %v1207_v45  ;;  %v976_v14 = vpop.permute.xlu1 %975 }
 0x33d   : > { %v1288_v63 = vrot.slane %v1281_v57, %v4037_v29  ;;  %v1296_v56 = vrot.slane %v1289_v48, %v4037_v29  ;;  %v1304_v0 = vrot.slane %v1297_v59, %v4037_v29  ;;  %v1339_v1 = vcombine.low %v1215_v50, %v1231_v54  ;;  %v933_v26 = vpop.trf.xlu0 }
 0x33e   : > { %v1330_v8 = vrot.slane %v1323_v55, %v4037_v29  ;;  %v1338_v9 = vrot.slane %v1331_v60, %v4037_v29  ;;  %v1347_v10 = vcombine.low %v1223_v51, %v1239_v61  ;;  %v4086_v11 = vrot.slane %v1125_v23, %v4040_v34 }
 0x33f   : > { %v1305_v12 = vcombine.low %v1280_v58, %v1288_v63  ;;  %v1313_v13 = vcombine.low %v1296_v56, %v1304_v0  ;;  %v1346_v15 = vrot.slane %v1339_v1, %v4037_v29  ;;  %v4093_v20 = vrot.slane %v1126_v24, %v4040_v34 }
 0x340   : > { %v1354_v16 = vrot.slane %v1347_v10, %v4037_v29  ;;  %v1355_v17 = vcombine.low %v1330_v8, %v1338_v9  ;;  %v1150_v21 = vrot.slane %v4035_v27, %v4037_v29  ;;  %v4099_v23 = vcombine.high %v4086_v11, %v3678_v30 }
 0x341   : > { %v1312_v18 = vrot.slane %v1305_v12, %v4040_v34  ;;  %v1320_v19 = vrot.slane %v1313_v13, %v4040_v34  ;;  %v1158_v25 = vrot.slane %v976_v14, %v4037_v29  ;;  %v2869_v33 = vcombine.low %v932_v62, %v932_v62 }
 0x342   : > { %v1363_v22 = vcombine.low %v1346_v15, %v1354_v16  ;;  %v1362_v32 = vrot.slane %v1355_v17, %v4040_v34  ;;  %v2870_v37 = vcombine.high %v932_v62, %v932_v62  ;;  %v1142_v27 = vcombine.high %v4093_v20, %v3678_v30 }
 0x343   : > { %v1321_v28 = vcombine.low %v1312_v18, %v1320_v19  ;;  %v1322_v31 = vcombine.high %v1312_v18, %v1320_v19  ;;  %v1159_v35 = vcombine.low %v1150_v21, %v1158_v25  ;;  %v1160_v36 = vcombine.high %v1150_v21, %v1158_v25  ;;  %955 = vst.msk [vmem:[#allocation2] sm:$0xf] %vm954_vm3, %v2869_v33 }
 0x344   : > { %v1370_v24 = vrot.slane %v1363_v22, %v4040_v34  ;;  %v1245_v38 = vshrl.u32 %v4086_v11, 16  ;;  %v2871_v39 = vcombine.low %v933_v26, %v933_v26  ;;  %v2872_v40 = vcombine.high %v933_v26, %v933_v26  ;;  %956 = vst.msk [vmem:[#allocation2 + $0x4] sm:$0xf] %vm954_vm3, %v2870_v37 }
 0x345   : > { %v1167_v43 = vrot.slane %v1159_v35, %v4040_v34  ;;  %v1174_v44 = vrot.slane %v1160_v36, %v4040_v34  ;;  %v1426_v45 = vshrl.u32 %v1321_v28, 16  ;;  %v1432_v46 = vshrl.u32 %v1322_v31, 16 }
 0x346   : > { %v1371_v41 = vcombine.low %v1362_v32, %v1370_v24  ;;  %v1372_v42 = vcombine.high %v1362_v32, %v1370_v24  ;;  %v1253_v47 = vshrl.u32 %v4099_v23, 16  ;;  %v1261_v49 = vshrl.u32 %v4093_v20, 16  ;;  %957 = vst.msk [vmem:[#allocation2 + $0x8] sm:$0xf] %vm954_vm3, %v2871_v39  ;;  %958 = vst.msk [vmem:[#allocation2 + $0xc] sm:$0xf] %vm954_vm3, %v2872_v40 }
 0x347   : > { %v1175_v54 = vcombine.high %v1167_v43, %v3678_v30  ;;  %v1176_v57 = vcombine.high %v1174_v44, %v3678_v30  ;;  %v1243_v48 = vpack.i.b16 %v1167_v43, %v4086_v11  ;;  %v1246_v59 = vshrl.u32 %v1167_v43, 16 }
 0x348   : > { %v1425_v50 = vpack.i.b16 %v1371_v41, %v1321_v28  ;;  %v1427_v51 = vshrl.u32 %v1371_v41, 16  ;;  %v1431_v52 = vpack.i.b16 %v1372_v42, %v1322_v31  ;;  %v1433_v53 = vshrl.u32 %v1372_v42, 16 }
 0x349   : > { %v1247_v56 = vpack.i.b16 %v1246_v59, %v1245_v38  ;;  %v1251_v0 = vpack.i.b16 %v1175_v54, %v4099_v23  ;;  %v1254_v11 = vshrl.u32 %v1175_v54, 16  ;;  %v1259_v12 = vpack.i.b16 %v1174_v44, %v4093_v20 }
 0x34a   : > { %v1428_v61 = vpack.i.b16 %v1427_v51, %v1426_v45  ;;  %v1434_v58 = vpack.i.b16 %v1433_v53, %v1432_v46  ;;  %v2873_v55 = vcombine.low %v1425_v50, %v1425_v50  ;;  %v2874_v60 = vcombine.high %v1425_v50, %v1425_v50 }
 0x34b   : > { %v2879_v62 = vcombine.low %v1431_v52, %v1431_v52  ;;  %v2880_v63 = vcombine.high %v1431_v52, %v1431_v52  ;;  %v1262_v13 = vshrl.u32 %v1174_v44, 16  ;;  %v1267_v14 = vpack.i.b16 %v1176_v57, %v1142_v27 }
 0x34c   : > { %v2876_v1 = vcombine.low %v1428_v61, %v1428_v61  ;;  %v2877_v8 = vcombine.high %v1428_v61, %v1428_v61  ;;  %v2882_v9 = vcombine.low %v1434_v58, %v1434_v58  ;;  %v2883_v10 = vcombine.high %v1434_v58, %v1434_v58  ;;  %1484 = vst.msk [vmem:[#allocation3] sm:$0xf] %vm1483_vm2, %v2873_v55 }
 0x34d   : > { %1485 = vst.msk [vmem:[#allocation3 + $0x4] sm:$0xf] %vm1483_vm2, %v2874_v60  ;;  %1490 = vst.msk [vmem:[#allocation3 + $0x18] sm:$0xf] %vm1483_vm2, %v2879_v62  ;;  %v1269_v15 = vshrl.u32 %v1142_v27, 16  ;;  %v1270_v16 = vshrl.u32 %v1176_v57, 16  ;;  %v1255_v17 = vpack.i.b16 %v1254_v11, %v1253_v47  ;;  %v1263_v18 = vpack.i.b16 %v1262_v13, %v1261_v49 }
 0x34e   : > { %1491 = vst.msk [vmem:[#allocation3 + $0x1c] sm:$0xf] %vm1483_vm2, %v2880_v63  ;;  %1487 = vst.msk [vmem:[#allocation3 + $0xc] sm:$0xf] %vm1483_vm2, %v2876_v1  ;;  %v1373_v19 = vcombine.low %v1243_v48, %v1259_v12  ;;  %v1381_v21 = vcombine.low %v1251_v0, %v1267_v14 }
 0x34f   : > { %1488 = vst.msk [vmem:[#allocation3 + $0x10] sm:$0xf] %vm1483_vm2, %v2877_v8  ;;  %1493 = vst.msk [vmem:[#allocation3 + $0x24] sm:$0xf] %vm1483_vm2, %v2882_v9  ;;  %v1271_v22 = vpack.i.b16 %v1270_v16, %v1269_v15  ;;  %v1398_v25 = vcombine.low %v1247_v56, %v1263_v18 }
 0x350   : > { %1494 = vst.msk [vmem:[#allocation3 + $0x28] sm:$0xf] %vm1483_vm2, %v2883_v10  ;;  %v1380_v23 = vrot.slane %v1373_v19, %v4037_v29  ;;  %v1388_v20 = vrot.slane %v1381_v21, %v4037_v29 }
 0x351   : > { %v1406_v26 = vcombine.low %v1255_v17, %v1271_v22  ;;  %v1405_v31 = vrot.slane %v1398_v25, %v4037_v29 }
 0x352   : > { %v1389_v28 = vcombine.low %v1380_v23, %v1388_v20 }
 0x353   : > { %v1413_v32 = vrot.slane %v1406_v26, %v4037_v29 }
 0x354   : > { %v1396_v33 = vrot.slane %v1389_v28, %v4040_v34 }
 0x355   : > { %v1414_v24 = vcombine.low %v1405_v31, %v1413_v32 }
 0x356   : > { %v1397_v35 = vcombine.high %v1396_v33, %v3678_v30  ;;  %v1438_v38 = vshrl.u32 %v1396_v33, 16 }
 0x357   : > { %v1421_v36 = vrot.slane %v1414_v24, %v4040_v34 }
 0x358   : > { %v1444_v40 = vshrl.u32 %v1397_v35, 16 }
 0x359   : > { %v1422_v37 = vcombine.high %v1421_v36, %v3678_v30  ;;  %v1437_v27 = vpack.i.b16 %v1421_v36, %v1396_v33  ;;  %v1439_v39 = vshrl.u32 %v1421_v36, 16 }
 0x35b   : > { %v1440_v41 = vpack.i.b16 %v1439_v39, %v1438_v38  ;;  %v1443_v42 = vpack.i.b16 %v1422_v37, %v1397_v35  ;;  %v1445_v43 = vshrl.u32 %v1422_v37, 16  ;;  %v2875_v44 = vcombine.low %v1437_v27, %v1437_v27 }
 0x35d   : > { %v1446_v45 = vpack.i.b16 %v1445_v43, %v1444_v40  ;;  %v2878_v46 = vcombine.low %v1440_v41, %v1440_v41  ;;  %v2881_v29 = vcombine.low %v1443_v42, %v1443_v42  ;;  %1486 = vst.msk [vmem:[#allocation3 + $0x8] sm:$0xf] %vm1483_vm2, %v2875_v44 }
 0x35f   : > { %v2884_v47 = vcombine.low %v1446_v45, %v1446_v45  ;;  %1489 = vst.msk [vmem:[#allocation3 + $0x14] sm:$0xf] %vm1483_vm2, %v2878_v46  ;;  %1492 = vst.msk [vmem:[#allocation3 + $0x20] sm:$0xf] %vm1483_vm2, %v2881_v29 }
 0x361   : > { %1495 = vst.msk [vmem:[#allocation3 + $0x2c] sm:$0xf] %vm1483_vm2, %v2884_v47 }
 0x362 PF: > { %v3274_v30 = vld [vmem:[#allocation10 + $0x8] sm:$0xff]   ;;  %v3679_v34 = vmov 0.0   ;;  %v3275_v49 = vld [vmem:[#allocation10] sm:$0xff]   ;;  %vm3680_vm4 = vmmov 0   ;;  %s2885_s19 = sshll.u32 %s3644_s27, 3  ;;  %vm1526_vm5 = vcmask 261120   ;;  %v1582_v60 = vlaneseq }
 0x363   : > { %2989 = vmatprep.subr.bf16.mxu0 %v3679_v34  ;;  %2997 = vmatprep.subr.bf16.mxu1 %v3679_v34  ;;  %s1499_s15 = sshra.s32 %s2885_s19, 3  ;;  %s3681_s26 = smov 104   ;;  %v1740_v61 = vld [vmem:[#allocation2] sm:$0xf]  ;;  %vm1748_vm6 = vcmask 1043456   ;;  %v3686_v20 = vmov 0  }
 0x364   : > { %2990 = vmatpush3.bf16.msra.mxu0 %v3274_v30  ;;  %2993 = vmatprep.mubr.msk.bf16.mxu0 %vm3680_vm4, %v3679_v34  ;;  %s2886_s24 = sshll.u32 %s1499_s15, 2  ;;  %s3682_s9 = smov 120   ;;  %v1750_v58 = vsel %vm1748_vm6, %v1740_v61, 0  ;;  %v3684_v55 = vmov 1983009808   ;;  %v1583_v0 = vshrl.u32 %v1582_v60, 7 }
 0x365   : > { %2991 = vmatprep.subr.bf16.mxu0 %v3679_v34  ;;  %2999 = vmatprep.mubr.msk.bf16.mxu1 %vm3680_vm4, %v3679_v34  ;;  %s1502_s18 = scalar_lea.vmem [#allocation4], %s2886_s24  ;;  %s3683_s20 = smov 112   ;;  %v3685_v62 = vmov 1934713408   ;;  %v1741_v61 = vld [vmem:[#allocation2 + $0x4] sm:$0xf] }
 0x366   : > { %v1503_v50 = vld [vmem:[%s1502_s18] sm:$0xf]  ;;  %2998 = vmatpush3.bf16.msra.mxu1 %v1750_v58  ;;  %v1597_v63 = vunpack.c.l.s4 %v3685_v62  ;;  %vm1744_vm7 = vcmask 64512   ;;  %v1796_v62 = vsel %vm1748_vm6, %v1741_v61, 0  ;;  %vm1939_vm9 = vcmask 195584   ;;  %s4418_s22 = sld [smem:[#allocation38_spill]] }
 0x367   : > { %3003 = vmatprep.subr.bf16.mxu1 %v3679_v34  ;;  %s3687_s18 = smov 8   ;;  %vm2391_vm10 = vcmask 130048   ;;  %s4419_s0 = sld [smem:[#allocation39_spill]]  ;;  %vm2602_vm11 = vcmask 523264  }
 0x368   : > { %2992 = vmatpush3.bf16.msra.mxu0 %v3275_v49  ;;  %v1598_v1 = vunpack.c.0.s8 %v1597_v63  ;;  %s2664_s15 = sshll.u32 %s676_s29, 4  ;;  %p4423_p9 = scmp.ne.s32.totalorder %s4404_s23, 0  ;;  %s4306_s15 = int_to_ptr.vmem [resolvable:$true] %s2664_s15 }
 0x369   : > { %3021 = vmatprep.subr.bf16.mxu0 %v3679_v34 }
 0x36a   : > { %v4161_v12 = vsub.s32 %v1598_v1, %v1583_v0 }
 0x36b   : > { %2994 = vmatmul.mubr.msk.bf16.vlgmr.msra.gmra.mxu0 %vm1526_vm5, %v1503_v50 }
 0x36c   : > { %3025 = vmatprep.mubr.msk.bf16.mxu0 %vm3680_vm4, %v3679_v34 }
 0x36d   : > { %s4420_s2 = smov %s4419_s0 }
 0x42b   : > { %v1564_v51 = vpop.f32.mrf.mxu0 }
 0x42c   : > { %v1565_v52 = vadd.f32 %v3997_v4, %v1564_v51  ;;  %v1580_v4 = vunpack.c.l.s4 %v3684_v55 }
 0x42d   : > { %v2995_v53 = vpop.f32.mrf.mxu0 }
 0x42e   : > { %v1570_v54 = vmul.f32 0.35355338, %v1565_v52  ;;  %v1581_v56 = vunpack.c.0.s8 %v1580_v4 }
 0x42f   : > { %v1567_v57 = vpop.f32.mrf.mxu0 }
 0x430   : > { %v1571_v48 = vpack.c.bf16 %v1570_v54, %v1570_v54  ;;  %v4158_v8 = vsub.s32 %v1581_v56, %v1583_v0  ;;  %v1742_v56 = vld [vmem:[#allocation2 + $0x8] sm:$0xf] }
 0x431   : > { %v2996_v59 = vpop.f32.mrf.mxu0 }
 0x432   : > { %1577 = vrot.lane.b32.xlu1 %v1571_v48, %s3681_s26  ;;  %1573 = vrot.lane.b32.xlu0 %v1571_v48, %s3682_s9  ;;  %v1585_v19 = vrot.slane %v1571_v48, %v4158_v8  ;;  %s3688_s26 = smov 16   ;;  %s3689_s9 = smov 24  }
 0x436   : > { %1575 = vrot.lane.b32.xlu0 %v1571_v48, %s3683_s20  ;;  %s1497_s20 = scalar_lea.vmem %s3990_s21, %s2885_s19  ;;  %s3082_s21 = smul.u32 3, %s3648_s28 }
 0x437   : > { %s3548_s28 = scalar_lea.vmem %s4306_s15, 128 }
 0x438   : > { %s2660_s19 = sadd.s32 %s3644_s27, %s3082_s21  ;;  %s2649_s27 = scalar_lea.sflag [#allocation7], %s674_s17 }
 0x439   : > { %p3549_p12 = scmp.ne.s32.totalorder %s4306_s15, %s3548_s28  ;;  %s3690_s21 = smov [#allocation20]  }
 0x43b   : > { %p3550_p10 = pnand %p3549_p12, %p4423_p9 }
 0x43d   : > { %p3551_p11 = pneg %p3550_p10 }
 0x4a4   : > { %v1578_v9 = vpop.permute.xlu1 %1577  ;;  %v1574_v10 = vpop.permute.xlu0 %1573 }
 0x4a5   : > { %v1627_v11 = vrot.slane %v1578_v9, %v4158_v8  ;;  %v1619_v13 = vrot.slane %v1574_v10, %v4158_v8  ;;  %v1842_v9 = vsel %vm1748_vm6, %v1742_v56, 0  ;;  %v3276_v56 = vld [vmem:[#allocation3 + $0x8] ss:$0 sps:$4 sm:$0xff]  }
 0x4a7   : > { %v1628_v14 = vcombine.low %v1619_v13, %v1627_v11  ;;  %v1629_v15 = vcombine.high %v1619_v13, %v1627_v11  ;;  %v1743_v11 = vld [vmem:[#allocation2 + $0xc] sm:$0xf] }
 0x4a8   : > { %v1576_v16 = vpop.permute.xlu0 %1575 }
 0x4a9   : > { %v1636_v17 = vrot.slane %v1628_v14, %v4161_v12  ;;  %v1593_v18 = vrot.slane %v1576_v16, %v4158_v8  ;;  %v1643_v21 = vrot.slane %v1629_v15, %v4161_v12  ;;  %v1888_v15 = vsel %vm1748_vm6, %v1743_v11, 0  ;;  %v3278_v11 = vld [vmem:[#allocation3 + $0x14] ss:$0 sps:$4 sm:$0xff]  }
 0x4ab   : > { %v1594_v22 = vcombine.low %v1585_v19, %v1593_v18  ;;  %v1595_v23 = vcombine.high %v1585_v19, %v1593_v18  ;;  %v1644_v25 = vcombine.high %v1636_v17, %v3686_v20  ;;  %v1645_v31 = vcombine.high %v1643_v21, %v3686_v20 }
 0x4ac   : > { %v1651_v32 = vshrl.u32 %v1636_v17, 16  ;;  %v1667_v27 = vshrl.u32 %v1643_v21, 16  ;;  %v1931_v19 = vand.u32 127, %v1582_v60 }
 0x4ad   : > { %v1602_v26 = vrot.slane %v1594_v22, %v4161_v12  ;;  %v1609_v28 = vrot.slane %v1595_v23, %v4161_v12  ;;  %v1659_v37 = vshrl.u32 %v1644_v25, 16  ;;  %v1675_v44 = vshrl.u32 %v1645_v31, 16 }
 0x4ae   : > { %vm1932_vm8 = vcmp.lt.s32.totalorder %v1931_v19, 20 }
 0x4af   : > { %v1610_v33 = vcombine.high %v1602_v26, %v3686_v20  ;;  %v1611_v24 = vcombine.high %v1609_v28, %v3686_v20  ;;  %v1648_v35 = vpack.i.b16 %v1636_v17, %v1602_v26  ;;  %v1650_v36 = vshrl.u32 %v1602_v26, 16 }
 0x4b0   : > { %v1664_v38 = vpack.i.b16 %v1643_v21, %v1609_v28  ;;  %v1666_v39 = vshrl.u32 %v1609_v28, 16 }
 0x4b1   : > { %v1652_v40 = vpack.i.b16 %v1651_v32, %v1650_v36  ;;  %v1656_v41 = vpack.i.b16 %v1644_v25, %v1610_v33  ;;  %v1658_v42 = vshrl.u32 %v1610_v33, 16  ;;  %v1672_v43 = vpack.i.b16 %v1645_v31, %v1611_v24 }
 0x4b2   : > { %v1668_v45 = vpack.i.b16 %v1667_v27, %v1666_v39  ;;  %v1674_v46 = vshrl.u32 %v1611_v24, 16  ;;  %v1678_v29 = vcombine.low %v1648_v35, %v1664_v38 }
 0x4b3   : > { %v1660_v47 = vpack.i.b16 %v1659_v37, %v1658_v42  ;;  %v1686_v30 = vcombine.low %v1656_v41, %v1672_v43 }
 0x4b4   : > { %v1676_v49 = vpack.i.b16 %v1675_v44, %v1674_v46  ;;  %v1703_v50 = vcombine.low %v1652_v40, %v1668_v45  ;;  %v1685_v52 = vrot.slane %v1678_v29, %v4158_v8 }
 0x4b5   : > { %v1693_v51 = vrot.slane %v1686_v30, %v4158_v8 }
 0x4b6   : > { %v1711_v53 = vcombine.low %v1660_v47, %v1676_v49  ;;  %v1710_v54 = vrot.slane %v1703_v50, %v4158_v8 }
 0x4b7   : > { %v1694_v57 = vcombine.low %v1685_v52, %v1693_v51 }
 0x4b8   : > { %v1718_v48 = vrot.slane %v1711_v53, %v4158_v8 }
 0x4b9   : > { %v1701_v58 = vrot.slane %v1694_v57, %v4161_v12 }
 0x4ba   : > { %v1719_v59 = vcombine.low %v1710_v54, %v1718_v48 }
 0x4bb   : > { %v1731_v0 = vshrl.u32 %v1701_v58, 16  ;;  %v1702_v13 = vcombine.high %v1701_v58, %v3686_v20 }
 0x4bc   : > { %v1726_v55 = vrot.slane %v1719_v59, %v4161_v12 }
 0x4bd   : > { %v1737_v17 = vshrl.u32 %v1702_v13, 16 }
 0x4be   : > { %v1730_v4 = vpack.i.b16 %v1726_v55, %v1701_v58  ;;  %v1732_v63 = vshrl.u32 %v1726_v55, 16  ;;  %v1727_v10 = vcombine.high %v1726_v55, %v3686_v20 }
 0x4c0   : > { %3000 = vmatmul.mubr.msk.bf16.vlgmr.msra.gmra.mxu1 %vm1744_vm7, %v1730_v4  ;;  %v1733_v1 = vpack.i.b16 %v1732_v63, %v1731_v0  ;;  %v1736_v14 = vpack.i.b16 %v1727_v10, %v1702_v13  ;;  %v1738_v16 = vshrl.u32 %v1727_v10, 16  ;;  %v2013_v0 = vsel %vm1748_vm6, %v3276_v56, 0 }
 0x4c1   : > { %3004 = vmatpush3.bf16.msra.mxu1 %v1796_v62  ;;  %3005 = vmatprep.mubr.msk.bf16.mxu1 %vm3680_vm4, %v3679_v34  ;;  %v2068_v13 = vsel %vm1748_vm6, %v3278_v11, 0 }
 0x4c2   : > { %3009 = vmatprep.subr.bf16.mxu1 %v3679_v34  ;;  %v1739_v18 = vpack.i.b16 %v1738_v16, %v1737_v17  ;;  %3022 = vmatpush3.bf16.msra.mxu0 %v2013_v0  ;;  %v3280_v17 = vld [vmem:[#allocation3 + $0x20] ss:$0 sps:$4 sm:$0xff]  }
 0x4c3   : > { %3023 = vmatprep.subr.bf16.mxu0 %v3679_v34 }
 0x4c8   : > { %3006 = vmatmul.mubr.msk.bf16.vlgmr.msra.gmra.mxu1 %vm1744_vm7, %v1733_v1  ;;  %v3277_v1 = vld [vmem:[#allocation3] sm:$0xff]  }
 0x4c9   : > { %3010 = vmatpush3.bf16.msra.mxu1 %v1842_v9  ;;  %3011 = vmatprep.mubr.msk.bf16.mxu1 %vm3680_vm4, %v3679_v34 }
 0x4ca   : > { %3015 = vmatprep.subr.bf16.mxu1 %v3679_v34  ;;  %3024 = vmatpush3.bf16.msra.mxu0 %v3277_v1 }
 0x4cb   : > { %3037 = vmatprep.subr.bf16.mxu0 %v3679_v34 }
 0x4d0   : > { %3012 = vmatmul.mubr.msk.bf16.vlgmr.msra.gmra.mxu1 %vm1744_vm7, %v1736_v14  ;;  %v3279_v14 = vld [vmem:[#allocation3 + $0xc] sm:$0xff]  }
 0x4d1   : > { %3016 = vmatpush3.bf16.msra.mxu1 %v1888_v15  ;;  %3017 = vmatprep.mubr.msk.bf16.mxu1 %vm3680_vm4, %v3679_v34 }
 0x4d2   : > { %3029 = vmatprep.subr.bf16.mxu1 %v3679_v34 }
 0x4d8   : > { %3018 = vmatmul.mubr.msk.bf16.vlgmr.msra.gmra.mxu1 %vm1744_vm7, %v1739_v18 }
 0x4d9   : > { %3033 = vmatprep.mubr.msk.bf16.mxu1 %vm3680_vm4, %v3679_v34  ;;  %3030 = vmatpush3.bf16.msra.mxu1 %v2068_v13 }
 0x4da   : > { %3031 = vmatprep.subr.bf16.mxu1 %v3679_v34 }
 0x4dd   : > { %3032 = vmatpush3.bf16.msra.mxu1 %v3279_v14 }
 0x4de   : > { %3045 = vmatprep.subr.bf16.mxu1 %v3679_v34 }
 0x580   : > { %v1786_v21 = vpop.f32.mrf.mxu1 }
 0x581   : > { %v1935_v22 = vsel %vm1932_vm8, %v1786_v21, -1e+30 }
 0x582   : > { %v3001_v23 = vpop.f32.mrf.mxu1  ;;  %v1940_v25 = vsel %vm1939_vm9, %v1935_v22, -inf }
 0x583   : > { %1941 = vmax.xlane.f32.xlu1 %v1940_v25  ;;  %v2123_v23 = vsel %vm1748_vm6, %v3280_v17, 0  ;;  %v3281_v25 = vld [vmem:[#allocation3 + $0x18] sm:$0xff]  }
 0x584   : > { %v1789_v26 = vpop.f32.mrf.mxu1 }
 0x585   : > { %v3282_v26 = vld [vmem:[#allocation3 + $0x2c] ss:$0 sps:$4 sm:$0xff]  }
 0x586   : > { %v3002_v28 = vpop.f32.mrf.mxu1 }
 0x588   : > { %v1832_v31 = vpop.f32.mrf.mxu1 }
 0x589   : > { %v1936_v32 = vsel %vm1932_vm8, %v1832_v31, -1e+30 }
 0x58a   : > { %v3007_v33 = vpop.f32.mrf.mxu1  ;;  %v1943_v24 = vsel %vm1939_vm9, %v1936_v32, -inf }
 0x58b   : > { %1944 = vmax.xlane.f32.xlu0 %v1943_v24  ;;  %v2178_v24 = vsel %vm1748_vm6, %v3282_v26, 0 }
 0x58c   : > { %v1835_v35 = vpop.f32.mrf.mxu1 }
 0x58d   : > { %v3283_v35 = vld [vmem:[#allocation3 + $0x24] sm:$0xff]  }
 0x58e   : > { %v3008_v60 = vpop.f32.mrf.mxu1 }
 0x590   : > { %v1878_v36 = vpop.f32.mrf.mxu1 }
 0x591   : > { %v1937_v37 = vsel %vm1932_vm8, %v1878_v36, -1e+30 }
 0x592   : > { %v3013_v27 = vpop.f32.mrf.mxu1  ;;  %v1946_v38 = vsel %vm1939_vm9, %v1937_v37, -inf }
 0x593   : > { %1947 = vmax.xlane.f32.xlu0 %v1946_v38 }
 0x594   : > { %v1881_v39 = vpop.f32.mrf.mxu1 }
 0x596   : > { %v3014_v40 = vpop.f32.mrf.mxu1 }
 0x597   : > { %v3284_v40 = vld [vmem:[%s4418_s22 + $0x8] sm:$0xff]  }
 0x598   : > { %v1924_v41 = vpop.f32.mrf.mxu1 }
 0x599   : > { %v1938_v42 = vsel %vm1932_vm8, %v1924_v41, -1e+30 }
 0x59a   : > { %v3019_v43 = vpop.f32.mrf.mxu1  ;;  %v1949_v44 = vsel %vm1939_vm9, %v1938_v42, -inf }
 0x59b   : > { %1950 = vmax.xlane.f32.xlu1 %v1949_v44 }
 0x59c   : > { %v1927_v45 = vpop.f32.mrf.mxu1 }
 0x59e   : > { %v3020_v46 = vpop.f32.mrf.mxu1 }
 0x60c   : > { %v1942_v29 = vpop.xlane.xlu1 %1941 }
 0x60d   : > { %v1952_v47 = vsub.f32 %v1935_v22, %v1942_v29 }
 0x60f   : > { %v1956_v30 = vmul.f32 1.442695, %v1952_v47 }
 0x611   : > { %3292 = vpow2.f32 %v1956_v30 }
 0x614   : > { %v1945_v49 = vpop.xlane.xlu0 %1944 }
 0x615   : > { %v1953_v50 = vsub.f32 %v1936_v32, %v1945_v49 }
 0x617   : > { %v1958_v51 = vmul.f32 1.442695, %v1953_v50 }
 0x619   : > { %3294 = vpow2.f32 %v1958_v51 }
 0x61c   : > { %v1948_v52 = vpop.xlane.xlu0 %1947 }
 0x61d   : > { %v1954_v53 = vsub.f32 %v1937_v37, %v1948_v52 }
 0x61e   : > { %v3293_v54 = vpop.eup %3292 }
 0x61f   : > { %v1960_v57 = vmul.f32 1.442695, %v1954_v53  ;;  %v1964_v48 = vsel %vm1939_vm9, %v3293_v54, 0.0 }
 0x620   : > { %1965 = vadd.xlane.f32.xlu0 %v1964_v48 }
 0x621   : > { %3296 = vpow2.f32 %v1960_v57 }
 0x624   : > { %v1951_v59 = vpop.xlane.xlu1 %1950 }
 0x625   : > { %v1955_v61 = vsub.f32 %v1938_v42, %v1951_v59 }
 0x626   : > { %v3295_v58 = vpop.eup %3294 }
 0x627   : > { %v1962_v55 = vmul.f32 1.442695, %v1955_v61  ;;  %v1967_v4 = vsel %vm1939_vm9, %v3295_v58, 0.0 }
 0x628   : > { %1968 = vadd.xlane.f32.xlu1 %v1967_v4 }
 0x629   : > { %3298 = vpow2.f32 %v1962_v55 }
 0x62e   : > { %v3297_v62 = vpop.eup %3296 }
 0x62f   : > { %v1970_v63 = vsel %vm1939_vm9, %v3297_v62, 0.0 }
 0x630   : > { %1971 = vadd.xlane.f32.xlu0 %v1970_v63 }
 0x636   : > { %v3299_v9 = vpop.eup %3298 }
 0x637   : > { %v1973_v10 = vsel %vm1939_vm9, %v3299_v9, 0.0 }
 0x638   : > { %1974 = vadd.xlane.f32.xlu1 %v1973_v10 }
 0x6a9   : > { %v1966_v15 = vpop.xlane.xlu0 %1965 }
 0x6aa   : > { %3300 = vrcp.f32 %v1966_v15 }
 0x6b1   : > { %v1969_v16 = vpop.xlane.xlu1 %1968 }
 0x6b2   : > { %3302 = vrcp.f32 %v1969_v16 }
 0x6b7   : > { %v3301_v18 = vpop.eup %3300 }
 0x6b8   : > { %v1980_v19 = vmul.f32 %v3301_v18, %v3293_v54 }
 0x6b9   : > { %v1972_v21 = vpop.xlane.xlu0 %1971 }
 0x6ba   : > { %3304 = vrcp.f32 %v1972_v21  ;;  %v1984_v22 = vpack.c.bf16 %v1980_v19, %v1980_v19 }
 0x6bc   : > { %3026 = vmatmul.mubr.msk.bf16.vlgmr.msra.gmra.mxu0 %vm1939_vm9, %v1984_v22 }
 0x6bd   : > { %3038 = vmatpush3.bf16.msra.mxu0 %v2123_v23  ;;  %3041 = vmatprep.mubr.msk.bf16.mxu0 %vm3680_vm4, %v3679_v34 }
 0x6be   : > { %3039 = vmatprep.subr.bf16.mxu0 %v3679_v34 }
 0x6bf   : > { %v3303_v28 = vpop.eup %3302 }
 0x6c0   : > { %v1981_v31 = vmul.f32 %v3303_v28, %v3295_v58 }
 0x6c1   : > { %v1975_v32 = vpop.xlane.xlu1 %1974  ;;  %3040 = vmatpush3.bf16.msra.mxu0 %v3281_v25 }
 0x6c2   : > { %3306 = vrcp.f32 %v1975_v32  ;;  %v1985_v33 = vpack.c.bf16 %v1981_v31, %v1981_v31  ;;  %3053 = vmatprep.subr.bf16.mxu0 %v3679_v34 }
 0x6c4   : > { %3034 = vmatmul.mubr.msk.bf16.vlgmr.msra.gmra.mxu1 %vm1939_vm9, %v1985_v33 }
 0x6c5   : > { %3046 = vmatpush3.bf16.msra.mxu1 %v2178_v24  ;;  %3049 = vmatprep.mubr.msk.bf16.mxu1 %vm3680_vm4, %v3679_v34 }
 0x6c6   : > { %3047 = vmatprep.subr.bf16.mxu1 %v3679_v34 }
 0x6c7   : > { %v3305_v60 = vpop.eup %3304 }
 0x6c8   : > { %v1982_v36 = vmul.f32 %v3305_v60, %v3297_v62 }
 0x6c9   : > { %3048 = vmatpush3.bf16.msra.mxu1 %v3283_v35 }
 0x6ca   : > { %v1986_v37 = vpack.c.bf16 %v1982_v36, %v1982_v36  ;;  %3061 = vmatprep.subr.bf16.mxu1 %v3679_v34 }
 0x6cc   : > { %3042 = vmatmul.mubr.msk.bf16.vlgmr.msra.gmra.mxu0 %vm1939_vm9, %v1986_v37 }
 0x6cd   : > { %3057 = vmatprep.mubr.msk.bf16.mxu0 %vm3680_vm4, %v3679_v34  ;;  %3054 = vmatpush3.bf16.msra.mxu0 %v3284_v40 }
 0x6ce   : > { %3055 = vmatprep.subr.bf16.mxu0 %v3679_v34 }
 0x6cf   : > { %v3307_v27 = vpop.eup %3306 }
 0x6d0   : > { %v1983_v38 = vmul.f32 %v3307_v27, %v3299_v9 }
 0x6d2   : > { %v1987_v39 = vpack.c.bf16 %v1983_v38, %v1983_v38 }
 0x6d4   : > { %3050 = vmatmul.mubr.msk.bf16.vlgmr.msra.gmra.mxu1 %vm1939_vm9, %v1987_v39 }
 0x6d5   : > { %3065 = vmatprep.mubr.msk.bf16.mxu1 %vm3680_vm4, %v3679_v34 }
 0x77c   : > { %v2049_v41 = vpop.f32.mrf.mxu0 }
 0x77d   : > { %v2220_v49 = vpack.c.bf16 %v2049_v41, %v2049_v41 }
 0x77e   : > { %v3027_v42 = vpop.f32.mrf.mxu0 }
 0x77f   : > { %v2227_v54 = vrot.slane %v2220_v49, %v4158_v8 }
 0x780   : > { %v2052_v43 = vpop.f32.mrf.mxu0 }
 0x781   : > { %v3285_v43 = vld [vmem:[%s4418_s22] sm:$0xff]  }
 0x782   : > { %v3028_v44 = vpop.f32.mrf.mxu0  ;;  %3056 = vmatpush3.bf16.msra.mxu0 %v3285_v43 }
 0x783   : > { %3069 = vmatprep.subr.bf16.mxu0 %v3679_v34 }
 0x784   : > { %v2104_v45 = vpop.f32.mrf.mxu1 }
 0x785   : > { %v2254_v59 = vpack.c.bf16 %v2104_v45, %v2104_v45 }
 0x786   : > { %v3035_v46 = vpop.f32.mrf.mxu1 }
 0x787   : > { %v2261_v63 = vrot.slane %v2254_v59, %v4158_v8 }
 0x788   : > { %v2107_v29 = vpop.f32.mrf.mxu1 }
 0x78a   : > { %v3036_v47 = vpop.f32.mrf.mxu1 }
 0x78c   : > { %v2159_v30 = vpop.f32.mrf.mxu0 }
 0x78d   : > { %v2228_v50 = vpack.c.bf16 %v2159_v30, %v2159_v30 }
 0x78e   : > { %v3043_v51 = vpop.f32.mrf.mxu0 }
 0x78f   : > { %v2235_v52 = vrot.slane %v2228_v50, %v4158_v8 }
 0x790   : > { %v2162_v53 = vpop.f32.mrf.mxu0 }
 0x791   : > { %v2236_v48 = vcombine.low %v2227_v54, %v2235_v52  ;;  %v2237_v58 = vcombine.high %v2227_v54, %v2235_v52 }
 0x792   : > { %v3044_v57 = vpop.f32.mrf.mxu0 }
 0x793   : > { %v2244_v62 = vrot.slane %v2236_v48, %v4161_v12  ;;  %v2251_v1 = vrot.slane %v2237_v58, %v4161_v12 }
 0x794   : > { %v2214_v61 = vpop.f32.mrf.mxu1 }
 0x795   : > { %v2262_v55 = vpack.c.bf16 %v2214_v61, %v2214_v61  ;;  %v2252_v13 = vcombine.high %v2244_v62, %v3686_v20  ;;  %v2253_v16 = vcombine.high %v2251_v1, %v3686_v20  ;;  %v2292_v17 = vshrl.u32 %v2244_v62, 16 }
 0x796   : > { %v3051_v4 = vpop.f32.mrf.mxu1  ;;  %v2308_v25 = vshrl.u32 %v2251_v1, 16 }
 0x797   : > { %v2269_v56 = vrot.slane %v2262_v55, %v4158_v8  ;;  %v2300_v23 = vshrl.u32 %v2252_v13, 16  ;;  %v2316_v35 = vshrl.u32 %v2253_v16, 16 }
 0x798   : > { %v2217_v0 = vpop.f32.mrf.mxu1 }
 0x799   : > { %v2270_v9 = vcombine.low %v2261_v63, %v2269_v56  ;;  %v2271_v10 = vcombine.high %v2261_v63, %v2269_v56  ;;  %v1498_v63 = vld [vmem:[%s1497_s20] sm:$0xff] }
 0x79a   : > { %v3052_v11 = vpop.f32.mrf.mxu1 }
 0x79b   : > { %v2278_v14 = vrot.slane %v2270_v9, %v4161_v12  ;;  %v2285_v15 = vrot.slane %v2271_v10, %v4161_v12 }
 0x79d   : > { %v2286_v18 = vcombine.high %v2278_v14, %v3686_v20  ;;  %v2287_v19 = vcombine.high %v2285_v15, %v3686_v20  ;;  %v2290_v21 = vpack.i.b16 %v2278_v14, %v2244_v62  ;;  %v2293_v22 = vshrl.u32 %v2278_v14, 16 }
 0x79e   : > { %v2306_v26 = vpack.i.b16 %v2285_v15, %v2251_v1  ;;  %v2309_v28 = vshrl.u32 %v2285_v15, 16 }
 0x79f   : > { %v2294_v31 = vpack.i.b16 %v2293_v22, %v2292_v17  ;;  %v2298_v32 = vpack.i.b16 %v2286_v18, %v2252_v13  ;;  %v2301_v33 = vshrl.u32 %v2286_v18, 16  ;;  %v2314_v24 = vpack.i.b16 %v2287_v19, %v2253_v16 }
 0x7a0   : > { %v2310_v60 = vpack.i.b16 %v2309_v28, %v2308_v25  ;;  %v2317_v36 = vshrl.u32 %v2287_v19, 16  ;;  %v2320_v37 = vcombine.low %v2290_v21, %v2306_v26  ;;  %v3286_v19 = vld [vmem:[#allocation19 + $0x8] sm:$0xff]   ;;  %v3287_v21 = vld [vmem:[#allocation19] sm:$0xff]  }
 0x7a1   : > { %v2302_v27 = vpack.i.b16 %v2301_v33, %v2300_v23  ;;  %v2328_v38 = vcombine.low %v2298_v32, %v2314_v24  ;;  %3062 = vmatpush3.bf16.msra.mxu1 %v3286_v19  ;;  %v3288_v33 = vld [vmem:[%s4419_s0 + $0x18] sm:$0xff]   ;;  %v3289_v24 = vld [vmem:[%s4420_s2 + $0x10] sm:$0xff]   ;;  %s2925_s0 = sshll.u32 %s2660_s19, 7  ;;  %s3552_s19 = sshll.u32 %s3690_s21, 4  ;;  %s3553_s19 = int_to_ptr.vmem [resolvable:$false] %s3552_s19 }
 0x7a2   : > { %v2318_v39 = vpack.i.b16 %v2317_v36, %v2316_v35  ;;  %v2345_v40 = vcombine.low %v2294_v31, %v2310_v60  ;;  %v2327_v41 = vrot.slane %v2320_v37, %v4158_v8  ;;  %3063 = vmatprep.subr.bf16.mxu1 %v3679_v34  ;;  %p3555_p13 = scmp.lt.s32.totalorder %s4306_s15, %s3553_s19 }
 0x7a3   : > { %v2335_v42 = vrot.slane %v2328_v38, %v4158_v8 }
 0x7a4   : > { %v2353_v44 = vcombine.low %v2302_v27, %v2318_v39  ;;  %v2352_v46 = vrot.slane %v2345_v40, %v4158_v8 }
 0x7a5   : > { %v2336_v45 = vcombine.low %v2327_v41, %v2335_v42  ;;  %3064 = vmatpush3.bf16.msra.mxu1 %v3287_v21 }
 0x7a6   : > { %v2360_v29 = vrot.slane %v2353_v44, %v4158_v8 }
 0x7a7   : > { %v2343_v47 = vrot.slane %v2336_v45, %v4161_v12 }
 0x7a8   : > { %v2361_v30 = vcombine.low %v2352_v46, %v2360_v29 }
 0x7a9   : > { %v2373_v50 = vshrl.u32 %v2343_v47, 16  ;;  %v2344_v52 = vcombine.high %v2343_v47, %v3686_v20 }
 0x7aa   : > { %v2368_v49 = vrot.slane %v2361_v30, %v4161_v12 }
 0x7ab   : > { %v2379_v8 = vshrl.u32 %v2344_v52, 16 }
 0x7ac   : > { %v2374_v51 = vshrl.u32 %v2368_v49, 16  ;;  %v2369_v53 = vcombine.high %v2368_v49, %v3686_v20  ;;  %v2372_v54 = vpack.i.b16 %v2368_v49, %v2343_v47 }
 0x7ae   : > { %v2375_v57 = vpack.i.b16 %v2374_v51, %v2373_v50  ;;  %v2378_v48 = vpack.i.b16 %v2369_v53, %v2344_v52  ;;  %v2380_v59 = vshrl.u32 %v2369_v53, 16 }
 0x7b0   : > { %2382 = vrot.lane.b32.xlu0 %v2375_v57, %s3687_s18  ;;  %2384 = vrot.lane.b32.xlu1 %v2378_v48, %s3688_s26  ;;  %v2381_v61 = vpack.i.b16 %v2380_v59, %v2379_v8  ;;  %s4421_s26 = sld [smem:[#allocation40_spill]] }
 0x7b4   : > { %2386 = vrot.lane.b32.xlu1 %v2381_v61, %s3689_s9 }
 0x7b6   : > { %s4422_s9 = smov %s4421_s26  ;;  %s4304_s20 = scalar_lea.hbm %s4421_s26, %s2925_s0 }
 0x7b7   : > { %s3554_s0 = scalar_lea.vmem %s3553_s19, 256 }
 0x7b8   : > { %p3556_p2 = scmp.lt.s32.totalorder %s3554_s0, %s3548_s28 }
 0x7ba   : > { %p3557_p4 = por %p3556_p2, %p3555_p13 }
 0x7bc   : > { %p3558_p6 = pnand %p3557_p4, %p3551_p11 }
 0x822   : > { %v2383_v12 = vpop.permute.xlu0 %2382  ;;  %v2385_v58 = vpop.permute.xlu1 %2384 }
 0x823   : > { %v2390_v55 = vsel %vm1744_vm7, %v2372_v54, %v2383_v12 }
 0x824   : > { %v2393_v20 = vsel %vm2391_vm10, %v2390_v55, %v2385_v58 }
 0x826   : > { %v2387_v4 = vpop.permute.xlu1 %2386 }
 0x827   : > { %v2395_v62 = vsel %vm1939_vm9, %v2393_v20, %v2387_v4 }
 0x828   : > { %3058 = vmatmul.mubr.msk.bf16.vlgmr.msra.gmra.mxu0 %vm1526_vm5, %v2395_v62 }
 0x829   : > { %3077 = vmatprep.mubr.msk.bf16.mxu0 %vm3680_vm4, %v3679_v34  ;;  %3070 = vmatpush3.bf16.msra.mxu0 %v3288_v33 }
 0x82a   : > { %3071 = vmatprep.subr.bf16.mxu0 %v3679_v34 }
 0x82d   : > { %3072 = vmatpush3.bf16.msra.mxu0 %v3289_v24 }
 0x82e   : > { %3073 = vmatprep.subr.bf16.mxu0 %v3679_v34 }
 0x8e8   : > { %v2454_v56 = vpop.f32.mrf.mxu0 }
 0x8e9   : > { %v2455_v0 = vadd.f32 %v4002_v5, %v2454_v56 }
 0x8ea   : > { %v3059_v1 = vpop.f32.mrf.mxu0 }
 0x8eb   : > { %v2460_v9 = vadd.f32 %v2455_v0, %v1498_v63 }
 0x8ec   : > { %v2457_v10 = vpop.f32.mrf.mxu0 }
 0x8ed   : > { %v2461_v11 = vsel %vm1526_vm5, %v2460_v9, 0.0 }
 0x8ee   : > { %v3060_v13 = vpop.f32.mrf.mxu0  ;;  %2462 = vadd.xlane.f32.xlu0 %v2461_v11 }
 0x977   : > { %v2463_v14 = vpop.xlane.xlu0 %2462 }
 0x978   : > { %v2465_v15 = vmul.f32 0.03125, %v2463_v14 }
 0x97a   : > { %v2466_v16 = vsub.f32 %v2460_v9, %v2465_v15 }
 0x97c   : > { %v2467_v17 = vmul.f32 %v2466_v16, %v2466_v16 }
 0x97e   : > { %v2468_v18 = vsel %vm1526_vm5, %v2467_v17, 0.0 }
 0x97f   : > { %2469 = vadd.xlane.f32.xlu1 %v2468_v18 }
 0xa08   : > { %v2470_v5 = vpop.xlane.xlu1 %2469 }
 0xa09   : > { %v2471_v22 = vmul.f32 0.03125, %v2470_v5 }
 0xa0b   : > { %v2472_v23 = vadd.f32 1e-05, %v2471_v22 }
 0xa0d   : > { %3308 = vrsqrt.f32 %v2472_v23 }
 0xa1a   : > { %v3309_v25 = vpop.eup %3308 }
 0xa1b   : > { %v2474_v26 = vmul.f32 %v3309_v25, %v2466_v16 }
 0xa1d   : > { %v2481_v28 = vmul.f32 %v3985_v2, %v2474_v26  ;;  %v3290_v2 = vld [vmem:[%s4420_s2 + $0x8] sm:$0xff]  }
 0xa1e   : > { %3074 = vmatpush3.bf16.msra.mxu0 %v3290_v2 }
 0xa1f   : > { %v2488_v31 = vadd.f32 %v3995_v3, %v2481_v28  ;;  %3075 = vmatprep.subr.bf16.mxu0 %v3679_v34  ;;  %v3291_v3 = vld [vmem:[%s4420_s2] sm:$0xff]  }
 0xa21   : > { %v2489_v32 = vpack.c.bf16 %v2488_v31, %v2488_v31 }
 0xa22   : > { %3076 = vmatpush3.bf16.msra.mxu0 %v3291_v3 }
 0xa23   : > { %3066 = vmatmul.mubr.msk.bf16.vlgmr.msra.gmra.mxu1 %vm1526_vm5, %v2489_v32 }
 0xae3   : > { %v2549_v35 = vpop.f32.mrf.mxu1 }
 0xae4   : > { %v2550_v60 = vadd.f32 %v4007_v6, %v2549_v35 }
 0xae5   : > { %v3067_v36 = vpop.f32.mrf.mxu1 }
 0xae6   : > { %v2917_v37 = vmul.f32 -1.702, %v2550_v60 }
 0xae7   : > { %v2552_v27 = vpop.f32.mrf.mxu1 }
 0xae8   : > { %v2557_v38 = vmul.f32 1.442695, %v2917_v37 }
 0xae9   : > { %v3068_v39 = vpop.f32.mrf.mxu1 }
 0xaea   : > { %3310 = vpow2.f32 %v2557_v38 }
 0xaf7   : > { %v3311_v40 = vpop.eup %3310 }
 0xaf8   : > { %v2559_v41 = vadd.f32 1.0, %v3311_v40 }
 0xafa   : > { %3312 = vrcp.f32 %v2559_v41 }
 0xb07   : > { %v3313_v34 = vpop.eup %3312 }
 0xb08   : > { %v2562_v42 = vmul.f32 %v3313_v34, %v2550_v60 }
 0xb0a   : > { %v2563_v43 = vpack.c.bf16 %v2562_v42, %v2562_v42 }
 0xb0c   : > { %3078 = vmatmul.mubr.msk.bf16.vlgmr.msra.gmra.mxu0 %vm2602_vm11, %v2563_v43 }
 0xbcc   : > { %v2640_v6 = vpop.f32.mrf.mxu0 }
 0xbcd   : > { %v2641_v44 = vadd.f32 %v4012_v7, %v2640_v6 }
 0xbce   : > { %v3079_v45 = vpop.f32.mrf.mxu0 }
 0xbcf   : > { %v2646_v46 = vadd.f32 %v2641_v44, %v2460_v9 }
 0xbd0   : > { %v2643_v29 = vpop.f32.mrf.mxu0 }
 0xbd1   : > { %2647 = vst.msk [vmem:[%s676_s29] sm:$0xff] %vm1526_vm5, %v2646_v46 }
 0xbd2   : > { %v3080_v47 = vpop.f32.mrf.mxu0 }
 0xbd3   : > { %3561 = shalt.err (!%p3558_p6)
}
 0xbd4   : > { %s3562_s1 = scalar_lea.hbm %s4304_s20, 128  ;;  %s3566_s24 = scalar_lea.hbm %s4422_s9, 768 }
 0xbd5   : > { %p3563_p8 = scmp.ne.s32.totalorder %s4304_s20, %s3562_s1  ;;  %p3567_p1 = scmp.lt.s32.totalorder %s4304_s20, %s4422_s9 }
 0xbd6   : > { %p3568_p0 = scmp.lt.s32.totalorder %s3566_s24, %s3562_s1 }
 0xbd7   : > { %p3564_p5 = pnand %p3563_p8, %p4423_p9 }
 0xbd8   : > { %p3569_p7 = por %p3568_p0, %p3567_p1 }
 0xbd9   : > { %p3565_p3 = pneg %p3564_p5 }
 0xbdb   : > { %p3570_p12 = pnand %p3569_p7, %p3565_p3 }
 0xbdd   : > { %3573 = shalt.err (!%p3570_p12)
}
 0xbde   : > { %3119 = dma.vmem_to_hbm [thread:$0]  (%p4423_p9), %s4306_s15, 128, %s4304_s20, %s2649_s27  }
 0xbdf PF: > { %s4424_s28 = sld [smem:[#allocation27_spill]]  ;;  %p3171_p10 = scmp.ge.s32.totalorder %s3660_s30, 2 }
 0xbe0   : > { %s4425_s21 = sld [smem:[#allocation33_spill]] }
 0xbe5   : > { %s2676_s19 = sand.u32 1, %s4424_s28  }
 0xbe6   : > { %p4426_p11 = scmp.ne.s32.totalorder %s4425_s21, 0  ;;  %s2677_s0 = scalar_lea.sflag [#allocation7], %s2676_s19 }
 0xbe8   : > { %p3150_p13 = pnand %p3171_p10, %p4426_p11 }
 0xbea   : > { %p3151_p2 = pneg %p3150_p13 }
 0xbec   : > { %3627 = dma.done.wait (%p3151_p2), %s2677_s0, 128  }
 0xbed   : > { %3629 = vsyncadd (%p3151_p2), %s2677_s0, 4294967168  ;;  %s35_s30 = sadd.s32 1, %s3660_s30   ;;  %s4427_s23 = sld [smem:[#allocation28_spill]] }
 0xbee   : > { %p32_p4 = scmp.ge.s32.totalorder %s35_s30, 8   ;;  %s4428_s26 = sld [smem:[#allocation34_spill]] }
 0xbef   : > { %s4429_s27 = sld [smem:[#allocation29_spill]]  ;;  %s4433_s24 = smov %s3636_s25 }
 0xbf0   : > { %s4430_s28 = sld [smem:[#allocation30_spill]]  ;;  %34 = sbr.rel (!%p32_p4) target bundleno = 17 (0x11), region = 166 }
 0xbf1   : > { %s4431_s29 = sld [smem:[#allocation31_spill]] }
 0xbf2   : > { %s4432_s0 = sld [smem:[#allocation32_spill]] }
 0xbf3   : > { %s4434_s25 = smov %s4427_s23 }
 0xbf5   :  { %2682 = vsyncpa [#allocation6], 1 }
 0xbf6   :  { %2684 = vsyncpa [#allocation6 + $0x1], 1 }
 0xbf7   :  { %2685 = vsyncpa [#allocation9], 1 }
 0xbf8   :  { %2686 = vsyncpa [#allocation12], 1 }
 0xbf9   :  { %2687 = vsyncpa [#allocation15], 1 }
 0xbfa   :  { %2688 = vsyncpa [#allocation18], 1 }
 0xbfb   :  { %2689 = vsyncpa [#allocation7], 1 }
 0xbfc   :  { %2691 = vsyncpa [#allocation7 + $0x1], 1 }

// kernel: tpu_custom_call.1
= control target key start
LH: loop header
LB: loop body
LE: loop exit
PB: predicated region body
PF: predicated region fallthrough
CT: control target
= control target key end

     0   :  { %s4361_s0 = inlined_call_operand.vmem [shape: f32[2,24,32], index: 0, kind: input, shape index: {}]   ;;  %s4362_s1 = inlined_call_operand.hbm [shape: f32[1,32], index: 1, kind: input, shape index: {}]   ;;  %s4363_s2 = inlined_call_operand.hbm [shape: f32[1,32], index: 2, kind: input, shape index: {}]   ;;  %s4364_s3 = inlined_call_operand.hbm [shape: bf16[32,32], index: 3, kind: input, shape index: {}]   ;;  %s4365_s4 = inlined_call_operand.hbm [shape: f32[1,32], index: 4, kind: input, shape index: {}]   ;;  %s4366_s5 = inlined_call_operand.hbm [shape: bf16[32,32], index: 5, kind: input, shape index: {}]   ;;  %s4367_s6 = inlined_call_operand.hbm [shape: f32[1,32], index: 6, kind: input, shape index: {}]   ;;  %s4368_s7 = inlined_call_operand.hbm [shape: bf16[32,32], index: 7, kind: input, shape index: {}]   ;;  %s4369_s8 = inlined_call_operand.hbm [shape: f32[1,32], index: 8, kind: input, shape index: {}]   ;;  %s4370_s9 = inlined_call_operand.vmem [shape: bf16[32,32], index: 9, kind: input, shape index: {}]   ;;  %s4371_s10 = inlined_call_operand.vmem [shape: f32[1,32], index: 10, kind: input, shape index: {}]   ;;  %s4372_s11 = inlined_call_operand.vmem [shape: f32[1,32], index: 11, kind: input, shape index: {}]   ;;  %s4373_s12 = inlined_call_operand.vmem [shape: f32[1,32], index: 12, kind: input, shape index: {}]   ;;  %s4374_s13 = inlined_call_operand.hbm [shape: bf16[32,64], index: 13, kind: input, shape index: {}]   ;;  %s4375_s14 = inlined_call_operand.vmem [shape: f32[1,64], index: 14, kind: input, shape index: {}]   ;;  %s4376_s15 = inlined_call_operand.vmem [shape: bf16[64,32], index: 15, kind: input, shape index: {}]   ;;  %s4377_s16 = inlined_call_operand.vmem [shape: f32[1,32], index: 16, kind: input, shape index: {}]   ;;  %s4378_s17 = inlined_call_operand.hbm [shape: f32[2,24,32], index: 17, kind: output, shape index: {}]  }
   0x1   :  { %4393 = sst [smem:[#allocation35_spill]] %s4361_s0 }
   0x2   :  { %4394 = sst [smem:[#allocation36_spill]] %s4362_s1 }
   0x3   :  { %4395 = sst [smem:[#allocation37_spill]] %s4363_s2 }
   0x4   :  { %4396 = sst [smem:[#allocation38_spill]] %s4370_s9 }
   0x5   :  { %4397 = sst [smem:[#allocation39_spill]] %s4376_s15 }
   0x6   :  { %4398 = sst [smem:[#allocation40_spill]] %s4378_s17 }
   0x7   :  { %22 = vsyncpa [#allocation6], 0 }
   0x8   :  { %23 = vsyncpa [#allocation9], 0 }
   0x9   :  { %24 = vsyncpa [#allocation12], 0 }
   0xa   :  { %25 = vsyncpa [#allocation15], 0 }
   0xb   :  { %26 = vsyncpa [#allocation18], 0 }
   0xc   :  { %27 = vsyncpa [#allocation7], 0 }
   0xd   :  { %29 = vsyncpa [#allocation7 + $0x1], 0  ;;  %s3781_s24 = smov 0   ;;  %s3783_s25 = smov 0  }
   0xe   :  { %s3785_s26 = smov 0   ;;  %s3787_s27 = smov 0  }
   0xf   :  { %s3789_s28 = smov 0   ;;  %s3791_s29 = smov 0  }
  0x10   :  { %s3793_s0 = smov 0   ;;  %s3795_s30 = smov 0  }
  0x11 LB: > { %4399 = sst [smem:[#allocation27_spill]] %s3632_s24  ;;  %s2828_s18 = sadd.s32 4294967295, %s3660_s30   ;;  %s3660_s30 = sphi %s3795_s30, %s35_s30   ;;  %s3656_s0 = sphi %s3793_s0, %s4432_s0   ;;  %s3652_s29 = sphi %s3791_s29, %s4431_s29   ;;  %s3648_s28 = sphi %s3789_s28, %s4430_s28   ;;  %s3644_s27 = sphi %s3787_s27, %s4429_s27   ;;  %s3640_s26 = sphi %s3785_s26, %s4428_s26   ;;  %s3636_s25 = sphi %s3783_s25, %s4434_s25   ;;  %s3632_s24 = sphi %s3781_s24, %s4433_s24  }
  0x12   : > { %4400 = sst [smem:[#allocation28_spill]] %s3640_s26  ;;  %s2829_s19 = sadd.s32 4294967294, %s3660_s30  }
  0x13   : > { %4401 = sst [smem:[#allocation29_spill]] %s3652_s29  ;;  %s44_s1 = sadd.s32 1, %s3652_s29 }
  0x14   : > { %4402 = sst [smem:[#allocation30_spill]] %s3656_s0  ;;  %s47_s20 = sadd.s32 1, %s3656_s0 }
  0x15   : > { %p45_p0 = scmp.ge.s32.totalorder %s44_s1, 3  ;;  %s418_s21 = sadd.s32 1, %s3640_s26 }
  0x16   : > { %p428_p1 = scmp.ne.s32.totalorder %s3640_s26, %s3636_s25  ;;  %p429_p2 = scmp.eq.s32.totalorder %s2828_s18, 5 }
  0x17   : > { %s4436_s1 = smov (%p45_p0, %s44_s1), 0  ;;  %s4438_s20 = smov (!%p45_p0, %s47_s20), %s3656_s0 }
  0x18   : > { %4403 = sst [smem:[#allocation31_spill]] %s4436_s1  ;;  %s414_s22 = ssub.s32 %s3652_s29, %s4436_s1 }
  0x19   : > { %p3833_p3 = por %p429_p2, %p428_p1  ;;  %p49_p4 = scmp.ge.s32.totalorder %s4438_s20, 2 }
  0x1a   : > { %p434_p5 = scmp.ne.s32.totalorder %s3636_s25, %s3632_s24  ;;  %p435_p6 = scmp.eq.s32.totalorder %s2829_s19, 5 }
  0x1b   : > { %s4404_s23 = scalar_select %p3833_p3, 1, 0 }
  0x1c   : > { %p2830_p7 = scmp.ge.s32.totalorder %s3660_s30, 1  ;;  %s4440_s20 = smov (%p49_p4, %s4438_s20), 0 }
  0x1d   : > { %4405 = sst [smem:[#allocation32_spill]] %s4440_s20  ;;  %p3842_p8 = por %p435_p6, %p434_p5 }
  0x1e   : > { %p442_p9 = scmp.lt.s32.totalorder %s3660_s30, 7  ;;  %s413_s15 = ssub.s32 %s3656_s0, %s4440_s20 }
  0x1f   : > { %s4406_s17 = scalar_select %p3842_p8, 1, 0 }
  0x20   : > { %s415_s9 = sor.u32 %s414_s22, %s413_s15  ;;  %p3849_p10 = pnand %p2830_p7, %p442_p9 }
  0x21   : > { %4407 = sst [smem:[#allocation33_spill]] %s4406_s17  ;;  %p416_p11 = scmp.eq.s32.totalorder %s415_s9, 0 }
  0x22   : > { %s4408_s1 = scalar_select %p3849_p10, 1, 0 }
  0x23   : > { %p3853_p12 = scmp.eq.s32.totalorder %s2828_s18, 0  ;;  %p3121_p13 = pneg %p3849_p10 }
  0x24   : > { %s3860_s19 = scalar_select %p416_p11, %s3640_s26, %s418_s21  }
  0x25   : > { %s4409_s29 = scalar_select %p3853_p12, 1, 0 }
  0x26   : > { %4410 = sst [smem:[#allocation34_spill]] %s3860_s19  ;;  %p3864_p0 = pnand %p3853_p12, %p3121_p13 }
  0x27   : > { %s3662_s15 = smov [#allocation8]   ;;  %s3663_s20 = smov [#allocation11]  }
  0x28   : > { %s466_s22 = sshll.u32 %s3662_s15, 4  ;;  %s490_s9 = sshll.u32 %s3663_s20, 4  ;;  %s467_s22 = int_to_ptr.vmem [resolvable:$true] %s466_s22  ;;  %s491_s9 = int_to_ptr.vmem [resolvable:$true] %s490_s9 }
  0x29   : > { %p3870_p1 = pneg %p3864_p0  ;;  %s3325_s0 = scalar_lea.vmem %s467_s22, 16 }
  0x2a   : > { %p3326_p2 = scmp.ne.s32.totalorder %s467_s22, %s3325_s0  ;;  %s3332_s21 = scalar_lea.vmem %s467_s22, 32 }
  0x2b   : > { %p3333_p6 = scmp.lt.s32.totalorder %s467_s22, %s467_s22  ;;  %p3334_p7 = scmp.lt.s32.totalorder %s3332_s21, %s3325_s0 }
  0x2c   : > { %p3328_p4 = pnand %p3326_p2, %p3870_p1 }
  0x2d   : > { %p3335_p9 = por %p3334_p7, %p3333_p6 }
  0x2e   : > { %p3329_p5 = pneg %p3328_p4 }
  0x30   : > { %p3336_p11 = pnand %p3335_p9, %p3329_p5 }
  0x32   : > { %3339 = shalt.err (!%p3336_p11)
}
  0x33   : > { %s4413_s2 = sld [smem:[#allocation37_spill]]  ;;  %s3351_s19 = scalar_lea.vmem %s491_s9, 16 }
  0x34   : > { %p3352_p13 = scmp.ne.s32.totalorder %s491_s9, %s3351_s19  ;;  %s3358_s26 = scalar_lea.vmem %s491_s9, 32 }
  0x35   : > { %p3359_p4 = scmp.lt.s32.totalorder %s491_s9, %s491_s9  ;;  %p3360_p3 = scmp.lt.s32.totalorder %s3358_s26, %s3351_s19 }
  0x36   : > { %p3354_p8 = pnand %p3352_p13, %p3870_p1 }
  0x37   : > { %p3361_p12 = por %p3360_p3, %p3359_p4 }
  0x38   : > { %p3355_p2 = pneg %p3354_p8 }
  0x39   : > { %3127 = dma.hbm_to_vmem [thread:$0]  (!%p3864_p0), %s4413_s2, 16, %s467_s22, [#allocation9]  }
  0x3a   : > { %p3362_p6 = pnand %p3361_p12, %p3355_p2 }
  0x3c   : > { %3365 = shalt.err (!%p3362_p6)
}
  0x3d   : > { %3133 = dma.hbm_to_vmem [thread:$0]  (!%p3864_p0), %s4365_s4, 16, %s491_s9, [#allocation12]  }
  0x3e   : > { %s3664_s22 = smov [#allocation14]   ;;  %s3665_s15 = smov [#allocation17]  }
  0x3f   : > { %s514_s20 = sshll.u32 %s3664_s22, 4  ;;  %s538_s2 = sshll.u32 %s3665_s15, 4  ;;  %s515_s20 = int_to_ptr.vmem [resolvable:$true] %s514_s20  ;;  %s539_s2 = int_to_ptr.vmem [resolvable:$true] %s538_s2 }
  0x40   : > { %s3377_s24 = scalar_lea.vmem %s515_s20, 16  ;;  %s3384_s26 = scalar_lea.vmem %s515_s20, 32 }
  0x41   : > { %p3378_p8 = scmp.ne.s32.totalorder %s515_s20, %s3377_s24  ;;  %p3385_p3 = scmp.lt.s32.totalorder %s515_s20, %s515_s20 }
  0x42   : > { %p3386_p12 = scmp.lt.s32.totalorder %s3384_s26, %s3377_s24 }
  0x43   : > { %p3380_p5 = pnand %p3378_p8, %p3870_p1 }
  0x44   : > { %p3387_p9 = por %p3386_p12, %p3385_p3 }
  0x45   : > { %p3381_p7 = pneg %p3380_p5 }
  0x47   : > { %p3388_p11 = pnand %p3387_p9, %p3381_p7 }
  0x49   : > { %3391 = shalt.err (!%p3388_p11)
}
  0x4a   : > { %3139 = dma.hbm_to_vmem [thread:$0]  (!%p3864_p0), %s4367_s6, 16, %s515_s20, [#allocation15]  }
  0x4b   : > { %s3403_s0 = scalar_lea.vmem %s539_s2, 16  ;;  %s3410_s21 = scalar_lea.vmem %s539_s2, 32 }
  0x4c   : > { %p3404_p13 = scmp.ne.s32.totalorder %s539_s2, %s3403_s0  ;;  %p3411_p6 = scmp.lt.s32.totalorder %s539_s2, %s539_s2 }
  0x4d   : > { %p3412_p8 = scmp.lt.s32.totalorder %s3410_s21, %s3403_s0 }
  0x4e   : > { %p3406_p2 = pnand %p3404_p13, %p3870_p1 }
  0x4f   : > { %p3413_p5 = por %p3412_p8, %p3411_p6 }
  0x50   : > { %p3407_p4 = pneg %p3406_p2 }
  0x52   : > { %p3414_p3 = pnand %p3413_p5, %p3407_p4 }
  0x54   : > { %3417 = shalt.err (!%p3414_p3)
}
  0x55   : > { %3145 = dma.hbm_to_vmem [thread:$0]  (!%p3864_p0), %s4369_s8, 16, %s539_s2, [#allocation18]  }
  0x56   : > { %s3666_s20 = smov [#allocation5]   ;;  %s3667_s26 = smov [#allocation10]  }
  0x57   : > { %s455_s15 = sshll.u32 %s3666_s20, 4  ;;  %s476_s19 = sshll.u32 %s3667_s26, 4  ;;  %s456_s15 = int_to_ptr.vmem [resolvable:$true] %s455_s15  ;;  %s477_s19 = int_to_ptr.vmem [resolvable:$true] %s476_s19 }
  0x58   : > { %s3429_s9 = scalar_lea.vmem %s456_s15, 16  ;;  %s3436_s0 = scalar_lea.vmem %s456_s15, 32 }
  0x59   : > { %p3430_p7 = scmp.ne.s32.totalorder %s456_s15, %s3429_s9  ;;  %p3437_p11 = scmp.lt.s32.totalorder %s456_s15, %s456_s15 }
  0x5a   : > { %p3438_p13 = scmp.lt.s32.totalorder %s3436_s0, %s3429_s9 }
  0x5b   : > { %p3432_p12 = pnand %p3430_p7, %p3870_p1 }
  0x5c   : > { %p3439_p2 = por %p3438_p13, %p3437_p11 }
  0x5d   : > { %p3433_p9 = pneg %p3432_p12 }
  0x5f   : > { %p3440_p4 = pnand %p3439_p2, %p3433_p9 }
  0x61   : > { %3443 = shalt.err (!%p3440_p4)
}
  0x62   : > { %s4414_s24 = sld [smem:[#allocation36_spill]]  ;;  %s3455_s22 = scalar_lea.vmem %s477_s19, 256 }
  0x63   : > { %p3456_p6 = scmp.ne.s32.totalorder %s477_s19, %s3455_s22  ;;  %p3463_p3 = scmp.lt.s32.totalorder %s477_s19, %s477_s19 }
  0x64   : > { %p3464_p7 = scmp.lt.s32.totalorder %s3455_s22, %s3455_s22 }
  0x65   : > { %p3458_p8 = pnand %p3456_p6, %p3870_p1 }
  0x66   : > { %p3465_p12 = por %p3464_p7, %p3463_p3 }
  0x67   : > { %p3459_p5 = pneg %p3458_p8 }
  0x68   : > { %3124 = dma.hbm_to_vmem [thread:$0]  (!%p3864_p0), %s4414_s24, 16, %s456_s15, [#allocation6]  }
  0x69   : > { %p3466_p10 = pnand %p3465_p12, %p3459_p5 }
  0x6b   : > { %3469 = shalt.err (!%p3466_p10)
}
  0x6c   : > { %s3668_s20 = smov 64   ;;  %s3669_s26 = smov 4  }
  0x6d   : > { %3130 = dma.hbm_to_vmem [thread:$0]  (!%p3864_p0), %s4364_s3, 256, %s477_s19, [#allocation9], %s3668_s20, %s3668_s20, %s3669_s26  }
  0x6e   : > { %s3670_s0 = smov [#allocation13]   ;;  %s3671_s2 = smov [#allocation16]  }
  0x6f   : > { %s500_s21 = sshll.u32 %s3670_s0, 4  ;;  %s524_s24 = sshll.u32 %s3671_s2, 4  ;;  %s501_s21 = int_to_ptr.vmem [resolvable:$true] %s500_s21  ;;  %s525_s24 = int_to_ptr.vmem [resolvable:$true] %s524_s24 }
  0x70   : > { %s3481_s22 = scalar_lea.vmem %s501_s21, 256  ;;  %p3489_p13 = scmp.lt.s32.totalorder %s501_s21, %s501_s21 }
  0x71   : > { %p3482_p9 = scmp.ne.s32.totalorder %s501_s21, %s3481_s22  ;;  %p3490_p2 = scmp.lt.s32.totalorder %s3481_s22, %s3481_s22 }
  0x73   : > { %p3484_p10 = pnand %p3482_p9, %p3870_p1  ;;  %p3491_p4 = por %p3490_p2, %p3489_p13 }
  0x75   : > { %p3485_p11 = pneg %p3484_p10 }
  0x77   : > { %p3492_p6 = pnand %p3491_p4, %p3485_p11 }
  0x79   : > { %3495 = shalt.err (!%p3492_p6)
}
  0x7a   : > { %3136 = dma.hbm_to_vmem [thread:$0]  (!%p3864_p0), %s4366_s5, 256, %s501_s21, [#allocation12], %s3668_s20, %s3668_s20, %s3669_s26  }
  0x7b   : > { %s3507_s9 = scalar_lea.vmem %s525_s24, 256  ;;  %p3515_p7 = scmp.lt.s32.totalorder %s525_s24, %s525_s24 }
  0x7c   : > { %p3508_p8 = scmp.ne.s32.totalorder %s525_s24, %s3507_s9  ;;  %p3516_p12 = scmp.lt.s32.totalorder %s3507_s9, %s3507_s9 }
  0x7e   : > { %p3510_p5 = pnand %p3508_p8, %p3870_p1  ;;  %p3517_p9 = por %p3516_p12, %p3515_p7 }
  0x80   : > { %p3511_p3 = pneg %p3510_p5 }
  0x82   : > { %p3518_p10 = pnand %p3517_p9, %p3511_p3 }
  0x84   : > { %3521 = shalt.err (!%p3518_p10)
}
  0x85   : > { %3142 = dma.hbm_to_vmem [thread:$0]  (!%p3864_p0), %s4368_s7, 256, %s525_s24, [#allocation15], %s3668_s20, %s3668_s20, %s3669_s26  }
  0x86   : > { %s3672_s21 = smov [#allocation19]  }
  0x87   : > { %s560_s22 = sshll.u32 %s3672_s21, 4  ;;  %s561_s22 = int_to_ptr.vmem [resolvable:$true] %s560_s22 }
  0x88   : > { %s3533_s19 = scalar_lea.vmem %s561_s22, 256  ;;  %p3541_p4 = scmp.lt.s32.totalorder %s561_s22, %s561_s22 }
  0x89   : > { %p3534_p11 = scmp.ne.s32.totalorder %s561_s22, %s3533_s19  ;;  %p3542_p6 = scmp.lt.s32.totalorder %s3533_s19, %s3533_s19 }
  0x8b   : > { %p3536_p13 = pnand %p3534_p11, %p3870_p1  ;;  %p3543_p8 = por %p3542_p6, %p3541_p4 }
  0x8d   : > { %p3537_p2 = pneg %p3536_p13 }
  0x8f   : > { %p3544_p5 = pnand %p3543_p8, %p3537_p2 }
  0x91   : > { %3547 = shalt.err (!%p3544_p5)
}
  0x92   : > { %3148 = dma.hbm_to_vmem [thread:$0]  (!%p3864_p0), %s4374_s13, 256, %s561_s22, [#allocation18], %s3668_s20, %s3668_s20, %s3669_s26  }
  0x93   : > { %p4415_p3 = scmp.ne.s32.totalorder %s4408_s1, 0 }
  0x94   : > { %p4416_p1 = scmp.ne.s32.totalorder (!%p4415_p3), %s4409_s29, 0 }
  0x95   : > { %593 = sbr.rel (%p4415_p3) target bundleno = 3039 (0xbdf), region = 88 }
  0x9a   : > { %3607 = dma.done.wait (%p4416_p1), [#allocation6], 16  }
  0x9b   : > { %3609 = vsyncadd (%p4416_p1), [#allocation6], 4294967280 }
  0x9c   : > { %3611 = dma.done.wait (%p4416_p1), [#allocation9], 272  }
  0x9d   : > { %3613 = vsyncadd (%p4416_p1), [#allocation9], 4294967024 }
  0x9e   : > { %3615 = dma.done.wait (%p4416_p1), [#allocation12], 272  }
  0x9f   : > { %3617 = vsyncadd (%p4416_p1), [#allocation12], 4294967024 }
  0xa0   : > { %3619 = dma.done.wait (%p4416_p1), [#allocation15], 272  }
  0xa1   : > { %3621 = vsyncadd (%p4416_p1), [#allocation15], 4294967024 }
  0xa2   : > { %3623 = dma.done.wait (%p4416_p1), [#allocation18], 272  }
  0xa3   : > { %3625 = vsyncadd (%p4416_p1), [#allocation18], 4294967024  ;;  %s674_s17 = sand.u32 1, %s3636_s25   ;;  %p677_p0 = scmp.lt.s32.totalorder %s3648_s28, 1  ;;  %v3978_v0 = vld [vmem:[#allocation5] ss:$0 sm:$0xff] }
  0xa4   : > { %s3975_s1 = sshll.u32 %s674_s17, 3  ;;  %v3980_v1 = vld [vmem:[#allocation8] ss:$0 sm:$0xff]  ;;  %v3985_v2 = vld [vmem:[%s4372_s11] ss:$0 sm:$0xff]  ;;  %s4417_s2 = sld [smem:[#allocation35_spill]] }
  0xa5   : > { %s678_s18 = scalar_select %p677_p0, %s3648_s28, 1  ;;  %v3995_v3 = vld [vmem:[%s4373_s12] ss:$0 sm:$0xff] }
  0xa6   : > { %v3997_v4 = vld [vmem:[#allocation11] ss:$0 sm:$0xff]  ;;  %s676_s29 = scalar_lea.vmem [#allocation20], %s3975_s1  ;;  %p2853_p7 = scmp.ne.s32.totalorder %s3644_s27, 0 }
  0xa7   : > { %s3081_s20 = smul.u32 24, %s678_s18  ;;  %v4002_v5 = vld [vmem:[%s4371_s10] ss:$0 sm:$0xff]  ;;  %s3673_s0 = smov (!%p2853_p7), 120  }
  0xa8   : > { %v4007_v6 = vld [vmem:[%s4375_s14] ss:$0 sm:$0xff]  ;;  %694 = sbr.rel (%p2853_p7) target bundleno = 866 (0x362), region = 128  ;;  %s3675_s22 = smov (!%p2853_p7), 104  }
  0xa9   : > { %v4012_v7 = vld [vmem:[%s4377_s16] ss:$0 sm:$0xff] }
  0xaa   : > { %s3990_s21 = scalar_lea.vmem %s4417_s2, %s3081_s20  ;;  %s3674_s2 = smov (!%p2853_p7), 112  }
  0xad   : > { %v695_v8 = vld [vmem:[%s3990_s21] sm:$0xff]  ;;  %vm698_vm0 = vcmask 261120   ;;  %v697_v9 = vld [vmem:[%s3990_s21 + $0x10] sm:$0xff]  ;;  %v696_v10 = vld [vmem:[%s3990_s21 + $0x8] sm:$0xff]  ;;  %vm770_vm1 = vcmask 257024   ;;  %vm1483_vm2 = vcmask 60416  }
  0xae   : > { %v699_v11 = vsel %vm698_vm0, %v695_v8, 0.0  ;;  %v705_v12 = vsel %vm698_vm0, %v697_v9, 0.0  ;;  %v702_v13 = vsel %vm698_vm0, %v696_v10, 0.0  ;;  %v3264_v29 = vld [vmem:[#allocation13 + $0x8] sm:$0xff]   ;;  %v3265_v30 = vld [vmem:[#allocation16 + $0x8] sm:$0xff]   ;;  %v3267_v32 = vld [vmem:[#allocation16] sm:$0xff]  }
  0xaf   : > { %700 = vadd.xlane.f32.xlu0 %v699_v11  ;;  %706 = vadd.xlane.f32.xlu1 %v705_v12  ;;  %v3266_v31 = vld [vmem:[#allocation13] sm:$0xff]   ;;  %vm954_vm3 = vcmask 191488  }
  0xb0   : > { %2973 = vmatprep.subr.bf16.mxu0 %v3264_v29  ;;  %2981 = vmatprep.subr.bf16.mxu1 %v3265_v30  ;;  %v2864_v58 = vld [vmem:[#allocation17] ss:$0 sm:$0xff] }
  0xb1   : > { %2974 = vmatpush3.bf16.msra.mxu0 %v3264_v29  ;;  %2982 = vmatpush3.bf16.msra.mxu1 %v3265_v30  ;;  %v3678_v30 = vmov 0  }
  0xb2   : > { %2975 = vmatprep.subr.bf16.mxu0 %v3266_v31  ;;  %2983 = vmatprep.subr.bf16.mxu1 %v3267_v32 }
  0xb3   : > { %703 = vadd.xlane.f32.xlu0 %v702_v13 }
  0xb5   : > { %2976 = vmatpush3.bf16.msra.mxu0 %v3266_v31  ;;  %2984 = vmatpush3.bf16.msra.mxu1 %v3267_v32 }
 0x138   : > { %v701_v14 = vpop.xlane.xlu0 %700  ;;  %v707_v15 = vpop.xlane.xlu1 %706 }
 0x139   : > { %v709_v16 = vmul.f32 0.03125, %v701_v14  ;;  %v711_v17 = vmul.f32 0.03125, %v707_v15  ;;  %v2859_v14 = vld [vmem:[#allocation14] ss:$0 sm:$0xff] }
 0x13b   : > { %v712_v18 = vsub.f32 %v695_v8, %v709_v16  ;;  %v714_v19 = vsub.f32 %v697_v9, %v711_v17 }
 0x13c   : > { %v704_v20 = vpop.xlane.xlu0 %703 }
 0x13d   : > { %v710_v21 = vmul.f32 0.03125, %v704_v20  ;;  %v715_v22 = vmul.f32 %v712_v18, %v712_v18  ;;  %v717_v23 = vmul.f32 %v714_v19, %v714_v19  ;;  %v3676_v20 = vmov 1983009808  }
 0x13f   : > { %v713_v24 = vsub.f32 %v696_v10, %v710_v21  ;;  %v718_v25 = vsel %vm698_vm0, %v715_v22, 0.0  ;;  %v724_v26 = vsel %vm698_vm0, %v717_v23, 0.0  ;;  %v980_v21 = vunpack.c.l.s4 %v3676_v20 }
 0x140   : > { %719 = vadd.xlane.f32.xlu1 %v718_v25  ;;  %v982_v22 = vlaneseq  ;;  %v3677_v23 = vmov 1934713408  }
 0x141   : > { %v716_v27 = vmul.f32 %v713_v24, %v713_v24  ;;  %v981_v25 = vunpack.c.0.s8 %v980_v21 }
 0x143   : > { %v721_v28 = vsel %vm698_vm0, %v716_v27, 0.0 }
 0x144   : > { %725 = vadd.xlane.f32.xlu1 %v724_v26  ;;  %722 = vadd.xlane.f32.xlu0 %v721_v28  ;;  %v983_v26 = vshrl.u32 %v982_v22, 7 }
 0x146   : > { %v4037_v29 = vsub.s32 %v981_v25, %v983_v26 }
 0x1c9   : > { %v720_v33 = vpop.xlane.xlu1 %719 }
 0x1ca   : > { %v727_v34 = vmul.f32 0.03125, %v720_v33 }
 0x1cc   : > { %v730_v35 = vadd.f32 1e-05, %v727_v34 }
 0x1cd   : > { %v726_v36 = vpop.xlane.xlu1 %725  ;;  %v723_v37 = vpop.xlane.xlu0 %722 }
 0x1ce   : > { %3268 = vrsqrt.f32 %v730_v35  ;;  %v729_v38 = vmul.f32 0.03125, %v726_v36  ;;  %v728_v39 = vmul.f32 0.03125, %v723_v37 }
 0x1d0   : > { %v732_v40 = vadd.f32 1e-05, %v729_v38  ;;  %v731_v41 = vadd.f32 1e-05, %v728_v39 }
 0x1d2   : > { %3270 = vrsqrt.f32 %v732_v40 }
 0x1d3   : > { %3272 = vrsqrt.f32 %v731_v41 }
 0x1db   : > { %v3269_v42 = vpop.eup %3268 }
 0x1dc   : > { %v736_v43 = vmul.f32 %v3269_v42, %v712_v18 }
 0x1de   : > { %v745_v44 = vmul.f32 %v3978_v0, %v736_v43 }
 0x1df   : > { %v3271_v45 = vpop.eup %3270 }
 0x1e0   : > { %v3273_v46 = vpop.eup %3272  ;;  %v754_v47 = vadd.f32 %v3980_v1, %v745_v44  ;;  %v738_v48 = vmul.f32 %v3271_v45, %v714_v19 }
 0x1e1   : > { %v737_v49 = vmul.f32 %v3273_v46, %v713_v24  ;;  %v1011_v24 = vunpack.c.l.s4 %v3677_v23 }
 0x1e2   : > { %v2928_v50 = vpack.c.bf16 %v754_v47, %v754_v47  ;;  %v747_v51 = vmul.f32 %v3978_v0, %v738_v48 }
 0x1e3   : > { %v746_v52 = vmul.f32 %v3978_v0, %v737_v49  ;;  %v1012_v28 = vunpack.c.0.s8 %v1011_v24 }
 0x1e4   : > { %771 = vst.msk [vmem:[#allocation4] sm:$0xf] %vm770_vm1, %v2928_v50  ;;  %v756_v53 = vadd.f32 %v3980_v1, %v747_v51 }
 0x1e5   : > { %v755_v54 = vadd.f32 %v3980_v1, %v746_v52  ;;  %v4040_v34 = vsub.s32 %v1012_v28, %v983_v26 }
 0x1e6   : > { %v758_v55 = vpack.c.bf16 %v756_v53, %v756_v53 }
 0x1e7   : > { %v757_v56 = vpack.c.bf16 %v755_v54, %v754_v47  ;;  %v2929_v57 = vpack.c.bf16 %v755_v54, %v755_v54 }
 0x1e8   : > { %773 = vst.msk [vmem:[#allocation4 + $0x8] sm:$0xf] %vm770_vm1, %v758_v55 }
 0x1e9   : > { %772 = vst.msk [vmem:[#allocation4 + $0x4] sm:$0xf] %vm770_vm1, %v2929_v57  ;;  %2977 = vmatprep.mubr.msk.bf16.mxu0 %vm698_vm0, %v757_v56  ;;  %2985 = vmatprep.mubr.msk.bf16.mxu1 %vm698_vm0, %v757_v56 }
 0x1ea   : > { %2978 = vmatmul.mubr.msk.bf16.vlgmr.msra.gmra.mxu0 %vm698_vm0, %v758_v55  ;;  %2986 = vmatmul.mubr.msk.bf16.vlgmr.msra.gmra.mxu1 %vm698_vm0, %v758_v55 }
 0x2aa   : > { %v2979_v59 = vpop.f32.mrf.mxu0  ;;  %v2987_v60 = vpop.f32.mrf.mxu1 }
 0x2ab   : > { %v917_v61 = vadd.f32 %v2987_v60, %v2864_v58  ;;  %v846_v17 = vadd.f32 %v2979_v59, %v2859_v14 }
 0x2ac   : > { %v837_v62 = vpop.f32.mrf.mxu0  ;;  %v908_v63 = vpop.f32.mrf.mxu1 }
 0x2ad   : > { %v960_v0 = vpack.c.bf16 %v917_v61, %v917_v61  ;;  %v909_v10 = vadd.f32 %v2864_v58, %v908_v63  ;;  %v838_v16 = vadd.f32 %v2859_v14, %v837_v62  ;;  %v923_v19 = vpack.c.bf16 %v846_v17, %v846_v17 }
 0x2ae   : > { %v2980_v1 = vpop.f32.mrf.mxu0  ;;  %v2988_v8 = vpop.f32.mrf.mxu1 }
 0x2af   : > { %965 = vrot.lane.b32.xlu1 %v960_v0, %s3673_s0  ;;  %v4050_v45 = vrot.slane %v960_v0, %v4037_v29 }
 0x2b0   : > { %v911_v9 = vpop.f32.mrf.mxu1  ;;  %v840_v13 = vpop.f32.mrf.mxu0 }
 0x2b1   : > { %v912_v11 = vadd.f32 %v2864_v58, %v911_v9  ;;  %v841_v15 = vadd.f32 %v2859_v14, %v840_v13 }
 0x2b3   : > { %v959_v12 = vpack.c.bf16 %v912_v11, %v909_v10  ;;  %v922_v18 = vpack.c.bf16 %v841_v15, %v838_v16 }
 0x2b5   : > { %968 = vrot.lane.b32.xlu1 %v959_v12, %s3674_s2  ;;  %963 = vrot.lane.b32.xlu0 %v959_v12, %s3673_s0  ;;  %v978_v31 = vcombine.high %v959_v12, %v3678_v30  ;;  %v985_v35 = vrot.slane %v959_v12, %v4037_v29 }
 0x2b7   : > { %v992_v39 = vrot.slane %v978_v31, %v4037_v29 }
 0x2b9   : > { %973 = vrot.lane.b32.xlu1 %v959_v12, %s3675_s22  ;;  %970 = vrot.lane.b32.xlu0 %v960_v0, %s3674_s2 }
 0x2bd   : > { %975 = vrot.lane.b32.xlu1 %v960_v0, %s3675_s22 }
 0x2d7   : > { %924 = vxpose.xlu0.c.b16.start [1/2] (short) (narrow) %v922_v18, 32 }
 0x2db   : > { %925 = vxpose.xlu0.c.b16.end [2/2] (short) (narrow) %v923_v19, 32 }
 0x321   : > { %v4035_v27 = vpop.permute.xlu1 %965 }
 0x327   : > { %v969_v32 = vpop.permute.xlu1 %968  ;;  %v964_v33 = vpop.permute.xlu0 %963 }
 0x328   : > { %v993_v36 = vcombine.high %v969_v32, %v3678_v30  ;;  %v1000_v37 = vrot.slane %v969_v32, %v4037_v29  ;;  %v1044_v38 = vcombine.high %v964_v33, %v3678_v30  ;;  %v1051_v43 = vrot.slane %v964_v33, %v4037_v29 }
 0x32a   : > { %v1007_v40 = vrot.slane %v993_v36, %v4037_v29  ;;  %v1008_v41 = vcombine.low %v985_v35, %v1000_v37  ;;  %v1009_v42 = vcombine.high %v985_v35, %v1000_v37  ;;  %v1058_v51 = vrot.slane %v1044_v38, %v4037_v29 }
 0x32b   : > { %v974_v44 = vpop.permute.xlu1 %973  ;;  %v971_v46 = vpop.permute.xlu0 %970 }
 0x32c   : > { %v1016_v47 = vrot.slane %v1008_v41, %v4040_v34  ;;  %v1023_v48 = vrot.slane %v1009_v42, %v4040_v34  ;;  %v1024_v49 = vcombine.low %v992_v39, %v1007_v40  ;;  %v1025_v50 = vcombine.high %v992_v39, %v1007_v40 }
 0x32d   : > { %v1059_v52 = vcombine.high %v974_v44, %v3678_v30  ;;  %v1066_v53 = vrot.slane %v974_v44, %v4037_v29  ;;  %v4058_v54 = vrot.slane %v971_v46, %v4037_v29 }
 0x32e   : > { %v1032_v55 = vrot.slane %v1024_v49, %v4040_v34  ;;  %v1039_v56 = vrot.slane %v1025_v50, %v4040_v34  ;;  %v1040_v57 = vcombine.high %v1016_v47, %v3678_v30  ;;  %v1041_v58 = vcombine.high %v1023_v48, %v3678_v30 }
 0x32f   : > { %v1181_v59 = vshrl.u32 %v1016_v47, 16  ;;  %v1197_v60 = vshrl.u32 %v1023_v48, 16  ;;  %v1073_v61 = vrot.slane %v1059_v52, %v4037_v29  ;;  %v1074_v62 = vcombine.low %v1051_v43, %v1066_v53 }
 0x330   : > { %v1042_v63 = vcombine.high %v1032_v55, %v3678_v30  ;;  %v1043_v0 = vcombine.high %v1039_v56, %v3678_v30  ;;  %v1189_v1 = vshrl.u32 %v1040_v57, 16  ;;  %v1205_v8 = vshrl.u32 %v1041_v58, 16 }
 0x331   : > { %v1213_v9 = vshrl.u32 %v1032_v55, 16  ;;  %v1229_v10 = vshrl.u32 %v1039_v56, 16  ;;  %v1075_v11 = vcombine.high %v1051_v43, %v1066_v53  ;;  %v1082_v12 = vrot.slane %v1074_v62, %v4040_v34 }
 0x332   : > { %v1221_v13 = vshrl.u32 %v1042_v63, 16  ;;  %v1237_v14 = vshrl.u32 %v1043_v0, 16  ;;  %v1090_v15 = vcombine.low %v1058_v51, %v1073_v61  ;;  %v1091_v16 = vcombine.high %v1058_v51, %v1073_v61 }
 0x333   : > { %v1089_v17 = vrot.slane %v1075_v11, %v4040_v34  ;;  %v1106_v18 = vcombine.high %v1082_v12, %v3678_v30  ;;  %v1179_v19 = vpack.i.b16 %v1082_v12, %v1016_v47  ;;  %v1182_v20 = vshrl.u32 %v1082_v12, 16 }
 0x334   : > { %v1098_v21 = vrot.slane %v1090_v15, %v4040_v34  ;;  %v1105_v22 = vrot.slane %v1091_v16, %v4040_v34  ;;  %v1125_v23 = vcombine.low %v4050_v45, %v4058_v54  ;;  %v1126_v24 = vcombine.high %v4050_v45, %v4058_v54 }
 0x335   : > { %v1107_v25 = vcombine.high %v1089_v17, %v3678_v30  ;;  %v1183_v26 = vpack.i.b16 %v1182_v20, %v1181_v59  ;;  %v1187_v28 = vpack.i.b16 %v1106_v18, %v1040_v57  ;;  %v1190_v31 = vshrl.u32 %v1106_v18, 16 }
 0x336   : > { %v1108_v32 = vcombine.high %v1098_v21, %v3678_v30  ;;  %v1109_v33 = vcombine.high %v1105_v22, %v3678_v30  ;;  %v1195_v35 = vpack.i.b16 %v1089_v17, %v1023_v48  ;;  %v1198_v36 = vshrl.u32 %v1089_v17, 16 }
 0x337   : > { %v1191_v37 = vpack.i.b16 %v1190_v31, %v1189_v1  ;;  %v1203_v38 = vpack.i.b16 %v1107_v25, %v1041_v58  ;;  %v1206_v39 = vshrl.u32 %v1107_v25, 16  ;;  %v1211_v40 = vpack.i.b16 %v1098_v21, %v1032_v55 }
 0x338   : > { %v1199_v41 = vpack.i.b16 %v1198_v36, %v1197_v60  ;;  %v1214_v42 = vshrl.u32 %v1098_v21, 16  ;;  %v1219_v43 = vpack.i.b16 %v1108_v32, %v1042_v63  ;;  %v1222_v44 = vshrl.u32 %v1108_v32, 16 }
 0x339   : > { %v1207_v45 = vpack.i.b16 %v1206_v39, %v1205_v8  ;;  %v1227_v46 = vpack.i.b16 %v1105_v22, %v1039_v56  ;;  %v1230_v47 = vshrl.u32 %v1105_v22, 16  ;;  %v1235_v49 = vpack.i.b16 %v1109_v33, %v1043_v0  ;;  %v932_v62 = vpop.trf.xlu0 }
 0x33a   : > { %v1215_v50 = vpack.i.b16 %v1214_v42, %v1213_v9  ;;  %v1223_v51 = vpack.i.b16 %v1222_v44, %v1221_v13  ;;  %v1238_v52 = vshrl.u32 %v1109_v33, 16  ;;  %v1273_v53 = vcombine.low %v1179_v19, %v1195_v35 }
 0x33b   : > { %v1231_v54 = vpack.i.b16 %v1230_v47, %v1229_v10  ;;  %v1281_v57 = vcombine.low %v1187_v28, %v1203_v38  ;;  %v1289_v48 = vcombine.low %v1211_v40, %v1227_v46  ;;  %v1297_v59 = vcombine.low %v1219_v43, %v1235_v49 }
 0x33c   : > { %v1239_v61 = vpack.i.b16 %v1238_v52, %v1237_v14  ;;  %v1280_v58 = vrot.slane %v1273_v53, %v4037_v29  ;;  %v1323_v55 = vcombine.low %v1183_v26, %v1199_v41  ;;  %v1331_v60 = vcombine.low %v1191_v37, %v1207_v45  ;;  %v976_v14 = vpop.permute.xlu1 %975 }
 0x33d   : > { %v1288_v63 = vrot.slane %v1281_v57, %v4037_v29  ;;  %v1296_v56 = vrot.slane %v1289_v48, %v4037_v29  ;;  %v1304_v0 = vrot.slane %v1297_v59, %v4037_v29  ;;  %v1339_v1 = vcombine.low %v1215_v50, %v1231_v54  ;;  %v933_v26 = vpop.trf.xlu0 }
 0x33e   : > { %v1330_v8 = vrot.slane %v1323_v55, %v4037_v29  ;;  %v1338_v9 = vrot.slane %v1331_v60, %v4037_v29  ;;  %v1347_v10 = vcombine.low %v1223_v51, %v1239_v61  ;;  %v4086_v11 = vrot.slane %v1125_v23, %v4040_v34 }
 0x33f   : > { %v1305_v12 = vcombine.low %v1280_v58, %v1288_v63  ;;  %v1313_v13 = vcombine.low %v1296_v56, %v1304_v0  ;;  %v1346_v15 = vrot.slane %v1339_v1, %v4037_v29  ;;  %v4093_v20 = vrot.slane %v1126_v24, %v4040_v34 }
 0x340   : > { %v1354_v16 = vrot.slane %v1347_v10, %v4037_v29  ;;  %v1355_v17 = vcombine.low %v1330_v8, %v1338_v9  ;;  %v1150_v21 = vrot.slane %v4035_v27, %v4037_v29  ;;  %v4099_v23 = vcombine.high %v4086_v11, %v3678_v30 }
 0x341   : > { %v1312_v18 = vrot.slane %v1305_v12, %v4040_v34  ;;  %v1320_v19 = vrot.slane %v1313_v13, %v4040_v34  ;;  %v1158_v25 = vrot.slane %v976_v14, %v4037_v29  ;;  %v2869_v33 = vcombine.low %v932_v62, %v932_v62 }
 0x342   : > { %v1363_v22 = vcombine.low %v1346_v15, %v1354_v16  ;;  %v1362_v32 = vrot.slane %v1355_v17, %v4040_v34  ;;  %v2870_v37 = vcombine.high %v932_v62, %v932_v62  ;;  %v1142_v27 = vcombine.high %v4093_v20, %v3678_v30 }
 0x343   : > { %v1321_v28 = vcombine.low %v1312_v18, %v1320_v19  ;;  %v1322_v31 = vcombine.high %v1312_v18, %v1320_v19  ;;  %v1159_v35 = vcombine.low %v1150_v21, %v1158_v25  ;;  %v1160_v36 = vcombine.high %v1150_v21, %v1158_v25  ;;  %955 = vst.msk [vmem:[#allocation2] sm:$0xf] %vm954_vm3, %v2869_v33 }
 0x344   : > { %v1370_v24 = vrot.slane %v1363_v22, %v4040_v34  ;;  %v1245_v38 = vshrl.u32 %v4086_v11, 16  ;;  %v2871_v39 = vcombine.low %v933_v26, %v933_v26  ;;  %v2872_v40 = vcombine.high %v933_v26, %v933_v26  ;;  %956 = vst.msk [vmem:[#allocation2 + $0x4] sm:$0xf] %vm954_vm3, %v2870_v37 }
 0x345   : > { %v1167_v43 = vrot.slane %v1159_v35, %v4040_v34  ;;  %v1174_v44 = vrot.slane %v1160_v36, %v4040_v34  ;;  %v1426_v45 = vshrl.u32 %v1321_v28, 16  ;;  %v1432_v46 = vshrl.u32 %v1322_v31, 16 }
 0x346   : > { %v1371_v41 = vcombine.low %v1362_v32, %v1370_v24  ;;  %v1372_v42 = vcombine.high %v1362_v32, %v1370_v24  ;;  %v1253_v47 = vshrl.u32 %v4099_v23, 16  ;;  %v1261_v49 = vshrl.u32 %v4093_v20, 16  ;;  %957 = vst.msk [vmem:[#allocation2 + $0x8] sm:$0xf] %vm954_vm3, %v2871_v39  ;;  %958 = vst.msk [vmem:[#allocation2 + $0xc] sm:$0xf] %vm954_vm3, %v2872_v40 }
 0x347   : > { %v1175_v54 = vcombine.high %v1167_v43, %v3678_v30  ;;  %v1176_v57 = vcombine.high %v1174_v44, %v3678_v30  ;;  %v1243_v48 = vpack.i.b16 %v1167_v43, %v4086_v11  ;;  %v1246_v59 = vshrl.u32 %v1167_v43, 16 }
 0x348   : > { %v1425_v50 = vpack.i.b16 %v1371_v41, %v1321_v28  ;;  %v1427_v51 = vshrl.u32 %v1371_v41, 16  ;;  %v1431_v52 = vpack.i.b16 %v1372_v42, %v1322_v31  ;;  %v1433_v53 = vshrl.u32 %v1372_v42, 16 }
 0x349   : > { %v1247_v56 = vpack.i.b16 %v1246_v59, %v1245_v38  ;;  %v1251_v0 = vpack.i.b16 %v1175_v54, %v4099_v23  ;;  %v1254_v11 = vshrl.u32 %v1175_v54, 16  ;;  %v1259_v12 = vpack.i.b16 %v1174_v44, %v4093_v20 }
 0x34a   : > { %v1428_v61 = vpack.i.b16 %v1427_v51, %v1426_v45  ;;  %v1434_v58 = vpack.i.b16 %v1433_v53, %v1432_v46  ;;  %v2873_v55 = vcombine.low %v1425_v50, %v1425_v50  ;;  %v2874_v60 = vcombine.high %v1425_v50, %v1425_v50 }
 0x34b   : > { %v2879_v62 = vcombine.low %v1431_v52, %v1431_v52  ;;  %v2880_v63 = vcombine.high %v1431_v52, %v1431_v52  ;;  %v1262_v13 = vshrl.u32 %v1174_v44, 16  ;;  %v1267_v14 = vpack.i.b16 %v1176_v57, %v1142_v27 }
 0x34c   : > { %v2876_v1 = vcombine.low %v1428_v61, %v1428_v61  ;;  %v2877_v8 = vcombine.high %v1428_v61, %v1428_v61  ;;  %v2882_v9 = vcombine.low %v1434_v58, %v1434_v58  ;;  %v2883_v10 = vcombine.high %v1434_v58, %v1434_v58  ;;  %1484 = vst.msk [vmem:[#allocation3] sm:$0xf] %vm1483_vm2, %v2873_v55 }
 0x34d   : > { %1485 = vst.msk [vmem:[#allocation3 + $0x4] sm:$0xf] %vm1483_vm2, %v2874_v60  ;;  %1490 = vst.msk [vmem:[#allocation3 + $0x18] sm:$0xf] %vm1483_vm2, %v2879_v62  ;;  %v1269_v15 = vshrl.u32 %v1142_v27, 16  ;;  %v1270_v16 = vshrl.u32 %v1176_v57, 16  ;;  %v1255_v17 = vpack.i.b16 %v1254_v11, %v1253_v47  ;;  %v1263_v18 = vpack.i.b16 %v1262_v13, %v1261_v49 }
 0x34e   : > { %1491 = vst.msk [vmem:[#allocation3 + $0x1c] sm:$0xf] %vm1483_vm2, %v2880_v63  ;;  %1487 = vst.msk [vmem:[#allocation3 + $0xc] sm:$0xf] %vm1483_vm2, %v2876_v1  ;;  %v1373_v19 = vcombine.low %v1243_v48, %v1259_v12  ;;  %v1381_v21 = vcombine.low %v1251_v0, %v1267_v14 }
 0x34f   : > { %1488 = vst.msk [vmem:[#allocation3 + $0x10] sm:$0xf] %vm1483_vm2, %v2877_v8  ;;  %1493 = vst.msk [vmem:[#allocation3 + $0x24] sm:$0xf] %vm1483_vm2, %v2882_v9  ;;  %v1271_v22 = vpack.i.b16 %v1270_v16, %v1269_v15  ;;  %v1398_v25 = vcombine.low %v1247_v56, %v1263_v18 }
 0x350   : > { %1494 = vst.msk [vmem:[#allocation3 + $0x28] sm:$0xf] %vm1483_vm2, %v2883_v10  ;;  %v1380_v23 = vrot.slane %v1373_v19, %v4037_v29  ;;  %v1388_v20 = vrot.slane %v1381_v21, %v4037_v29 }
 0x351   : > { %v1406_v26 = vcombine.low %v1255_v17, %v1271_v22  ;;  %v1405_v31 = vrot.slane %v1398_v25, %v4037_v29 }
 0x352   : > { %v1389_v28 = vcombine.low %v1380_v23, %v1388_v20 }
 0x353   : > { %v1413_v32 = vrot.slane %v1406_v26, %v4037_v29 }
 0x354   : > { %v1396_v33 = vrot.slane %v1389_v28, %v4040_v34 }
 0x355   : > { %v1414_v24 = vcombine.low %v1405_v31, %v1413_v32 }
 0x356   : > { %v1397_v35 = vcombine.high %v1396_v33, %v3678_v30  ;;  %v1438_v38 = vshrl.u32 %v1396_v33, 16 }
 0x357   : > { %v1421_v36 = vrot.slane %v1414_v24, %v4040_v34 }
 0x358   : > { %v1444_v40 = vshrl.u32 %v1397_v35, 16 }
 0x359   : > { %v1422_v37 = vcombine.high %v1421_v36, %v3678_v30  ;;  %v1437_v27 = vpack.i.b16 %v1421_v36, %v1396_v33  ;;  %v1439_v39 = vshrl.u32 %v1421_v36, 16 }
 0x35b   : > { %v1440_v41 = vpack.i.b16 %v1439_v39, %v1438_v38  ;;  %v1443_v42 = vpack.i.b16 %v1422_v37, %v1397_v35  ;;  %v1445_v43 = vshrl.u32 %v1422_v37, 16  ;;  %v2875_v44 = vcombine.low %v1437_v27, %v1437_v27 }
 0x35d   : > { %v1446_v45 = vpack.i.b16 %v1445_v43, %v1444_v40  ;;  %v2878_v46 = vcombine.low %v1440_v41, %v1440_v41  ;;  %v2881_v29 = vcombine.low %v1443_v42, %v1443_v42  ;;  %1486 = vst.msk [vmem:[#allocation3 + $0x8] sm:$0xf] %vm1483_vm2, %v2875_v44 }
 0x35f   : > { %v2884_v47 = vcombine.low %v1446_v45, %v1446_v45  ;;  %1489 = vst.msk [vmem:[#allocation3 + $0x14] sm:$0xf] %vm1483_vm2, %v2878_v46  ;;  %1492 = vst.msk [vmem:[#allocation3 + $0x20] sm:$0xf] %vm1483_vm2, %v2881_v29 }
 0x361   : > { %1495 = vst.msk [vmem:[#allocation3 + $0x2c] sm:$0xf] %vm1483_vm2, %v2884_v47 }
 0x362 PF: > { %v3274_v30 = vld [vmem:[#allocation10 + $0x8] sm:$0xff]   ;;  %v3679_v34 = vmov 0.0   ;;  %v3275_v49 = vld [vmem:[#allocation10] sm:$0xff]   ;;  %vm3680_vm4 = vmmov 0   ;;  %s2885_s19 = sshll.u32 %s3644_s27, 3  ;;  %vm1526_vm5 = vcmask 261120   ;;  %v1582_v60 = vlaneseq }
 0x363   : > { %2989 = vmatprep.subr.bf16.mxu0 %v3679_v34  ;;  %2997 = vmatprep.subr.bf16.mxu1 %v3679_v34  ;;  %s1499_s15 = sshra.s32 %s2885_s19, 3  ;;  %s3681_s26 = smov 104   ;;  %v1740_v61 = vld [vmem:[#allocation2] sm:$0xf]  ;;  %vm1748_vm6 = vcmask 1043456   ;;  %v3686_v20 = vmov 0  }
 0x364   : > { %2990 = vmatpush3.bf16.msra.mxu0 %v3274_v30  ;;  %2993 = vmatprep.mubr.msk.bf16.mxu0 %vm3680_vm4, %v3679_v34  ;;  %s2886_s24 = sshll.u32 %s1499_s15, 2  ;;  %s3682_s9 = smov 120   ;;  %v1750_v58 = vsel %vm1748_vm6, %v1740_v61, 0  ;;  %v3684_v55 = vmov 1983009808   ;;  %v1583_v0 = vshrl.u32 %v1582_v60, 7 }
 0x365   : > { %2991 = vmatprep.subr.bf16.mxu0 %v3679_v34  ;;  %2999 = vmatprep.mubr.msk.bf16.mxu1 %vm3680_vm4, %v3679_v34  ;;  %s1502_s18 = scalar_lea.vmem [#allocation4], %s2886_s24  ;;  %s3683_s20 = smov 112   ;;  %v3685_v62 = vmov 1934713408   ;;  %v1741_v61 = vld [vmem:[#allocation2 + $0x4] sm:$0xf] }
 0x366   : > { %v1503_v50 = vld [vmem:[%s1502_s18] sm:$0xf]  ;;  %2998 = vmatpush3.bf16.msra.mxu1 %v1750_v58  ;;  %v1597_v63 = vunpack.c.l.s4 %v3685_v62  ;;  %vm1744_vm7 = vcmask 64512   ;;  %v1796_v62 = vsel %vm1748_vm6, %v1741_v61, 0  ;;  %vm1939_vm9 = vcmask 195584   ;;  %s4418_s22 = sld [smem:[#allocation38_spill]] }
 0x367   : > { %3003 = vmatprep.subr.bf16.mxu1 %v3679_v34  ;;  %s3687_s18 = smov 8   ;;  %vm2391_vm10 = vcmask 130048   ;;  %s4419_s0 = sld [smem:[#allocation39_spill]]  ;;  %vm2602_vm11 = vcmask 523264  }
 0x368   : > { %2992 = vmatpush3.bf16.msra.mxu0 %v3275_v49  ;;  %v1598_v1 = vunpack.c.0.s8 %v1597_v63  ;;  %s2664_s15 = sshll.u32 %s676_s29, 4  ;;  %p4423_p9 = scmp.ne.s32.totalorder %s4404_s23, 0  ;;  %s4306_s15 = int_to_ptr.vmem [resolvable:$true] %s2664_s15 }
 0x369   : > { %3021 = vmatprep.subr.bf16.mxu0 %v3679_v34 }
 0x36a   : > { %v4161_v12 = vsub.s32 %v1598_v1, %v1583_v0 }
 0x36b   : > { %2994 = vmatmul.mubr.msk.bf16.vlgmr.msra.gmra.mxu0 %vm1526_vm5, %v1503_v50 }
 0x36c   : > { %3025 = vmatprep.mubr.msk.bf16.mxu0 %vm3680_vm4, %v3679_v34 }
 0x36d   : > { %s4420_s2 = smov %s4419_s0 }
 0x42b   : > { %v1564_v51 = vpop.f32.mrf.mxu0 }
 0x42c   : > { %v1565_v52 = vadd.f32 %v3997_v4, %v1564_v51  ;;  %v1580_v4 = vunpack.c.l.s4 %v3684_v55 }
 0x42d   : > { %v2995_v53 = vpop.f32.mrf.mxu0 }
 0x42e   : > { %v1570_v54 = vmul.f32 0.35355338, %v1565_v52  ;;  %v1581_v56 = vunpack.c.0.s8 %v1580_v4 }
 0x42f   : > { %v1567_v57 = vpop.f32.mrf.mxu0 }
 0x430   : > { %v1571_v48 = vpack.c.bf16 %v1570_v54, %v1570_v54  ;;  %v4158_v8 = vsub.s32 %v1581_v56, %v1583_v0  ;;  %v1742_v56 = vld [vmem:[#allocation2 + $0x8] sm:$0xf] }
 0x431   : > { %v2996_v59 = vpop.f32.mrf.mxu0 }
 0x432   : > { %1577 = vrot.lane.b32.xlu1 %v1571_v48, %s3681_s26  ;;  %1573 = vrot.lane.b32.xlu0 %v1571_v48, %s3682_s9  ;;  %v1585_v19 = vrot.slane %v1571_v48, %v4158_v8  ;;  %s3688_s26 = smov 16   ;;  %s3689_s9 = smov 24  }
 0x436   : > { %1575 = vrot.lane.b32.xlu0 %v1571_v48, %s3683_s20  ;;  %s1497_s20 = scalar_lea.vmem %s3990_s21, %s2885_s19  ;;  %s3082_s21 = smul.u32 3, %s3648_s28 }
 0x437   : > { %s3548_s28 = scalar_lea.vmem %s4306_s15, 128 }
 0x438   : > { %s2660_s19 = sadd.s32 %s3644_s27, %s3082_s21  ;;  %s2649_s27 = scalar_lea.sflag [#allocation7], %s674_s17 }
 0x439   : > { %p3549_p12 = scmp.ne.s32.totalorder %s4306_s15, %s3548_s28  ;;  %s3690_s21 = smov [#allocation20]  }
 0x43b   : > { %p3550_p10 = pnand %p3549_p12, %p4423_p9 }
 0x43d   : > { %p3551_p11 = pneg %p3550_p10 }
 0x4a4   : > { %v1578_v9 = vpop.permute.xlu1 %1577  ;;  %v1574_v10 = vpop.permute.xlu0 %1573 }
 0x4a5   : > { %v1627_v11 = vrot.slane %v1578_v9, %v4158_v8  ;;  %v1619_v13 = vrot.slane %v1574_v10, %v4158_v8  ;;  %v1842_v9 = vsel %vm1748_vm6, %v1742_v56, 0  ;;  %v3276_v56 = vld [vmem:[#allocation3 + $0x8] ss:$0 sps:$4 sm:$0xff]  }
 0x4a7   : > { %v1628_v14 = vcombine.low %v1619_v13, %v1627_v11  ;;  %v1629_v15 = vcombine.high %v1619_v13, %v1627_v11  ;;  %v1743_v11 = vld [vmem:[#allocation2 + $0xc] sm:$0xf] }
 0x4a8   : > { %v1576_v16 = vpop.permute.xlu0 %1575 }
 0x4a9   : > { %v1636_v17 = vrot.slane %v1628_v14, %v4161_v12  ;;  %v1593_v18 = vrot.slane %v1576_v16, %v4158_v8  ;;  %v1643_v21 = vrot.slane %v1629_v15, %v4161_v12  ;;  %v1888_v15 = vsel %vm1748_vm6, %v1743_v11, 0  ;;  %v3278_v11 = vld [vmem:[#allocation3 + $0x14] ss:$0 sps:$4 sm:$0xff]  }
 0x4ab   : > { %v1594_v22 = vcombine.low %v1585_v19, %v1593_v18  ;;  %v1595_v23 = vcombine.high %v1585_v19, %v1593_v18  ;;  %v1644_v25 = vcombine.high %v1636_v17, %v3686_v20  ;;  %v1645_v31 = vcombine.high %v1643_v21, %v3686_v20 }
 0x4ac   : > { %v1651_v32 = vshrl.u32 %v1636_v17, 16  ;;  %v1667_v27 = vshrl.u32 %v1643_v21, 16  ;;  %v1931_v19 = vand.u32 127, %v1582_v60 }
 0x4ad   : > { %v1602_v26 = vrot.slane %v1594_v22, %v4161_v12  ;;  %v1609_v28 = vrot.slane %v1595_v23, %v4161_v12  ;;  %v1659_v37 = vshrl.u32 %v1644_v25, 16  ;;  %v1675_v44 = vshrl.u32 %v1645_v31, 16 }
 0x4ae   : > { %vm1932_vm8 = vcmp.lt.s32.totalorder %v1931_v19, 20 }
 0x4af   : > { %v1610_v33 = vcombine.high %v1602_v26, %v3686_v20  ;;  %v1611_v24 = vcombine.high %v1609_v28, %v3686_v20  ;;  %v1648_v35 = vpack.i.b16 %v1636_v17, %v1602_v26  ;;  %v1650_v36 = vshrl.u32 %v1602_v26, 16 }
 0x4b0   : > { %v1664_v38 = vpack.i.b16 %v1643_v21, %v1609_v28  ;;  %v1666_v39 = vshrl.u32 %v1609_v28, 16 }
 0x4b1   : > { %v1652_v40 = vpack.i.b16 %v1651_v32, %v1650_v36  ;;  %v1656_v41 = vpack.i.b16 %v1644_v25, %v1610_v33  ;;  %v1658_v42 = vshrl.u32 %v1610_v33, 16  ;;  %v1672_v43 = vpack.i.b16 %v1645_v31, %v1611_v24 }
 0x4b2   : > { %v1668_v45 = vpack.i.b16 %v1667_v27, %v1666_v39  ;;  %v1674_v46 = vshrl.u32 %v1611_v24, 16  ;;  %v1678_v29 = vcombine.low %v1648_v35, %v1664_v38 }
 0x4b3   : > { %v1660_v47 = vpack.i.b16 %v1659_v37, %v1658_v42  ;;  %v1686_v30 = vcombine.low %v1656_v41, %v1672_v43 }
 0x4b4   : > { %v1676_v49 = vpack.i.b16 %v1675_v44, %v1674_v46  ;;  %v1703_v50 = vcombine.low %v1652_v40, %v1668_v45  ;;  %v1685_v52 = vrot.slane %v1678_v29, %v4158_v8 }
 0x4b5   : > { %v1693_v51 = vrot.slane %v1686_v30, %v4158_v8 }
 0x4b6   : > { %v1711_v53 = vcombine.low %v1660_v47, %v1676_v49  ;;  %v1710_v54 = vrot.slane %v1703_v50, %v4158_v8 }
 0x4b7   : > { %v1694_v57 = vcombine.low %v1685_v52, %v1693_v51 }
 0x4b8   : > { %v1718_v48 = vrot.slane %v1711_v53, %v4158_v8 }
 0x4b9   : > { %v1701_v58 = vrot.slane %v1694_v57, %v4161_v12 }
 0x4ba   : > { %v1719_v59 = vcombine.low %v1710_v54, %v1718_v48 }
 0x4bb   : > { %v1731_v0 = vshrl.u32 %v1701_v58, 16  ;;  %v1702_v13 = vcombine.high %v1701_v58, %v3686_v20 }
 0x4bc   : > { %v1726_v55 = vrot.slane %v1719_v59, %v4161_v12 }
 0x4bd   : > { %v1737_v17 = vshrl.u32 %v1702_v13, 16 }
 0x4be   : > { %v1730_v4 = vpack.i.b16 %v1726_v55, %v1701_v58  ;;  %v1732_v63 = vshrl.u32 %v1726_v55, 16  ;;  %v1727_v10 = vcombine.high %v1726_v55, %v3686_v20 }
 0x4c0   : > { %3000 = vmatmul.mubr.msk.bf16.vlgmr.msra.gmra.mxu1 %vm1744_vm7, %v1730_v4  ;;  %v1733_v1 = vpack.i.b16 %v1732_v63, %v1731_v0  ;;  %v1736_v14 = vpack.i.b16 %v1727_v10, %v1702_v13  ;;  %v1738_v16 = vshrl.u32 %v1727_v10, 16  ;;  %v2013_v0 = vsel %vm1748_vm6, %v3276_v56, 0 }
 0x4c1   : > { %3004 = vmatpush3.bf16.msra.mxu1 %v1796_v62  ;;  %3005 = vmatprep.mubr.msk.bf16.mxu1 %vm3680_vm4, %v3679_v34  ;;  %v2068_v13 = vsel %vm1748_vm6, %v3278_v11, 0 }
 0x4c2   : > { %3009 = vmatprep.subr.bf16.mxu1 %v3679_v34  ;;  %v1739_v18 = vpack.i.b16 %v1738_v16, %v1737_v17  ;;  %3022 = vmatpush3.bf16.msra.mxu0 %v2013_v0  ;;  %v3280_v17 = vld [vmem:[#allocation3 + $0x20] ss:$0 sps:$4 sm:$0xff]  }
 0x4c3   : > { %3023 = vmatprep.subr.bf16.mxu0 %v3679_v34 }
 0x4c8   : > { %3006 = vmatmul.mubr.msk.bf16.vlgmr.msra.gmra.mxu1 %vm1744_vm7, %v1733_v1  ;;  %v3277_v1 = vld [vmem:[#allocation3] sm:$0xff]  }
 0x4c9   : > { %3010 = vmatpush3.bf16.msra.mxu1 %v1842_v9  ;;  %3011 = vmatprep.mubr.msk.bf16.mxu1 %vm3680_vm4, %v3679_v34 }
 0x4ca   : > { %3015 = vmatprep.subr.bf16.mxu1 %v3679_v34  ;;  %3024 = vmatpush3.bf16.msra.mxu0 %v3277_v1 }
 0x4cb   : > { %3037 = vmatprep.subr.bf16.mxu0 %v3679_v34 }
 0x4d0   : > { %3012 = vmatmul.mubr.msk.bf16.vlgmr.msra.gmra.mxu1 %vm1744_vm7, %v1736_v14  ;;  %v3279_v14 = vld [vmem:[#allocation3 + $0xc] sm:$0xff]  }
 0x4d1   : > { %3016 = vmatpush3.bf16.msra.mxu1 %v1888_v15  ;;  %3017 = vmatprep.mubr.msk.bf16.mxu1 %vm3680_vm4, %v3679_v34 }
 0x4d2   : > { %3029 = vmatprep.subr.bf16.mxu1 %v3679_v34 }
 0x4d8   : > { %3018 = vmatmul.mubr.msk.bf16.vlgmr.msra.gmra.mxu1 %vm1744_vm7, %v1739_v18 }
 0x4d9   : > { %3033 = vmatprep.mubr.msk.bf16.mxu1 %vm3680_vm4, %v3679_v34  ;;  %3030 = vmatpush3.bf16.msra.mxu1 %v2068_v13 }
 0x4da   : > { %3031 = vmatprep.subr.bf16.mxu1 %v3679_v34 }
 0x4dd   : > { %3032 = vmatpush3.bf16.msra.mxu1 %v3279_v14 }
 0x4de   : > { %3045 = vmatprep.subr.bf16.mxu1 %v3679_v34 }
 0x580   : > { %v1786_v21 = vpop.f32.mrf.mxu1 }
 0x581   : > { %v1935_v22 = vsel %vm1932_vm8, %v1786_v21, -1e+30 }
 0x582   : > { %v3001_v23 = vpop.f32.mrf.mxu1  ;;  %v1940_v25 = vsel %vm1939_vm9, %v1935_v22, -inf }
 0x583   : > { %1941 = vmax.xlane.f32.xlu1 %v1940_v25  ;;  %v2123_v23 = vsel %vm1748_vm6, %v3280_v17, 0  ;;  %v3281_v25 = vld [vmem:[#allocation3 + $0x18] sm:$0xff]  }
 0x584   : > { %v1789_v26 = vpop.f32.mrf.mxu1 }
 0x585   : > { %v3282_v26 = vld [vmem:[#allocation3 + $0x2c] ss:$0 sps:$4 sm:$0xff]  }
 0x586   : > { %v3002_v28 = vpop.f32.mrf.mxu1 }
 0x588   : > { %v1832_v31 = vpop.f32.mrf.mxu1 }
 0x589   : > { %v1936_v32 = vsel %vm1932_vm8, %v1832_v31, -1e+30 }
 0x58a   : > { %v3007_v33 = vpop.f32.mrf.mxu1  ;;  %v1943_v24 = vsel %vm1939_vm9, %v1936_v32, -inf }
 0x58b   : > { %1944 = vmax.xlane.f32.xlu0 %v1943_v24  ;;  %v2178_v24 = vsel %vm1748_vm6, %v3282_v26, 0 }
 0x58c   : > { %v1835_v35 = vpop.f32.mrf.mxu1 }
 0x58d   : > { %v3283_v35 = vld [vmem:[#allocation3 + $0x24] sm:$0xff]  }
 0x58e   : > { %v3008_v60 = vpop.f32.mrf.mxu1 }
 0x590   : > { %v1878_v36 = vpop.f32.mrf.mxu1 }
 0x591   : > { %v1937_v37 = vsel %vm1932_vm8, %v1878_v36, -1e+30 }
 0x592   : > { %v3013_v27 = vpop.f32.mrf.mxu1  ;;  %v1946_v38 = vsel %vm1939_vm9, %v1937_v37, -inf }
 0x593   : > { %1947 = vmax.xlane.f32.xlu0 %v1946_v38 }
 0x594   : > { %v1881_v39 = vpop.f32.mrf.mxu1 }
 0x596   : > { %v3014_v40 = vpop.f32.mrf.mxu1 }
 0x597   : > { %v3284_v40 = vld [vmem:[%s4418_s22 + $0x8] sm:$0xff]  }
 0x598   : > { %v1924_v41 = vpop.f32.mrf.mxu1 }
 0x599   : > { %v1938_v42 = vsel %vm1932_vm8, %v1924_v41, -1e+30 }
 0x59a   : > { %v3019_v43 = vpop.f32.mrf.mxu1  ;;  %v1949_v44 = vsel %vm1939_vm9, %v1938_v42, -inf }
 0x59b   : > { %1950 = vmax.xlane.f32.xlu1 %v1949_v44 }
 0x59c   : > { %v1927_v45 = vpop.f32.mrf.mxu1 }
 0x59e   : > { %v3020_v46 = vpop.f32.mrf.mxu1 }
 0x60c   : > { %v1942_v29 = vpop.xlane.xlu1 %1941 }
 0x60d   : > { %v1952_v47 = vsub.f32 %v1935_v22, %v1942_v29 }
 0x60f   : > { %v1956_v30 = vmul.f32 1.442695, %v1952_v47 }
 0x611   : > { %3292 = vpow2.f32 %v1956_v30 }
 0x614   : > { %v1945_v49 = vpop.xlane.xlu0 %1944 }
 0x615   : > { %v1953_v50 = vsub.f32 %v1936_v32, %v1945_v49 }
 0x617   : > { %v1958_v51 = vmul.f32 1.442695, %v1953_v50 }
 0x619   : > { %3294 = vpow2.f32 %v1958_v51 }
 0x61c   : > { %v1948_v52 = vpop.xlane.xlu0 %1947 }
 0x61d   : > { %v1954_v53 = vsub.f32 %v1937_v37, %v1948_v52 }
 0x61e   : > { %v3293_v54 = vpop.eup %3292 }
 0x61f   : > { %v1960_v57 = vmul.f32 1.442695, %v1954_v53  ;;  %v1964_v48 = vsel %vm1939_vm9, %v3293_v54, 0.0 }
 0x620   : > { %1965 = vadd.xlane.f32.xlu0 %v1964_v48 }
 0x621   : > { %3296 = vpow2.f32 %v1960_v57 }
 0x624   : > { %v1951_v59 = vpop.xlane.xlu1 %1950 }
 0x625   : > { %v1955_v61 = vsub.f32 %v1938_v42, %v1951_v59 }
 0x626   : > { %v3295_v58 = vpop.eup %3294 }
 0x627   : > { %v1962_v55 = vmul.f32 1.442695, %v1955_v61  ;;  %v1967_v4 = vsel %vm1939_vm9, %v3295_v58, 0.0 }
 0x628   : > { %1968 = vadd.xlane.f32.xlu1 %v1967_v4 }
 0x629   : > { %3298 = vpow2.f32 %v1962_v55 }
 0x62e   : > { %v3297_v62 = vpop.eup %3296 }
 0x62f   : > { %v1970_v63 = vsel %vm1939_vm9, %v3297_v62, 0.0 }
 0x630   : > { %1971 = vadd.xlane.f32.xlu0 %v1970_v63 }
 0x636   : > { %v3299_v9 = vpop.eup %3298 }
 0x637   : > { %v1973_v10 = vsel %vm1939_vm9, %v3299_v9, 0.0 }
 0x638   : > { %1974 = vadd.xlane.f32.xlu1 %v1973_v10 }
 0x6a9   : > { %v1966_v15 = vpop.xlane.xlu0 %1965 }
 0x6aa   : > { %3300 = vrcp.f32 %v1966_v15 }
 0x6b1   : > { %v1969_v16 = vpop.xlane.xlu1 %1968 }
 0x6b2   : > { %3302 = vrcp.f32 %v1969_v16 }
 0x6b7   : > { %v3301_v18 = vpop.eup %3300 }
 0x6b8   : > { %v1980_v19 = vmul.f32 %v3301_v18, %v3293_v54 }
 0x6b9   : > { %v1972_v21 = vpop.xlane.xlu0 %1971 }
 0x6ba   : > { %3304 = vrcp.f32 %v1972_v21  ;;  %v1984_v22 = vpack.c.bf16 %v1980_v19, %v1980_v19 }
 0x6bc   : > { %3026 = vmatmul.mubr.msk.bf16.vlgmr.msra.gmra.mxu0 %vm1939_vm9, %v1984_v22 }
 0x6bd   : > { %3038 = vmatpush3.bf16.msra.mxu0 %v2123_v23  ;;  %3041 = vmatprep.mubr.msk.bf16.mxu0 %vm3680_vm4, %v3679_v34 }
 0x6be   : > { %3039 = vmatprep.subr.bf16.mxu0 %v3679_v34 }
 0x6bf   : > { %v3303_v28 = vpop.eup %3302 }
 0x6c0   : > { %v1981_v31 = vmul.f32 %v3303_v28, %v3295_v58 }
 0x6c1   : > { %v1975_v32 = vpop.xlane.xlu1 %1974  ;;  %3040 = vmatpush3.bf16.msra.mxu0 %v3281_v25 }
 0x6c2   : > { %3306 = vrcp.f32 %v1975_v32  ;;  %v1985_v33 = vpack.c.bf16 %v1981_v31, %v1981_v31  ;;  %3053 = vmatprep.subr.bf16.mxu0 %v3679_v34 }
 0x6c4   : > { %3034 = vmatmul.mubr.msk.bf16.vlgmr.msra.gmra.mxu1 %vm1939_vm9, %v1985_v33 }
 0x6c5   : > { %3046 = vmatpush3.bf16.msra.mxu1 %v2178_v24  ;;  %3049 = vmatprep.mubr.msk.bf16.mxu1 %vm3680_vm4, %v3679_v34 }
 0x6c6   : > { %3047 = vmatprep.subr.bf16.mxu1 %v3679_v34 }
 0x6c7   : > { %v3305_v60 = vpop.eup %3304 }
 0x6c8   : > { %v1982_v36 = vmul.f32 %v3305_v60, %v3297_v62 }
 0x6c9   : > { %3048 = vmatpush3.bf16.msra.mxu1 %v3283_v35 }
 0x6ca   : > { %v1986_v37 = vpack.c.bf16 %v1982_v36, %v1982_v36  ;;  %3061 = vmatprep.subr.bf16.mxu1 %v3679_v34 }
 0x6cc   : > { %3042 = vmatmul.mubr.msk.bf16.vlgmr.msra.gmra.mxu0 %vm1939_vm9, %v1986_v37 }
 0x6cd   : > { %3057 = vmatprep.mubr.msk.bf16.mxu0 %vm3680_vm4, %v3679_v34  ;;  %3054 = vmatpush3.bf16.msra.mxu0 %v3284_v40 }
 0x6ce   : > { %3055 = vmatprep.subr.bf16.mxu0 %v3679_v34 }
 0x6cf   : > { %v3307_v27 = vpop.eup %3306 }
 0x6d0   : > { %v1983_v38 = vmul.f32 %v3307_v27, %v3299_v9 }
 0x6d2   : > { %v1987_v39 = vpack.c.bf16 %v1983_v38, %v1983_v38 }
 0x6d4   : > { %3050 = vmatmul.mubr.msk.bf16.vlgmr.msra.gmra.mxu1 %vm1939_vm9, %v1987_v39 }
 0x6d5   : > { %3065 = vmatprep.mubr.msk.bf16.mxu1 %vm3680_vm4, %v3679_v34 }
 0x77c   : > { %v2049_v41 = vpop.f32.mrf.mxu0 }
 0x77d   : > { %v2220_v49 = vpack.c.bf16 %v2049_v41, %v2049_v41 }
 0x77e   : > { %v3027_v42 = vpop.f32.mrf.mxu0 }
 0x77f   : > { %v2227_v54 = vrot.slane %v2220_v49, %v4158_v8 }
 0x780   : > { %v2052_v43 = vpop.f32.mrf.mxu0 }
 0x781   : > { %v3285_v43 = vld [vmem:[%s4418_s22] sm:$0xff]  }
 0x782   : > { %v3028_v44 = vpop.f32.mrf.mxu0  ;;  %3056 = vmatpush3.bf16.msra.mxu0 %v3285_v43 }
 0x783   : > { %3069 = vmatprep.subr.bf16.mxu0 %v3679_v34 }
 0x784   : > { %v2104_v45 = vpop.f32.mrf.mxu1 }
 0x785   : > { %v2254_v59 = vpack.c.bf16 %v2104_v45, %v2104_v45 }
 0x786   : > { %v3035_v46 = vpop.f32.mrf.mxu1 }
 0x787   : > { %v2261_v63 = vrot.slane %v2254_v59, %v4158_v8 }
 0x788   : > { %v2107_v29 = vpop.f32.mrf.mxu1 }
 0x78a   : > { %v3036_v47 = vpop.f32.mrf.mxu1 }
 0x78c   : > { %v2159_v30 = vpop.f32.mrf.mxu0 }
 0x78d   : > { %v2228_v50 = vpack.c.bf16 %v2159_v30, %v2159_v30 }
 0x78e   : > { %v3043_v51 = vpop.f32.mrf.mxu0 }
 0x78f   : > { %v2235_v52 = vrot.slane %v2228_v50, %v4158_v8 }
 0x790   : > { %v2162_v53 = vpop.f32.mrf.mxu0 }
 0x791   : > { %v2236_v48 = vcombine.low %v2227_v54, %v2235_v52  ;;  %v2237_v58 = vcombine.high %v2227_v54, %v2235_v52 }
 0x792   : > { %v3044_v57 = vpop.f32.mrf.mxu0 }
 0x793   : > { %v2244_v62 = vrot.slane %v2236_v48, %v4161_v12  ;;  %v2251_v1 = vrot.slane %v2237_v58, %v4161_v12 }
 0x794   : > { %v2214_v61 = vpop.f32.mrf.mxu1 }
 0x795   : > { %v2262_v55 = vpack.c.bf16 %v2214_v61, %v2214_v61  ;;  %v2252_v13 = vcombine.high %v2244_v62, %v3686_v20  ;;  %v2253_v16 = vcombine.high %v2251_v1, %v3686_v20  ;;  %v2292_v17 = vshrl.u32 %v2244_v62, 16 }
 0x796   : > { %v3051_v4 = vpop.f32.mrf.mxu1  ;;  %v2308_v25 = vshrl.u32 %v2251_v1, 16 }
 0x797   : > { %v2269_v56 = vrot.slane %v2262_v55, %v4158_v8  ;;  %v2300_v23 = vshrl.u32 %v2252_v13, 16  ;;  %v2316_v35 = vshrl.u32 %v2253_v16, 16 }
 0x798   : > { %v2217_v0 = vpop.f32.mrf.mxu1 }
 0x799   : > { %v2270_v9 = vcombine.low %v2261_v63, %v2269_v56  ;;  %v2271_v10 = vcombine.high %v2261_v63, %v2269_v56  ;;  %v1498_v63 = vld [vmem:[%s1497_s20] sm:$0xff] }
 0x79a   : > { %v3052_v11 = vpop.f32.mrf.mxu1 }
 0x79b   : > { %v2278_v14 = vrot.slane %v2270_v9, %v4161_v12  ;;  %v2285_v15 = vrot.slane %v2271_v10, %v4161_v12 }
 0x79d   : > { %v2286_v18 = vcombine.high %v2278_v14, %v3686_v20  ;;  %v2287_v19 = vcombine.high %v2285_v15, %v3686_v20  ;;  %v2290_v21 = vpack.i.b16 %v2278_v14, %v2244_v62  ;;  %v2293_v22 = vshrl.u32 %v2278_v14, 16 }
 0x79e   : > { %v2306_v26 = vpack.i.b16 %v2285_v15, %v2251_v1  ;;  %v2309_v28 = vshrl.u32 %v2285_v15, 16 }
 0x79f   : > { %v2294_v31 = vpack.i.b16 %v2293_v22, %v2292_v17  ;;  %v2298_v32 = vpack.i.b16 %v2286_v18, %v2252_v13  ;;  %v2301_v33 = vshrl.u32 %v2286_v18, 16  ;;  %v2314_v24 = vpack.i.b16 %v2287_v19, %v2253_v16 }
 0x7a0   : > { %v2310_v60 = vpack.i.b16 %v2309_v28, %v2308_v25  ;;  %v2317_v36 = vshrl.u32 %v2287_v19, 16  ;;  %v2320_v37 = vcombine.low %v2290_v21, %v2306_v26  ;;  %v3286_v19 = vld [vmem:[#allocation19 + $0x8] sm:$0xff]   ;;  %v3287_v21 = vld [vmem:[#allocation19] sm:$0xff]  }
 0x7a1   : > { %v2302_v27 = vpack.i.b16 %v2301_v33, %v2300_v23  ;;  %v2328_v38 = vcombine.low %v2298_v32, %v2314_v24  ;;  %3062 = vmatpush3.bf16.msra.mxu1 %v3286_v19  ;;  %v3288_v33 = vld [vmem:[%s4419_s0 + $0x18] sm:$0xff]   ;;  %v3289_v24 = vld [vmem:[%s4420_s2 + $0x10] sm:$0xff]   ;;  %s2925_s0 = sshll.u32 %s2660_s19, 7  ;;  %s3552_s19 = sshll.u32 %s3690_s21, 4  ;;  %s3553_s19 = int_to_ptr.vmem [resolvable:$false] %s3552_s19 }
 0x7a2   : > { %v2318_v39 = vpack.i.b16 %v2317_v36, %v2316_v35  ;;  %v2345_v40 = vcombine.low %v2294_v31, %v2310_v60  ;;  %v2327_v41 = vrot.slane %v2320_v37, %v4158_v8  ;;  %3063 = vmatprep.subr.bf16.mxu1 %v3679_v34  ;;  %p3555_p13 = scmp.lt.s32.totalorder %s4306_s15, %s3553_s19 }
 0x7a3   : > { %v2335_v42 = vrot.slane %v2328_v38, %v4158_v8 }
 0x7a4   : > { %v2353_v44 = vcombine.low %v2302_v27, %v2318_v39  ;;  %v2352_v46 = vrot.slane %v2345_v40, %v4158_v8 }
 0x7a5   : > { %v2336_v45 = vcombine.low %v2327_v41, %v2335_v42  ;;  %3064 = vmatpush3.bf16.msra.mxu1 %v3287_v21 }
 0x7a6   : > { %v2360_v29 = vrot.slane %v2353_v44, %v4158_v8 }
 0x7a7   : > { %v2343_v47 = vrot.slane %v2336_v45, %v4161_v12 }
 0x7a8   : > { %v2361_v30 = vcombine.low %v2352_v46, %v2360_v29 }
 0x7a9   : > { %v2373_v50 = vshrl.u32 %v2343_v47, 16  ;;  %v2344_v52 = vcombine.high %v2343_v47, %v3686_v20 }
 0x7aa   : > { %v2368_v49 = vrot.slane %v2361_v30, %v4161_v12 }
 0x7ab   : > { %v2379_v8 = vshrl.u32 %v2344_v52, 16 }
 0x7ac   : > { %v2374_v51 = vshrl.u32 %v2368_v49, 16  ;;  %v2369_v53 = vcombine.high %v2368_v49, %v3686_v20  ;;  %v2372_v54 = vpack.i.b16 %v2368_v49, %v2343_v47 }
 0x7ae   : > { %v2375_v57 = vpack.i.b16 %v2374_v51, %v2373_v50  ;;  %v2378_v48 = vpack.i.b16 %v2369_v53, %v2344_v52  ;;  %v2380_v59 = vshrl.u32 %v2369_v53, 16 }
 0x7b0   : > { %2382 = vrot.lane.b32.xlu0 %v2375_v57, %s3687_s18  ;;  %2384 = vrot.lane.b32.xlu1 %v2378_v48, %s3688_s26  ;;  %v2381_v61 = vpack.i.b16 %v2380_v59, %v2379_v8  ;;  %s4421_s26 = sld [smem:[#allocation40_spill]] }
 0x7b4   : > { %2386 = vrot.lane.b32.xlu1 %v2381_v61, %s3689_s9 }
 0x7b6   : > { %s4422_s9 = smov %s4421_s26  ;;  %s4304_s20 = scalar_lea.hbm %s4421_s26, %s2925_s0 }
 0x7b7   : > { %s3554_s0 = scalar_lea.vmem %s3553_s19, 256 }
 0x7b8   : > { %p3556_p2 = scmp.lt.s32.totalorder %s3554_s0, %s3548_s28 }
 0x7ba   : > { %p3557_p4 = por %p3556_p2, %p3555_p13 }
 0x7bc   : > { %p3558_p6 = pnand %p3557_p4, %p3551_p11 }
 0x822   : > { %v2383_v12 = vpop.permute.xlu0 %2382  ;;  %v2385_v58 = vpop.permute.xlu1 %2384 }
 0x823   : > { %v2390_v55 = vsel %vm1744_vm7, %v2372_v54, %v2383_v12 }
 0x824   : > { %v2393_v20 = vsel %vm2391_vm10, %v2390_v55, %v2385_v58 }
 0x826   : > { %v2387_v4 = vpop.permute.xlu1 %2386 }
 0x827   : > { %v2395_v62 = vsel %vm1939_vm9, %v2393_v20, %v2387_v4 }
 0x828   : > { %3058 = vmatmul.mubr.msk.bf16.vlgmr.msra.gmra.mxu0 %vm1526_vm5, %v2395_v62 }
 0x829   : > { %3077 = vmatprep.mubr.msk.bf16.mxu0 %vm3680_vm4, %v3679_v34  ;;  %3070 = vmatpush3.bf16.msra.mxu0 %v3288_v33 }
 0x82a   : > { %3071 = vmatprep.subr.bf16.mxu0 %v3679_v34 }
 0x82d   : > { %3072 = vmatpush3.bf16.msra.mxu0 %v3289_v24 }
 0x82e   : > { %3073 = vmatprep.subr.bf16.mxu0 %v3679_v34 }
 0x8e8   : > { %v2454_v56 = vpop.f32.mrf.mxu0 }
 0x8e9   : > { %v2455_v0 = vadd.f32 %v4002_v5, %v2454_v56 }
 0x8ea   : > { %v3059_v1 = vpop.f32.mrf.mxu0 }
 0x8eb   : > { %v2460_v9 = vadd.f32 %v2455_v0, %v1498_v63 }
 0x8ec   : > { %v2457_v10 = vpop.f32.mrf.mxu0 }
 0x8ed   : > { %v2461_v11 = vsel %vm1526_vm5, %v2460_v9, 0.0 }
 0x8ee   : > { %v3060_v13 = vpop.f32.mrf.mxu0  ;;  %2462 = vadd.xlane.f32.xlu0 %v2461_v11 }
 0x977   : > { %v2463_v14 = vpop.xlane.xlu0 %2462 }
 0x978   : > { %v2465_v15 = vmul.f32 0.03125, %v2463_v14 }
 0x97a   : > { %v2466_v16 = vsub.f32 %v2460_v9, %v2465_v15 }
 0x97c   : > { %v2467_v17 = vmul.f32 %v2466_v16, %v2466_v16 }
 0x97e   : > { %v2468_v18 = vsel %vm1526_vm5, %v2467_v17, 0.0 }
 0x97f   : > { %2469 = vadd.xlane.f32.xlu1 %v2468_v18 }
 0xa08   : > { %v2470_v5 = vpop.xlane.xlu1 %2469 }
 0xa09   : > { %v2471_v22 = vmul.f32 0.03125, %v2470_v5 }
 0xa0b   : > { %v2472_v23 = vadd.f32 1e-05, %v2471_v22 }
 0xa0d   : > { %3308 = vrsqrt.f32 %v2472_v23 }
 0xa1a   : > { %v3309_v25 = vpop.eup %3308 }
 0xa1b   : > { %v2474_v26 = vmul.f32 %v3309_v25, %v2466_v16 }
 0xa1d   : > { %v2481_v28 = vmul.f32 %v3985_v2, %v2474_v26  ;;  %v3290_v2 = vld [vmem:[%s4420_s2 + $0x8] sm:$0xff]  }
 0xa1e   : > { %3074 = vmatpush3.bf16.msra.mxu0 %v3290_v2 }
 0xa1f   : > { %v2488_v31 = vadd.f32 %v3995_v3, %v2481_v28  ;;  %3075 = vmatprep.subr.bf16.mxu0 %v3679_v34  ;;  %v3291_v3 = vld [vmem:[%s4420_s2] sm:$0xff]  }
 0xa21   : > { %v2489_v32 = vpack.c.bf16 %v2488_v31, %v2488_v31 }
 0xa22   : > { %3076 = vmatpush3.bf16.msra.mxu0 %v3291_v3 }
 0xa23   : > { %3066 = vmatmul.mubr.msk.bf16.vlgmr.msra.gmra.mxu1 %vm1526_vm5, %v2489_v32 }
 0xae3   : > { %v2549_v35 = vpop.f32.mrf.mxu1 }
 0xae4   : > { %v2550_v60 = vadd.f32 %v4007_v6, %v2549_v35 }
 0xae5   : > { %v3067_v36 = vpop.f32.mrf.mxu1 }
 0xae6   : > { %v2917_v37 = vmul.f32 -1.702, %v2550_v60 }
 0xae7   : > { %v2552_v27 = vpop.f32.mrf.mxu1 }
 0xae8   : > { %v2557_v38 = vmul.f32 1.442695, %v2917_v37 }
 0xae9   : > { %v3068_v39 = vpop.f32.mrf.mxu1 }
 0xaea   : > { %3310 = vpow2.f32 %v2557_v38 }
 0xaf7   : > { %v3311_v40 = vpop.eup %3310 }
 0xaf8   : > { %v2559_v41 = vadd.f32 1.0, %v3311_v40 }
 0xafa   : > { %3312 = vrcp.f32 %v2559_v41 }
 0xb07   : > { %v3313_v34 = vpop.eup %3312 }
 0xb08   : > { %v2562_v42 = vmul.f32 %v3313_v34, %v2550_v60 }
 0xb0a   : > { %v2563_v43 = vpack.c.bf16 %v2562_v42, %v2562_v42 }
 0xb0c   : > { %3078 = vmatmul.mubr.msk.bf16.vlgmr.msra.gmra.mxu0 %vm2602_vm11, %v2563_v43 }
 0xbcc   : > { %v2640_v6 = vpop.f32.mrf.mxu0 }
 0xbcd   : > { %v2641_v44 = vadd.f32 %v4012_v7, %v2640_v6 }
 0xbce   : > { %v3079_v45 = vpop.f32.mrf.mxu0 }
 0xbcf   : > { %v2646_v46 = vadd.f32 %v2641_v44, %v2460_v9 }
 0xbd0   : > { %v2643_v29 = vpop.f32.mrf.mxu0 }
 0xbd1   : > { %2647 = vst.msk [vmem:[%s676_s29] sm:$0xff] %vm1526_vm5, %v2646_v46 }
 0xbd2   : > { %v3080_v47 = vpop.f32.mrf.mxu0 }
 0xbd3   : > { %3561 = shalt.err (!%p3558_p6)
}
 0xbd4   : > { %s3562_s1 = scalar_lea.hbm %s4304_s20, 128  ;;  %s3566_s24 = scalar_lea.hbm %s4422_s9, 768 }
 0xbd5   : > { %p3563_p8 = scmp.ne.s32.totalorder %s4304_s20, %s3562_s1  ;;  %p3567_p1 = scmp.lt.s32.totalorder %s4304_s20, %s4422_s9 }
 0xbd6   : > { %p3568_p0 = scmp.lt.s32.totalorder %s3566_s24, %s3562_s1 }
 0xbd7   : > { %p3564_p5 = pnand %p3563_p8, %p4423_p9 }
 0xbd8   : > { %p3569_p7 = por %p3568_p0, %p3567_p1 }
 0xbd9   : > { %p3565_p3 = pneg %p3564_p5 }
 0xbdb   : > { %p3570_p12 = pnand %p3569_p7, %p3565_p3 }
 0xbdd   : > { %3573 = shalt.err (!%p3570_p12)
}
 0xbde   : > { %3119 = dma.vmem_to_hbm [thread:$0]  (%p4423_p9), %s4306_s15, 128, %s4304_s20, %s2649_s27  }
 0xbdf PF: > { %s4424_s28 = sld [smem:[#allocation27_spill]]  ;;  %p3171_p10 = scmp.ge.s32.totalorder %s3660_s30, 2 }
 0xbe0   : > { %s4425_s21 = sld [smem:[#allocation33_spill]] }
 0xbe5   : > { %s2676_s19 = sand.u32 1, %s4424_s28  }
 0xbe6   : > { %p4426_p11 = scmp.ne.s32.totalorder %s4425_s21, 0  ;;  %s2677_s0 = scalar_lea.sflag [#allocation7], %s2676_s19 }
 0xbe8   : > { %p3150_p13 = pnand %p3171_p10, %p4426_p11 }
 0xbea   : > { %p3151_p2 = pneg %p3150_p13 }
 0xbec   : > { %3627 = dma.done.wait (%p3151_p2), %s2677_s0, 128  }
 0xbed   : > { %3629 = vsyncadd (%p3151_p2), %s2677_s0, 4294967168  ;;  %s35_s30 = sadd.s32 1, %s3660_s30   ;;  %s4427_s23 = sld [smem:[#allocation28_spill]] }
 0xbee   : > { %p32_p4 = scmp.ge.s32.totalorder %s35_s30, 8   ;;  %s4428_s26 = sld [smem:[#allocation34_spill]] }
 0xbef   : > { %s4429_s27 = sld [smem:[#allocation29_spill]]  ;;  %s4433_s24 = smov %s3636_s25 }
 0xbf0   : > { %s4430_s28 = sld [smem:[#allocation30_spill]]  ;;  %34 = sbr.rel (!%p32_p4) target bundleno = 17 (0x11), region = 166 }
 0xbf1   : > { %s4431_s29 = sld [smem:[#allocation31_spill]] }
 0xbf2   : > { %s4432_s0 = sld [smem:[#allocation32_spill]] }
 0xbf3   : > { %s4434_s25 = smov %s4427_s23 }
 0xbf5   :  { %2682 = vsyncpa [#allocation6], 1 }
 0xbf6   :  { %2684 = vsyncpa [#allocation6 + $0x1], 1 }
 0xbf7   :  { %2685 = vsyncpa [#allocation9], 1 }
 0xbf8   :  { %2686 = vsyncpa [#allocation12], 1 }
 0xbf9   :  { %2687 = vsyncpa [#allocation15], 1 }
 0xbfa   :  { %2688 = vsyncpa [#allocation18], 1 }
 0xbfb   :  { %2689 = vsyncpa [#allocation7], 1 }
 0xbfc   :  { %2691 = vsyncpa [#allocation7 + $0x1], 1 }

</bundles_post_ra>
